<compile_context>
chip_gen: v7x
topology: tpu7x:2x2x1
jax: 0.10.0
libtpu: 0.0.40
codegen_flags: <defaults>
</compile_context>

<pallas_src>
import functools

import jax
import jax.numpy as jnp
import numpy as np
from jax.experimental import pallas as pl
from jax.experimental.pallas import tpu as pltpu

_ACTS = {
    "relu": lambda x: jnp.maximum(x, 0.0),
    "elu": lambda x: jnp.where(x > 0, x, jnp.expm1(x)),
    "leaky_relu": lambda x: jnp.where(x > 0, x, 0.01 * x),
    "tanh": jnp.tanh,
    "sigmoid": jax.nn.sigmoid,
    "selu": jax.nn.selu,
    "softplus": jax.nn.softplus,
    "identity": lambda x: x,
}

_VMEM_LIMIT = 32 * 1024 * 1024   # v7x-friendly scoped-VMEM cap (actual use << 2 MiB)


# -----------------------------------------------------------------------------
# Pallas kernel 1: fused  act(A @ W + b)   (bf16 MXU inputs, f32 accumulator)
# Used once per forward, for the folded dense+h1 matmul.
# -----------------------------------------------------------------------------
def _mm_kernel(a_ref, w_ref, b_ref, o_ref, *, act):
    acc = jnp.dot(a_ref[...], w_ref[...], preferred_element_type=jnp.float32)
    o_ref[...] = act(acc + b_ref[...]).astype(o_ref.dtype)


def _pick_tm(M):
    # Cap at 256 so big-M cases still get >=4 pipelined grid steps (>=2 per
    # v7x TensorCore).  Ragged last tile is handled by the cdiv grid (stores
    # are masked; the kernel has no cross-row reductions, so garbage rows in
    # the padded A block cannot leak into valid outputs).
    return M if M <= 256 else 256


def matmul_bias_act(a, w, b_row, act_name, out_dtype=jnp.float32):
    """act(a @ w + b): hot path on the MXU (bf16 in, f32 accumulate)."""
    M, Kd = a.shape
    Kd2, N = w.shape
    assert Kd == Kd2 and b_row.shape == (1, N)
    tm = _pick_tm(M)
    return pl.pallas_call(
        functools.partial(_mm_kernel, act=_ACTS[act_name]),
        out_shape=jax.ShapeDtypeStruct((M, N), out_dtype),
        grid_spec=pltpu.PrefetchScalarGridSpec(
            num_scalar_prefetch=0,
            grid=(pl.cdiv(M, tm),),
            in_specs=[
                pl.BlockSpec((tm, Kd), lambda i: (i, 0)),
                pl.BlockSpec((Kd, N), lambda i: (0, 0)),   # W stays resident
                pl.BlockSpec((1, N), lambda i: (0, 0)),
            ],
            out_specs=pl.BlockSpec((tm, N), lambda i: (i, 0)),
        ),
        compiler_params=pltpu.CompilerParams(
            dimension_semantics=("parallel",),
            vmem_limit_bytes=_VMEM_LIMIT),
    )(a.astype(jnp.bfloat16), w.astype(jnp.bfloat16), b_row.astype(jnp.float32))


# -----------------------------------------------------------------------------
# Pallas kernel 2: fully fused ConvTranspose2d (stride s, padding 0)
#   per image:  acc = sum_kh  S_kh[OH,IH] @ ( X[IH,IW*Cin] @ W_kh[IW*Cin,OW*Cout] )
#               out = act(acc + bias_row)
#   * W_kh folds the width scatter (block-sparse, zero-padded) -> no lane tricks
#   * S_kh is a 0/1 row-scatter matrix -> the height overlap-add is a matmul
#   * everything stays in VMEM/registers; only act(out) is written to HBM
# -----------------------------------------------------------------------------
def _deconv_kernel(a_ref, w_ref, s_ref, b_ref, o_ref, *, act, K, Bt, OW, Cout, nchw):
    bias = b_ref[...]                                    # [1, OW*Cout] f32
    for bi in range(Bt):
        a = a_ref[bi]                                    # [IH, IW*Cin] bf16
        acc = None
        for kh in range(K):                              # K in {5, 6}: static unroll
            y = jnp.dot(a, w_ref[kh], preferred_element_type=jnp.float32)   # [IH, OWC]
            c = jnp.dot(s_ref[kh], y, preferred_element_type=jnp.float32)   # [OH, OWC]
            acc = c if acc is None else acc + c
        res = act(acc + bias)                            # f32 epilogue
        if nchw:                                         # final layer: NCHW planes
            for co in range(Cout):
                o_ref[bi, co] = res[:, co * OW:(co + 1) * OW].astype(o_ref.dtype)
        else:                                            # lane-dense NHWC rows
            o_ref[bi] = res.astype(o_ref.dtype)


def _pick_batch_block(B):
    # Several images per grid step only when it still leaves >=8 grid steps
    # (keeps both v7x TensorCores pipelined); otherwise one image per step.
    for bt in (8, 4, 2):
        if B % bt == 0 and B // bt >= 8:
            return bt
    return 1


def fused_deconv(a, w_all, s_all, b_row, *, act_name, Cout, nchw, out_dtype):
    """a: [B, IH, IW*Cin] bf16 lane-dense rows.  w_all: [K, IW*Cin, OW*Cout] bf16.
    s_all: [K, OH, IH] f32 (0/1).  b_row: [1, OW*Cout] f32 (bias tiled over width)."""
    B, IH, IWC = a.shape
    K, IWC2, OWC = w_all.shape
    assert IWC == IWC2
    OH = s_all.shape[1]
    OW = OWC // Cout
    Bt = _pick_batch_block(B)

    if nchw:
        out_shape = jax.ShapeDtypeStruct((B, Cout, OH, OW), out_dtype)
        out_spec = pl.BlockSpec((Bt, Cout, OH, OW), lambda b: (b, 0, 0, 0))
    else:
        out_shape = jax.ShapeDtypeStruct((B, OH, OWC), out_dtype)
        out_spec = pl.BlockSpec((Bt, OH, OWC), lambda b: (b, 0, 0))

    kernel = functools.partial(_deconv_kernel, act=_ACTS[act_name], K=K, Bt=Bt,
                               OW=OW, Cout=Cout, nchw=nchw)
    return pl.pallas_call(
        kernel,
        out_shape=out_shape,
        grid_spec=pltpu.PrefetchScalarGridSpec(
            num_scalar_prefetch=0,
            grid=(B // Bt,),
            in_specs=[
                pl.BlockSpec((Bt, IH, IWC), lambda b: (b, 0, 0)),
                pl.BlockSpec((K, IWC, OWC), lambda b: (0, 0, 0)),   # resident
                pl.BlockSpec((K, OH, IH), lambda b: (0, 0, 0)),     # resident
                pl.BlockSpec((1, OWC), lambda b: (0, 0)),           # resident
            ],
            out_specs=out_spec,
        ),
        compiler_params=pltpu.CompilerParams(
            dimension_semantics=("parallel",),
            vmem_limit_bytes=_VMEM_LIMIT),
    )(a, w_all, s_all, b_row)


# -----------------------------------------------------------------------------
# Weight preparation: done ONCE outside the forward.
# -----------------------------------------------------------------------------
def _deconv_tables(w_pt, bias, IH, IW, stride, nchw):
    """Build the folded col2im tables for one ConvTranspose2d layer."""
    w = np.asarray(w_pt, np.float32)                     # [Cin, Cout, K, K] (PyTorch)
    Cin, Cout, K, _ = w.shape
    OH = (IH - 1) * stride + K
    OW = (IW - 1) * stride + K
    # Width-scatter-folded weight: W_all[kh, iw*Cin+ci, col(ow,co)] = w[ci,co,kh,kw]
    # with ow = iw*stride + kw (block-sparse; zeros elsewhere).
    W_all = np.zeros((K, IW * Cin, OW * Cout), np.float32)
    for kh in range(K):
        for iw in range(IW):
            rows = slice(iw * Cin, (iw + 1) * Cin)
            for kw in range(K):
                ow = iw * stride + kw
                blk = w[:, :, kh, kw]                    # [Cin, Cout]
                if nchw:                                 # columns ordered (co, ow)
                    W_all[kh, rows, ow::OW] = blk
                else:                                    # columns ordered (ow, co)
                    W_all[kh, rows, ow * Cout:(ow + 1) * Cout] = blk
    # Height overlap-add as a 0/1 row-scatter matrix: out row ih*stride+kh <- Y row ih.
    S_all = np.zeros((K, OH, IH), np.float32)
    for kh in range(K):
        for ih in range(IH):
            S_all[kh, ih * stride + kh, ih] = 1.0
    b = np.asarray(bias, np.float32)
    b_row = (np.repeat(b, OW) if nchw else np.tile(b, OW)).reshape(1, OW * Cout)
    return (jnp.asarray(W_all, jnp.bfloat16), jnp.asarray(S_all, jnp.float32),
            jnp.asarray(b_row, jnp.float32), OH)


def prepare_params(params):
    stride = 2
    dense_w = np.asarray(params["dense_w"], np.float32)   # [F, 32d]
    dense_b = np.asarray(params["dense_b"], np.float32)
    h1_w = np.asarray(params["h1_w"], np.float32)          # [32d, 4d, K1, K1]
    h1_b = np.asarray(params["h1_b"], np.float32)
    C32, C4, K1, _ = h1_w.shape

    # h1 sees a 1x1 spatial input, so it is a pure matmul.  Columns ordered
    # (kh, kw, co) => its output rows are already h2's lane-dense NHWC A rows.
    h1_flat = h1_w.transpose(0, 2, 3, 1).reshape(C32, K1 * K1 * C4)
    # Fold dense @ h1 in f32 (exact: no activation between them), cast bf16 once.
    w01 = dense_w @ h1_flat
    b01 = dense_b @ h1_flat + np.tile(h1_b, K1 * K1)

    prep = {
        "w01": jnp.asarray(w01, jnp.bfloat16),
        "b01": jnp.asarray(b01.reshape(1, -1), jnp.float32),
    }
    IH = K1                                               # spatial size after h1
    for name, nchw in (("h2", False), ("h3", False), ("h4", True)):
        w_all, s_all, b_row, OH = _deconv_tables(
            params[name + "_w"], params[name + "_b"], IH, IH, stride, nchw)
        prep[name + "_w"], prep[name + "_s"], prep[name + "_b"] = w_all, s_all, b_row
        IH = OH
    return prep


# -----------------------------------------------------------------------------
# Full ConvDecoder forward
# -----------------------------------------------------------------------------
@functools.partial(jax.jit, static_argnames=("activation", "depth", "output_shape"))
def conv_decoder_forward(features, prep, *, activation, depth, output_shape):
    B = features.shape[0]
    d = depth
    out_ch = output_shape[0]

    # Fused dense + h1: one Pallas matmul (bias + activation in the epilogue).
    x = matmul_bias_act(features, prep["w01"], prep["b01"], activation,
                        out_dtype=jnp.bfloat16)                        # [B, 25*4d]
    IH2 = prep["h2_s"].shape[2]                                        # = 5
    x = x.reshape(B, IH2, x.shape[1] // IH2)                           # [B, 5, 5*4d]

    # Fully fused transposed convolutions (bias + activation inside the kernel).
    x = fused_deconv(x, prep["h2_w"], prep["h2_s"], prep["h2_b"],
                     act_name=activation, Cout=2 * d, nchw=False,
                     out_dtype=jnp.bfloat16)                           # [B, 13, 13*2d]
    x = fused_deconv(x, prep["h3_w"], prep["h3_s"], prep["h3_b"],
                     act_name=activation, Cout=d, nchw=False,
                     out_dtype=jnp.bfloat16)                           # [B, 30, 30*d]
    mean = fused_deconv(x, prep["h4_w"], prep["h4_s"], prep["h4_b"],
                        act_name="identity", Cout=out_ch, nchw=True,
                        out_dtype=jnp.float32)                         # [B, C, 64, 64]
    # TODO(synk): distributions.Independent(Normal(mean, 1.0)) has no tensor
    # compute; the returned `mean` fully determines it (std == 1).
    return mean


# -----------------------------------------------------------------------------
# Deterministic parameter init (synthetic; shapes follow the PyTorch __init__)
# -----------------------------------------------------------------------------
def init_params(key, stoch_size, deter_size, depth, out_ch):
    ks = jax.random.split(key, 10)
    f = stoch_size + deter_size
    w = lambda k, shape: 0.05 * jax.random.normal(k, shape, jnp.float32)
    return {
        "dense_w": w(ks[0], (f, 32 * depth)),
        "dense_b": w(ks[1], (32 * depth,)),
        "h1_w": w(ks[2], (32 * depth, 4 * depth, 5, 5)),
        "h1_b": w(ks[3], (4 * depth,)),
        "h2_w": w(ks[4], (4 * depth, 2 * depth, 5, 5)),
        "h2_b": w(ks[5], (2 * depth,)),
        "h3_w": w(ks[6], (2 * depth, depth, 6, 6)),
        "h3_b": w(ks[7], (depth,)),
        "h4_w": w(ks[8], (depth, out_ch, 6, 6)),
        "h4_b": w(ks[9], (out_ch,)),
    }


# -----------------------------------------------------------------------------
# Pure-numpy f32 reference (mirrors the PyTorch forward) for a correctness check
# -----------------------------------------------------------------------------
def _np_conv_transpose(x_nhwc, w, b, stride):
    B, IH, IW, Cin = x_nhwc.shape
    _, Cout, K, _ = w.shape
    OH = (IH - 1) * stride + K
    out = np.zeros((B, OH, OH, Cout), np.float32)
    for ih in range(IH):
        for iw in range(IW):
            contrib = np.einsum("bc,cokl->bklo", x_nhwc[:, ih, iw, :], w)
            out[:, ih * stride:ih * stride + K, iw * stride:iw * stride + K, :] += contrib
    return out + b


def _reference_forward(features, params, activation):
    act = {"relu": lambda v: np.maximum(v, 0.0), "identity": lambda v: v}[activation]
    x = features @ params["dense_w"] + params["dense_b"]
    y = np.einsum("bc,cokl->bklo", x, params["h1_w"]) + params["h1_b"]
    x = act(y)                                                           # [B,5,5,4d]
    x = act(_np_conv_transpose(x, params["h2_w"], params["h2_b"], 2))    # [B,13,13,2d]
    x = act(_np_conv_transpose(x, params["h3_w"], params["h3_b"], 2))    # [B,30,30,d]
    mean = _np_conv_transpose(x, params["h4_w"], params["h4_b"], 2)      # [B,64,64,C]
    return mean.transpose(0, 3, 1, 2)


if __name__ == "__main__":
    depth, stoch_size, deter_size, out_ch = 8, 8, 24, 3
    output_shape = (out_ch, 64, 64)   # fixed by the kernel/stride schedule (1->5->13->30->64)
    B = 2

    key = jax.random.PRNGKey(0)
    kp, kx = jax.random.split(key)
    params = init_params(kp, stoch_size, deter_size, depth, out_ch)
    prep = prepare_params(params)     # weight fold / flatten / bf16 cast: once
    features = jax.random.normal(kx, (B, stoch_size + deter_size), jnp.float32)

    mean = conv_decoder_forward(features, prep, activation="relu",
                                depth=depth, output_shape=output_shape)
    mean = jax.block_until_ready(mean)
    assert mean.shape == (B,) + output_shape, mean.shape

    # f32 numpy reference; the tolerance absorbs the (small) bf16 rounding of
    # the folded weights and inter-layer activations across the 4 stages.
    params_np = {k: np.asarray(v) for k, v in params.items()}
    ref = _reference_forward(np.asarray(features), params_np, "relu")
    np.testing.assert_allclose(np.asarray(mean), ref, rtol=5e-2, atol=5e-2)

    print("KERNEL_OK")
</pallas_src>

<mosaic_0001>
module attributes {stable_mosaic.version = 11 : i64} {
  func.func @_mm_kernel(%arg0: i32, %arg1: memref<2x32xbf16, #tpu.memory_space<vmem>>, %arg2: memref<32x800xbf16, #tpu.memory_space<vmem>>, %arg3: memref<1x800xf32, #tpu.memory_space<vmem>>, %arg4: memref<2x800xbf16, #tpu.memory_space<vmem>>) attributes {dimension_semantics = [#tpu.dimension_semantics<parallel>], iteration_bounds = array<i64: 1>, scalar_prefetch = 0 : i64, scratch_operands = 0 : i64, tpu.core_type = #tpu.core_type<tc>, window_params = [{transform_indices = @transform_0, window_bounds = array<i64: 2, 32>}, {pipeline_mode = #tpu.pipeline_mode<synchronous>, transform_indices = @transform_1, window_bounds = array<i64: 32, 800>}, {pipeline_mode = #tpu.pipeline_mode<synchronous>, transform_indices = @transform_2, window_bounds = array<i64: 1, 800>}, {transform_indices = @transform_3, window_bounds = array<i64: 2, 800>}]} {
    %c0 = arith.constant 0 : index
    %c0_0 = arith.constant 0 : index
    %0 = vector.load %arg1[%c0, %c0_0] : memref<2x32xbf16, #tpu.memory_space<vmem>>, vector<2x32xbf16>
    %c0_1 = arith.constant 0 : index
    %c0_2 = arith.constant 0 : index
    %1 = vector.load %arg2[%c0_1, %c0_2] : memref<32x800xbf16, #tpu.memory_space<vmem>>, vector<32x800xbf16>
    %cst = arith.constant dense<0.000000e+00> : vector<2x800xf32>
    %2 = tpu.matmul %0, %1, %cst {dimension_numbers = #tpu.dot_dimension_numbers<[1], [0], [0], [1], [0, 0, 1, 1], [], []>} : vector<2x32xbf16>, vector<32x800xbf16>, vector<2x800xf32> -> vector<2x800xf32>
    %c0_3 = arith.constant 0 : index
    %c0_4 = arith.constant 0 : index
    %3 = vector.load %arg3[%c0_3, %c0_4] : memref<1x800xf32, #tpu.memory_space<vmem>>, vector<1x800xf32>
    %4 = vector.broadcast %3 : vector<1x800xf32> to vector<2x800xf32>
    %5 = arith.addf %2, %4 : vector<2x800xf32>
    %cst_5 = arith.constant 0.000000e+00 : f32
    %6 = vector.broadcast %cst_5 : f32 to vector<2x800xf32>
    %7 = arith.maximumf %5, %6 : vector<2x800xf32>
    %8 = arith.truncf %7 : vector<2x800xf32> to vector<2x800xbf16>
    %c0_6 = arith.constant 0 : index
    %c0_7 = arith.constant 0 : index
    %9 = vector.load %arg4[%c0_6, %c0_7] : memref<2x800xbf16, #tpu.memory_space<vmem>>, vector<2x800xbf16>
    tpu.vector_store %arg4[%c0_6, %c0_7], %8 {strides = array<i32>} : memref<2x800xbf16, #tpu.memory_space<vmem>>, vector<2x800xbf16>,
    return
  }
  func.func @transform_0(%arg0: i32) -> (i32, i32) {
    %c0_i32 = arith.constant 0 : i32
    %c0_i32_0 = arith.constant 0 : i32
    return %arg0, %c0_i32 : i32, i32
  }
  func.func @transform_1(%arg0: i32) -> (i32, i32) {
    %c0_i32 = arith.constant 0 : i32
    %c0_i32_0 = arith.constant 0 : i32
    %c0_i32_1 = arith.constant 0 : i32
    return %c0_i32, %c0_i32_0 : i32, i32
  }
  func.func @transform_2(%arg0: i32) -> (i32, i32) {
    %c0_i32 = arith.constant 0 : i32
    %c0_i32_0 = arith.constant 0 : i32
    %c0_i32_1 = arith.constant 0 : i32
    return %c0_i32, %c0_i32_0 : i32, i32
  }
  func.func @transform_3(%arg0: i32) -> (i32, i32) {
    %c0_i32 = arith.constant 0 : i32
    %c0_i32_0 = arith.constant 0 : i32
    return %arg0, %c0_i32 : i32, i32
  }
}

module attributes {stable_mosaic.version = 11 : i64} {
  func.func @_deconv_kernel(%arg0: i32, %arg1: memref<1x5x160xbf16, #tpu.memory_space<vmem>>, %arg2: memref<5x160x208xbf16, #tpu.memory_space<vmem>>, %arg3: memref<5x13x5xf32, #tpu.memory_space<vmem>>, %arg4: memref<1x208xf32, #tpu.memory_space<vmem>>, %arg5: memref<1x13x208xbf16, #tpu.memory_space<vmem>>) attributes {dimension_semantics = [#tpu.dimension_semantics<parallel>], iteration_bounds = array<i64: 2>, scalar_prefetch = 0 : i64, scratch_operands = 0 : i64, tpu.core_type = #tpu.core_type<tc>, window_params = [{transform_indices = @transform_0, window_bounds = array<i64: 1, 5, 160>}, {pipeline_mode = #tpu.pipeline_mode<synchronous>, transform_indices = @transform_1, window_bounds = array<i64: 5, 160, 208>}, {pipeline_mode = #tpu.pipeline_mode<synchronous>, transform_indices = @transform_2, window_bounds = array<i64: 5, 13, 5>}, {pipeline_mode = #tpu.pipeline_mode<synchronous>, transform_indices = @transform_3, window_bounds = array<i64: 1, 208>}, {transform_indices = @transform_4, window_bounds = array<i64: 1, 13, 208>}]} {
    %c0 = arith.constant 0 : index
    %c0_0 = arith.constant 0 : index
    %0 = vector.load %arg4[%c0, %c0_0] : memref<1x208xf32, #tpu.memory_space<vmem>>, vector<1x208xf32>
    %c0_1 = arith.constant 0 : index
    %c0_2 = arith.constant 0 : index
    %c0_3 = arith.constant 0 : index
    %1 = vector.load %arg1[%c0_1, %c0_2, %c0_3] : memref<1x5x160xbf16, #tpu.memory_space<vmem>>, vector<1x5x160xbf16>
    %2 = vector.shape_cast %1 : vector<1x5x160xbf16> to vector<5x160xbf16>
    %c0_4 = arith.constant 0 : index
    %c0_5 = arith.constant 0 : index
    %c0_6 = arith.constant 0 : index
    %3 = vector.load %arg2[%c0_4, %c0_5, %c0_6] : memref<5x160x208xbf16, #tpu.memory_space<vmem>>, vector<1x160x208xbf16>
    %4 = vector.shape_cast %3 : vector<1x160x208xbf16> to vector<160x208xbf16>
    %cst = arith.constant dense<0.000000e+00> : vector<5x208xf32>
    %5 = tpu.matmul %2, %4, %cst {dimension_numbers = #tpu.dot_dimension_numbers<[1], [0], [0], [1], [0, 0, 1, 1], [], []>} : vector<5x160xbf16>, vector<160x208xbf16>, vector<5x208xf32> -> vector<5x208xf32>
    %c0_7 = arith.constant 0 : index
    %c0_8 = arith.constant 0 : index
    %c0_9 = arith.constant 0 : index
    %6 = vector.load %arg3[%c0_7, %c0_8, %c0_9] : memref<5x13x5xf32, #tpu.memory_space<vmem>>, vector<1x13x5xf32>
    %7 = vector.shape_cast %6 : vector<1x13x5xf32> to vector<13x5xf32>
    %cst_10 = arith.constant dense<0.000000e+00> : vector<13x208xf32>
    %8 = tpu.matmul %7, %5, %cst_10 {dimension_numbers = #tpu.dot_dimension_numbers<[1], [0], [0], [1], [0, 0, 1, 1], [], []>} : vector<13x5xf32>, vector<5x208xf32>, vector<13x208xf32> -> vector<13x208xf32>
    %c1 = arith.constant 1 : index
    %c0_11 = arith.constant 0 : index
    %c0_12 = arith.constant 0 : index
    %9 = vector.load %arg2[%c1, %c0_11, %c0_12] : memref<5x160x208xbf16, #tpu.memory_space<vmem>>, vector<1x160x208xbf16>
    %10 = vector.shape_cast %9 : vector<1x160x208xbf16> to vector<160x208xbf16>
    %cst_13 = arith.constant dense<0.000000e+00> : vector<5x208xf32>
    %11 = tpu.matmul %2, %10, %cst_13 {dimension_numbers = #tpu.dot_dimension_numbers<[1], [0], [0], [1], [0, 0, 1, 1], [], []>} : vector<5x160xbf16>, vector<160x208xbf16>, vector<5x208xf32> -> vector<5x208xf32>
    %c1_14 = arith.constant 1 : index
    %c0_15 = arith.constant 0 : index
    %c0_16 = arith.constant 0 : index
    %12 = vector.load %arg3[%c1_14, %c0_15, %c0_16] : memref<5x13x5xf32, #tpu.memory_space<vmem>>, vector<1x13x5xf32>
    %13 = vector.shape_cast %12 : vector<1x13x5xf32> to vector<13x5xf32>
    %cst_17 = arith.constant dense<0.000000e+00> : vector<13x208xf32>
    %14 = tpu.matmul %13, %11, %cst_17 {dimension_numbers = #tpu.dot_dimension_numbers<[1], [0], [0], [1], [0, 0, 1, 1], [], []>} : vector<13x5xf32>, vector<5x208xf32>, vector<13x208xf32> -> vector<13x208xf32>
    %15 = arith.addf %8, %14 : vector<13x208xf32>
    %c2 = arith.constant 2 : index
    %c0_18 = arith.constant 0 : index
    %c0_19 = arith.constant 0 : index
    %16 = vector.load %arg2[%c2, %c0_18, %c0_19] : memref<5x160x208xbf16, #tpu.memory_space<vmem>>, vector<1x160x208xbf16>
    %17 = vector.shape_cast %16 : vector<1x160x208xbf16> to vector<160x208xbf16>
    %cst_20 = arith.constant dense<0.000000e+00> : vector<5x208xf32>
    %18 = tpu.matmul %2, %17, %cst_20 {dimension_numbers = #tpu.dot_dimension_numbers<[1], [0], [0], [1], [0, 0, 1, 1], [], []>} : vector<5x160xbf16>, vector<160x208xbf16>, vector<5x208xf32> -> vector<5x208xf32>
    %c2_21 = arith.constant 2 : index
    %c0_22 = arith.constant 0 : index
    %c0_23 = arith.constant 0 : index
    %19 = vector.load %arg3[%c2_21, %c0_22, %c0_23] : memref<5x13x5xf32, #tpu.memory_space<vmem>>, vector<1x13x5xf32>
    %20 = vector.shape_cast %19 : vector<1x13x5xf32> to vector<13x5xf32>
    %cst_24 = arith.constant dense<0.000000e+00> : vector<13x208xf32>
    %21 = tpu.matmul %20, %18, %cst_24 {dimension_numbers = #tpu.dot_dimension_numbers<[1], [0], [0], [1], [0, 0, 1, 1], [], []>} : vector<13x5xf32>, vector<5x208xf32>, vector<13x208xf32> -> vector<13x208xf32>
    %22 = arith.addf %15, %21 : vector<13x208xf32>
    %c3 = arith.constant 3 : index
    %c0_25 = arith.constant 0 : index
    %c0_26 = arith.constant 0 : index
    %23 = vector.load %arg2[%c3, %c0_25, %c0_26] : memref<5x160x208xbf16, #tpu.memory_space<vmem>>, vector<1x160x208xbf16>
    %24 = vector.shape_cast %23 : vector<1x160x208xbf16> to vector<160x208xbf16>
    %cst_27 = arith.constant dense<0.000000e+00> : vector<5x208xf32>
    %25 = tpu.matmul %2, %24, %cst_27 {dimension_numbers = #tpu.dot_dimension_numbers<[1], [0], [0], [1], [0, 0, 1, 1], [], []>} : vector<5x160xbf16>, vector<160x208xbf16>, vector<5x208xf32> -> vector<5x208xf32>
    %c3_28 = arith.constant 3 : index
    %c0_29 = arith.constant 0 : index
    %c0_30 = arith.constant 0 : index
    %26 = vector.load %arg3[%c3_28, %c0_29, %c0_30] : memref<5x13x5xf32, #tpu.memory_space<vmem>>, vector<1x13x5xf32>
    %27 = vector.shape_cast %26 : vector<1x13x5xf32> to vector<13x5xf32>
    %cst_31 = arith.constant dense<0.000000e+00> : vector<13x208xf32>
    %28 = tpu.matmul %27, %25, %cst_31 {dimension_numbers = #tpu.dot_dimension_numbers<[1], [0], [0], [1], [0, 0, 1, 1], [], []>} : vector<13x5xf32>, vector<5x208xf32>, vector<13x208xf32> -> vector<13x208xf32>
    %29 = arith.addf %22, %28 : vector<13x208xf32>
    %c4 = arith.constant 4 : index
    %c0_32 = arith.constant 0 : index
    %c0_33 = arith.constant 0 : index
    %30 = vector.load %arg2[%c4, %c0_32, %c0_33] : memref<5x160x208xbf16, #tpu.memory_space<vmem>>, vector<1x160x208xbf16>
    %31 = vector.shape_cast %30 : vector<1x160x208xbf16> to vector<160x208xbf16>
    %cst_34 = arith.constant dense<0.000000e+00> : vector<5x208xf32>
    %32 = tpu.matmul %2, %31, %cst_34 {dimension_numbers = #tpu.dot_dimension_numbers<[1], [0], [0], [1], [0, 0, 1, 1], [], []>} : vector<5x160xbf16>, vector<160x208xbf16>, vector<5x208xf32> -> vector<5x208xf32>
    %c4_35 = arith.constant 4 : index
    %c0_36 = arith.constant 0 : index
    %c0_37 = arith.constant 0 : index
    %33 = vector.load %arg3[%c4_35, %c0_36, %c0_37] : memref<5x13x5xf32, #tpu.memory_space<vmem>>, vector<1x13x5xf32>
    %34 = vector.shape_cast %33 : vector<1x13x5xf32> to vector<13x5xf32>
    %cst_38 = arith.constant dense<0.000000e+00> : vector<13x208xf32>
    %35 = tpu.matmul %34, %32, %cst_38 {dimension_numbers = #tpu.dot_dimension_numbers<[1], [0], [0], [1], [0, 0, 1, 1], [], []>} : vector<13x5xf32>, vector<5x208xf32>, vector<13x208xf32> -> vector<13x208xf32>
    %36 = arith.addf %29, %35 : vector<13x208xf32>
    %37 = vector.broadcast %0 : vector<1x208xf32> to vector<13x208xf32>
    %38 = arith.addf %36, %37 : vector<13x208xf32>
    %cst_39 = arith.constant 0.000000e+00 : f32
    %39 = vector.broadcast %cst_39 : f32 to vector<13x208xf32>
    %40 = arith.maximumf %38, %39 : vector<13x208xf32>
    %41 = arith.truncf %40 : vector<13x208xf32> to vector<13x208xbf16>
    %c0_40 = arith.constant 0 : index
    %c0_41 = arith.constant 0 : index
    %c0_42 = arith.constant 0 : index
    %42 = vector.load %arg5[%c0_40, %c0_41, %c0_42] : memref<1x13x208xbf16, #tpu.memory_space<vmem>>, vector<1x13x208xbf16>
    %43 = vector.shape_cast %42 : vector<1x13x208xbf16> to vector<13x208xbf16>
    %44 = vector.shape_cast %41 : vector<13x208xbf16> to vector<1x13x208xbf16>
    tpu.vector_store %arg5[%c0_40, %c0_41, %c0_42], %44 {strides = array<i32>} : memref<1x13x208xbf16, #tpu.memory_space<vmem>>, vector<1x13x208xbf16>,
    return
  }
  func.func @transform_0(%arg0: i32) -> (i32, i32, i32) {
    %c0_i32 = arith.constant 0 : i32
    %c0_i32_0 = arith.constant 0 : i32
    %c0_i32_1 = arith.constant 0 : i32
    return %arg0, %c0_i32, %c0_i32_0 : i32, i32, i32
  }
  func.func @transform_1(%arg0: i32) -> (i32, i32, i32) {
    %c0_i32 = arith.constant 0 : i32
    %c0_i32_0 = arith.constant 0 : i32
    %c0_i32_1 = arith.constant 0 : i32
    %c0_i32_2 = arith.constant 0 : i32
    return %c0_i32, %c0_i32_0, %c0_i32_1 : i32, i32, i32
  }
  func.func @transform_2(%arg0: i32) -> (i32, i32, i32) {
    %c0_i32 = arith.constant 0 : i32
    %c0_i32_0 = arith.constant 0 : i32
    %c0_i32_1 = arith.constant 0 : i32
    %c0_i32_2 = arith.constant 0 : i32
    return %c0_i32, %c0_i32_0, %c0_i32_1 : i32, i32, i32
  }
  func.func @transform_3(%arg0: i32) -> (i32, i32) {
    %c0_i32 = arith.constant 0 : i32
    %c0_i32_0 = arith.constant 0 : i32
    %c0_i32_1 = arith.constant 0 : i32
    return %c0_i32, %c0_i32_0 : i32, i32
  }
  func.func @transform_4(%arg0: i32) -> (i32, i32, i32) {
    %c0_i32 = arith.constant 0 : i32
    %c0_i32_0 = arith.constant 0 : i32
    %c0_i32_1 = arith.constant 0 : i32
    return %arg0, %c0_i32, %c0_i32_0 : i32, i32, i32
  }
}

module attributes {stable_mosaic.version = 11 : i64} {
  func.func @_deconv_kernel(%arg0: i32, %arg1: memref<1x13x208xbf16, #tpu.memory_space<vmem>>, %arg2: memref<6x208x240xbf16, #tpu.memory_space<vmem>>, %arg3: memref<6x30x13xf32, #tpu.memory_space<vmem>>, %arg4: memref<1x240xf32, #tpu.memory_space<vmem>>, %arg5: memref<1x30x240xbf16, #tpu.memory_space<vmem>>) attributes {dimension_semantics = [#tpu.dimension_semantics<parallel>], iteration_bounds = array<i64: 2>, scalar_prefetch = 0 : i64, scratch_operands = 0 : i64, tpu.core_type = #tpu.core_type<tc>, window_params = [{transform_indices = @transform_0, window_bounds = array<i64: 1, 13, 208>}, {pipeline_mode = #tpu.pipeline_mode<synchronous>, transform_indices = @transform_1, window_bounds = array<i64: 6, 208, 240>}, {pipeline_mode = #tpu.pipeline_mode<synchronous>, transform_indices = @transform_2, window_bounds = array<i64: 6, 30, 13>}, {pipeline_mode = #tpu.pipeline_mode<synchronous>, transform_indices = @transform_3, window_bounds = array<i64: 1, 240>}, {transform_indices = @transform_4, window_bounds = array<i64: 1, 30, 240>}]} {
    %c0 = arith.constant 0 : index
    %c0_0 = arith.constant 0 : index
    %0 = vector.load %arg4[%c0, %c0_0] : memref<1x240xf32, #tpu.memory_space<vmem>>, vector<1x240xf32>
    %c0_1 = arith.constant 0 : index
    %c0_2 = arith.constant 0 : index
    %c0_3 = arith.constant 0 : index
    %1 = vector.load %arg1[%c0_1, %c0_2, %c0_3] : memref<1x13x208xbf16, #tpu.memory_space<vmem>>, vector<1x13x208xbf16>
    %2 = vector.shape_cast %1 : vector<1x13x208xbf16> to vector<13x208xbf16>
    %c0_4 = arith.constant 0 : index
    %c0_5 = arith.constant 0 : index
    %c0_6 = arith.constant 0 : index
    %3 = vector.load %arg2[%c0_4, %c0_5, %c0_6] : memref<6x208x240xbf16, #tpu.memory_space<vmem>>, vector<1x208x240xbf16>
    %4 = vector.shape_cast %3 : vector<1x208x240xbf16> to vector<208x240xbf16>
    %cst = arith.constant dense<0.000000e+00> : vector<13x240xf32>
    %5 = tpu.matmul %2, %4, %cst {dimension_numbers = #tpu.dot_dimension_numbers<[1], [0], [0], [1], [0, 0, 1, 1], [], []>} : vector<13x208xbf16>, vector<208x240xbf16>, vector<13x240xf32> -> vector<13x240xf32>
    %c0_7 = arith.constant 0 : index
    %c0_8 = arith.constant 0 : index
    %c0_9 = arith.constant 0 : index
    %6 = vector.load %arg3[%c0_7, %c0_8, %c0_9] : memref<6x30x13xf32, #tpu.memory_space<vmem>>, vector<1x30x13xf32>
    %7 = vector.shape_cast %6 : vector<1x30x13xf32> to vector<30x13xf32>
    %cst_10 = arith.constant dense<0.000000e+00> : vector<30x240xf32>
    %8 = tpu.matmul %7, %5, %cst_10 {dimension_numbers = #tpu.dot_dimension_numbers<[1], [0], [0], [1], [0, 0, 1, 1], [], []>} : vector<30x13xf32>, vector<13x240xf32>, vector<30x240xf32> -> vector<30x240xf32>
    %c1 = arith.constant 1 : index
    %c0_11 = arith.constant 0 : index
    %c0_12 = arith.constant 0 : index
    %9 = vector.load %arg2[%c1, %c0_11, %c0_12] : memref<6x208x240xbf16, #tpu.memory_space<vmem>>, vector<1x208x240xbf16>
    %10 = vector.shape_cast %9 : vector<1x208x240xbf16> to vector<208x240xbf16>
    %cst_13 = arith.constant dense<0.000000e+00> : vector<13x240xf32>
    %11 = tpu.matmul %2, %10, %cst_13 {dimension_numbers = #tpu.dot_dimension_numbers<[1], [0], [0], [1], [0, 0, 1, 1], [], []>} : vector<13x208xbf16>, vector<208x240xbf16>, vector<13x240xf32> -> vector<13x240xf32>
    %c1_14 = arith.constant 1 : index
    %c0_15 = arith.constant 0 : index
    %c0_16 = arith.constant 0 : index
    %12 = vector.load %arg3[%c1_14, %c0_15, %c0_16] : memref<6x30x13xf32, #tpu.memory_space<vmem>>, vector<1x30x13xf32>
    %13 = vector.shape_cast %12 : vector<1x30x13xf32> to vector<30x13xf32>
    %cst_17 = arith.constant dense<0.000000e+00> : vector<30x240xf32>
    %14 = tpu.matmul %13, %11, %cst_17 {dimension_numbers = #tpu.dot_dimension_numbers<[1], [0], [0], [1], [0, 0, 1, 1], [], []>} : vector<30x13xf32>, vector<13x240xf32>, vector<30x240xf32> -> vector<30x240xf32>
    %15 = arith.addf %8, %14 : vector<30x240xf32>
    %c2 = arith.constant 2 : index
    %c0_18 = arith.constant 0 : index
    %c0_19 = arith.constant 0 : index
    %16 = vector.load %arg2[%c2, %c0_18, %c0_19] : memref<6x208x240xbf16, #tpu.memory_space<vmem>>, vector<1x208x240xbf16>
    %17 = vector.shape_cast %16 : vector<1x208x240xbf16> to vector<208x240xbf16>
    %cst_20 = arith.constant dense<0.000000e+00> : vector<13x240xf32>
    %18 = tpu.matmul %2, %17, %cst_20 {dimension_numbers = #tpu.dot_dimension_numbers<[1], [0], [0], [1], [0, 0, 1, 1], [], []>} : vector<13x208xbf16>, vector<208x240xbf16>, vector<13x240xf32> -> vector<13x240xf32>
    %c2_21 = arith.constant 2 : index
    %c0_22 = arith.constant 0 : index
    %c0_23 = arith.constant 0 : index
    %19 = vector.load %arg3[%c2_21, %c0_22, %c0_23] : memref<6x30x13xf32, #tpu.memory_space<vmem>>, vector<1x30x13xf32>
    %20 = vector.shape_cast %19 : vector<1x30x13xf32> to vector<30x13xf32>
    %cst_24 = arith.constant dense<0.000000e+00> : vector<30x240xf32>
    %21 = tpu.matmul %20, %18, %cst_24 {dimension_numbers = #tpu.dot_dimension_numbers<[1], [0], [0], [1], [0, 0, 1, 1], [], []>} : vector<30x13xf32>, vector<13x240xf32>, vector<30x240xf32> -> vector<30x240xf32>
    %22 = arith.addf %15, %21 : vector<30x240xf32>
    %c3 = arith.constant 3 : index
    %c0_25 = arith.constant 0 : index
    %c0_26 = arith.constant 0 : index
    %23 = vector.load %arg2[%c3, %c0_25, %c0_26] : memref<6x208x240xbf16, #tpu.memory_space<vmem>>, vector<1x208x240xbf16>
    %24 = vector.shape_cast %23 : vector<1x208x240xbf16> to vector<208x240xbf16>
    %cst_27 = arith.constant dense<0.000000e+00> : vector<13x240xf32>
    %25 = tpu.matmul %2, %24, %cst_27 {dimension_numbers = #tpu.dot_dimension_numbers<[1], [0], [0], [1], [0, 0, 1, 1], [], []>} : vector<13x208xbf16>, vector<208x240xbf16>, vector<13x240xf32> -> vector<13x240xf32>
    %c3_28 = arith.constant 3 : index
    %c0_29 = arith.constant 0 : index
    %c0_30 = arith.constant 0 : index
    %26 = vector.load %arg3[%c3_28, %c0_29, %c0_30] : memref<6x30x13xf32, #tpu.memory_space<vmem>>, vector<1x30x13xf32>
    %27 = vector.shape_cast %26 : vector<1x30x13xf32> to vector<30x13xf32>
    %cst_31 = arith.constant dense<0.000000e+00> : vector<30x240xf32>
    %28 = tpu.matmul %27, %25, %cst_31 {dimension_numbers = #tpu.dot_dimension_numbers<[1], [0], [0], [1], [0, 0, 1, 1], [], []>} : vector<30x13xf32>, vector<13x240xf32>, vector<30x240xf32> -> vector<30x240xf32>
    %29 = arith.addf %22, %28 : vector<30x240xf32>
    %c4 = arith.constant 4 : index
    %c0_32 = arith.constant 0 : index
    %c0_33 = arith.constant 0 : index
    %30 = vector.load %arg2[%c4, %c0_32, %c0_33] : memref<6x208x240xbf16, #tpu.memory_space<vmem>>, vector<1x208x240xbf16>
    %31 = vector.shape_cast %30 : vector<1x208x240xbf16> to vector<208x240xbf16>
    %cst_34 = arith.constant dense<0.000000e+00> : vector<13x240xf32>
    %32 = tpu.matmul %2, %31, %cst_34 {dimension_numbers = #tpu.dot_dimension_numbers<[1], [0], [0], [1], [0, 0, 1, 1], [], []>} : vector<13x208xbf16>, vector<208x240xbf16>, vector<13x240xf32> -> vector<13x240xf32>
    %c4_35 = arith.constant 4 : index
    %c0_36 = arith.constant 0 : index
    %c0_37 = arith.constant 0 : index
    %33 = vector.load %arg3[%c4_35, %c0_36, %c0_37] : memref<6x30x13xf32, #tpu.memory_space<vmem>>, vector<1x30x13xf32>
    %34 = vector.shape_cast %33 : vector<1x30x13xf32> to vector<30x13xf32>
    %cst_38 = arith.constant dense<0.000000e+00> : vector<30x240xf32>
    %35 = tpu.matmul %34, %32, %cst_38 {dimension_numbers = #tpu.dot_dimension_numbers<[1], [0], [0], [1], [0, 0, 1, 1], [], []>} : vector<30x13xf32>, vector<13x240xf32>, vector<30x240xf32> -> vector<30x240xf32>
    %36 = arith.addf %29, %35 : vector<30x240xf32>
    %c5 = arith.constant 5 : index
    %c0_39 = arith.constant 0 : index
    %c0_40 = arith.constant 0 : index
    %37 = vector.load %arg2[%c5, %c0_39, %c0_40] : memref<6x208x240xbf16, #tpu.memory_space<vmem>>, vector<1x208x240xbf16>
    %38 = vector.shape_cast %37 : vector<1x208x240xbf16> to vector<208x240xbf16>
    %cst_41 = arith.constant dense<0.000000e+00> : vector<13x240xf32>
    %39 = tpu.matmul %2, %38, %cst_41 {dimension_numbers = #tpu.dot_dimension_numbers<[1], [0], [0], [1], [0, 0, 1, 1], [], []>} : vector<13x208xbf16>, vector<208x240xbf16>, vector<13x240xf32> -> vector<13x240xf32>
    %c5_42 = arith.constant 5 : index
    %c0_43 = arith.constant 0 : index
    %c0_44 = arith.constant 0 : index
    %40 = vector.load %arg3[%c5_42, %c0_43, %c0_44] : memref<6x30x13xf32, #tpu.memory_space<vmem>>, vector<1x30x13xf32>
    %41 = vector.shape_cast %40 : vector<1x30x13xf32> to vector<30x13xf32>
    %cst_45 = arith.constant dense<0.000000e+00> : vector<30x240xf32>
    %42 = tpu.matmul %41, %39, %cst_45 {dimension_numbers = #tpu.dot_dimension_numbers<[1], [0], [0], [1], [0, 0, 1, 1], [], []>} : vector<30x13xf32>, vector<13x240xf32>, vector<30x240xf32> -> vector<30x240xf32>
    %43 = arith.addf %36, %42 : vector<30x240xf32>
    %44 = vector.broadcast %0 : vector<1x240xf32> to vector<30x240xf32>
    %45 = arith.addf %43, %44 : vector<30x240xf32>
    %cst_46 = arith.constant 0.000000e+00 : f32
    %46 = vector.broadcast %cst_46 : f32 to vector<30x240xf32>
    %47 = arith.maximumf %45, %46 : vector<30x240xf32>
    %48 = arith.truncf %47 : vector<30x240xf32> to vector<30x240xbf16>
    %c0_47 = arith.constant 0 : index
    %c0_48 = arith.constant 0 : index
    %c0_49 = arith.constant 0 : index
    %49 = vector.load %arg5[%c0_47, %c0_48, %c0_49] : memref<1x30x240xbf16, #tpu.memory_space<vmem>>, vector<1x30x240xbf16>
    %50 = vector.shape_cast %49 : vector<1x30x240xbf16> to vector<30x240xbf16>
    %51 = vector.shape_cast %48 : vector<30x240xbf16> to vector<1x30x240xbf16>
    tpu.vector_store %arg5[%c0_47, %c0_48, %c0_49], %51 {strides = array<i32>} : memref<1x30x240xbf16, #tpu.memory_space<vmem>>, vector<1x30x240xbf16>,
    return
  }
  func.func @transform_0(%arg0: i32) -> (i32, i32, i32) {
    %c0_i32 = arith.constant 0 : i32
    %c0_i32_0 = arith.constant 0 : i32
    %c0_i32_1 = arith.constant 0 : i32
    return %arg0, %c0_i32, %c0_i32_0 : i32, i32, i32
  }
  func.func @transform_1(%arg0: i32) -> (i32, i32, i32) {
    %c0_i32 = arith.constant 0 : i32
    %c0_i32_0 = arith.constant 0 : i32
    %c0_i32_1 = arith.constant 0 : i32
    %c0_i32_2 = arith.constant 0 : i32
    return %c0_i32, %c0_i32_0, %c0_i32_1 : i32, i32, i32
  }
  func.func @transform_2(%arg0: i32) -> (i32, i32, i32) {
    %c0_i32 = arith.constant 0 : i32
    %c0_i32_0 = arith.constant 0 : i32
    %c0_i32_1 = arith.constant 0 : i32
    %c0_i32_2 = arith.constant 0 : i32
    return %c0_i32, %c0_i32_0, %c0_i32_1 : i32, i32, i32
  }
  func.func @transform_3(%arg0: i32) -> (i32, i32) {
    %c0_i32 = arith.constant 0 : i32
    %c0_i32_0 = arith.constant 0 : i32
    %c0_i32_1 = arith.constant 0 : i32
    return %c0_i32, %c0_i32_0 : i32, i32
  }
  func.func @transform_4(%arg0: i32) -> (i32, i32, i32) {
    %c0_i32 = arith.constant 0 : i32
    %c0_i32_0 = arith.constant 0 : i32
    %c0_i32_1 = arith.constant 0 : i32
    return %arg0, %c0_i32, %c0_i32_0 : i32, i32, i32
  }
}

module attributes {stable_mosaic.version = 11 : i64} {
  func.func @_deconv_kernel(%arg0: i32, %arg1: memref<1x30x240xbf16, #tpu.memory_space<vmem>>, %arg2: memref<6x240x192xbf16, #tpu.memory_space<vmem>>, %arg3: memref<6x64x30xf32, #tpu.memory_space<vmem>>, %arg4: memref<1x192xf32, #tpu.memory_space<vmem>>, %arg5: memref<1x3x64x64xf32, #tpu.memory_space<vmem>>) attributes {dimension_semantics = [#tpu.dimension_semantics<parallel>], iteration_bounds = array<i64: 2>, scalar_prefetch = 0 : i64, scratch_operands = 0 : i64, tpu.core_type = #tpu.core_type<tc>, window_params = [{transform_indices = @transform_0, window_bounds = array<i64: 1, 30, 240>}, {pipeline_mode = #tpu.pipeline_mode<synchronous>, transform_indices = @transform_1, window_bounds = array<i64: 6, 240, 192>}, {pipeline_mode = #tpu.pipeline_mode<synchronous>, transform_indices = @transform_2, window_bounds = array<i64: 6, 64, 30>}, {pipeline_mode = #tpu.pipeline_mode<synchronous>, transform_indices = @transform_3, window_bounds = array<i64: 1, 192>}, {transform_indices = @transform_4, window_bounds = array<i64: 1, 3, 64, 64>}]} {
    %c0 = arith.constant 0 : index
    %c0_0 = arith.constant 0 : index
    %0 = vector.load %arg4[%c0, %c0_0] : memref<1x192xf32, #tpu.memory_space<vmem>>, vector<1x192xf32>
    %c0_1 = arith.constant 0 : index
    %c0_2 = arith.constant 0 : index
    %c0_3 = arith.constant 0 : index
    %1 = vector.load %arg1[%c0_1, %c0_2, %c0_3] : memref<1x30x240xbf16, #tpu.memory_space<vmem>>, vector<1x30x240xbf16>
    %2 = vector.shape_cast %1 : vector<1x30x240xbf16> to vector<30x240xbf16>
    %c0_4 = arith.constant 0 : index
    %c0_5 = arith.constant 0 : index
    %c0_6 = arith.constant 0 : index
    %3 = vector.load %arg2[%c0_4, %c0_5, %c0_6] : memref<6x240x192xbf16, #tpu.memory_space<vmem>>, vector<1x240x192xbf16>
    %4 = vector.shape_cast %3 : vector<1x240x192xbf16> to vector<240x192xbf16>
    %cst = arith.constant dense<0.000000e+00> : vector<30x192xf32>
    %5 = tpu.matmul %2, %4, %cst {dimension_numbers = #tpu.dot_dimension_numbers<[1], [0], [0], [1], [0, 0, 1, 1], [], []>} : vector<30x240xbf16>, vector<240x192xbf16>, vector<30x192xf32> -> vector<30x192xf32>
    %c0_7 = arith.constant 0 : index
    %c0_8 = arith.constant 0 : index
    %c0_9 = arith.constant 0 : index
    %6 = vector.load %arg3[%c0_7, %c0_8, %c0_9] : memref<6x64x30xf32, #tpu.memory_space<vmem>>, vector<1x64x30xf32>
    %7 = vector.shape_cast %6 : vector<1x64x30xf32> to vector<64x30xf32>
    %cst_10 = arith.constant dense<0.000000e+00> : vector<64x192xf32>
    %8 = tpu.matmul %7, %5, %cst_10 {dimension_numbers = #tpu.dot_dimension_numbers<[1], [0], [0], [1], [0, 0, 1, 1], [], []>} : vector<64x30xf32>, vector<30x192xf32>, vector<64x192xf32> -> vector<64x192xf32>
    %c1 = arith.constant 1 : index
    %c0_11 = arith.constant 0 : index
    %c0_12 = arith.constant 0 : index
    %9 = vector.load %arg2[%c1, %c0_11, %c0_12] : memref<6x240x192xbf16, #tpu.memory_space<vmem>>, vector<1x240x192xbf16>
    %10 = vector.shape_cast %9 : vector<1x240x192xbf16> to vector<240x192xbf16>
    %cst_13 = arith.constant dense<0.000000e+00> : vector<30x192xf32>
    %11 = tpu.matmul %2, %10, %cst_13 {dimension_numbers = #tpu.dot_dimension_numbers<[1], [0], [0], [1], [0, 0, 1, 1], [], []>} : vector<30x240xbf16>, vector<240x192xbf16>, vector<30x192xf32> -> vector<30x192xf32>
    %c1_14 = arith.constant 1 : index
    %c0_15 = arith.constant 0 : index
    %c0_16 = arith.constant 0 : index
    %12 = vector.load %arg3[%c1_14, %c0_15, %c0_16] : memref<6x64x30xf32, #tpu.memory_space<vmem>>, vector<1x64x30xf32>
    %13 = vector.shape_cast %12 : vector<1x64x30xf32> to vector<64x30xf32>
    %cst_17 = arith.constant dense<0.000000e+00> : vector<64x192xf32>
    %14 = tpu.matmul %13, %11, %cst_17 {dimension_numbers = #tpu.dot_dimension_numbers<[1], [0], [0], [1], [0, 0, 1, 1], [], []>} : vector<64x30xf32>, vector<30x192xf32>, vector<64x192xf32> -> vector<64x192xf32>
    %15 = arith.addf %8, %14 : vector<64x192xf32>
    %c2 = arith.constant 2 : index
    %c0_18 = arith.constant 0 : index
    %c0_19 = arith.constant 0 : index
    %16 = vector.load %arg2[%c2, %c0_18, %c0_19] : memref<6x240x192xbf16, #tpu.memory_space<vmem>>, vector<1x240x192xbf16>
    %17 = vector.shape_cast %16 : vector<1x240x192xbf16> to vector<240x192xbf16>
    %cst_20 = arith.constant dense<0.000000e+00> : vector<30x192xf32>
    %18 = tpu.matmul %2, %17, %cst_20 {dimension_numbers = #tpu.dot_dimension_numbers<[1], [0], [0], [1], [0, 0, 1, 1], [], []>} : vector<30x240xbf16>, vector<240x192xbf16>, vector<30x192xf32> -> vector<30x192xf32>
    %c2_21 = arith.constant 2 : index
    %c0_22 = arith.constant 0 : index
    %c0_23 = arith.constant 0 : index
    %19 = vector.load %arg3[%c2_21, %c0_22, %c0_23] : memref<6x64x30xf32, #tpu.memory_space<vmem>>, vector<1x64x30xf32>
    %20 = vector.shape_cast %19 : vector<1x64x30xf32> to vector<64x30xf32>
    %cst_24 = arith.constant dense<0.000000e+00> : vector<64x192xf32>
    %21 = tpu.matmul %20, %18, %cst_24 {dimension_numbers = #tpu.dot_dimension_numbers<[1], [0], [0], [1], [0, 0, 1, 1], [], []>} : vector<64x30xf32>, vector<30x192xf32>, vector<64x192xf32> -> vector<64x192xf32>
    %22 = arith.addf %15, %21 : vector<64x192xf32>
    %c3 = arith.constant 3 : index
    %c0_25 = arith.constant 0 : index
    %c0_26 = arith.constant 0 : index
    %23 = vector.load %arg2[%c3, %c0_25, %c0_26] : memref<6x240x192xbf16, #tpu.memory_space<vmem>>, vector<1x240x192xbf16>
    %24 = vector.shape_cast %23 : vector<1x240x192xbf16> to vector<240x192xbf16>
    %cst_27 = arith.constant dense<0.000000e+00> : vector<30x192xf32>
    %25 = tpu.matmul %2, %24, %cst_27 {dimension_numbers = #tpu.dot_dimension_numbers<[1], [0], [0], [1], [0, 0, 1, 1], [], []>} : vector<30x240xbf16>, vector<240x192xbf16>, vector<30x192xf32> -> vector<30x192xf32>
    %c3_28 = arith.constant 3 : index
    %c0_29 = arith.constant 0 : index
    %c0_30 = arith.constant 0 : index
    %26 = vector.load %arg3[%c3_28, %c0_29, %c0_30] : memref<6x64x30xf32, #tpu.memory_space<vmem>>, vector<1x64x30xf32>
    %27 = vector.shape_cast %26 : vector<1x64x30xf32> to vector<64x30xf32>
    %cst_31 = arith.constant dense<0.000000e+00> : vector<64x192xf32>
    %28 = tpu.matmul %27, %25, %cst_31 {dimension_numbers = #tpu.dot_dimension_numbers<[1], [0], [0], [1], [0, 0, 1, 1], [], []>} : vector<64x30xf32>, vector<30x192xf32>, vector<64x192xf32> -> vector<64x192xf32>
    %29 = arith.addf %22, %28 : vector<64x192xf32>
    %c4 = arith.constant 4 : index
    %c0_32 = arith.constant 0 : index
    %c0_33 = arith.constant 0 : index
    %30 = vector.load %arg2[%c4, %c0_32, %c0_33] : memref<6x240x192xbf16, #tpu.memory_space<vmem>>, vector<1x240x192xbf16>
    %31 = vector.shape_cast %30 : vector<1x240x192xbf16> to vector<240x192xbf16>
    %cst_34 = arith.constant dense<0.000000e+00> : vector<30x192xf32>
    %32 = tpu.matmul %2, %31, %cst_34 {dimension_numbers = #tpu.dot_dimension_numbers<[1], [0], [0], [1], [0, 0, 1, 1], [], []>} : vector<30x240xbf16>, vector<240x192xbf16>, vector<30x192xf32> -> vector<30x192xf32>
    %c4_35 = arith.constant 4 : index
    %c0_36 = arith.constant 0 : index
    %c0_37 = arith.constant 0 : index
    %33 = vector.load %arg3[%c4_35, %c0_36, %c0_37] : memref<6x64x30xf32, #tpu.memory_space<vmem>>, vector<1x64x30xf32>
    %34 = vector.shape_cast %33 : vector<1x64x30xf32> to vector<64x30xf32>
    %cst_38 = arith.constant dense<0.000000e+00> : vector<64x192xf32>
    %35 = tpu.matmul %34, %32, %cst_38 {dimension_numbers = #tpu.dot_dimension_numbers<[1], [0], [0], [1], [0, 0, 1, 1], [], []>} : vector<64x30xf32>, vector<30x192xf32>, vector<64x192xf32> -> vector<64x192xf32>
    %36 = arith.addf %29, %35 : vector<64x192xf32>
    %c5 = arith.constant 5 : index
    %c0_39 = arith.constant 0 : index
    %c0_40 = arith.constant 0 : index
    %37 = vector.load %arg2[%c5, %c0_39, %c0_40] : memref<6x240x192xbf16, #tpu.memory_space<vmem>>, vector<1x240x192xbf16>
    %38 = vector.shape_cast %37 : vector<1x240x192xbf16> to vector<240x192xbf16>
    %cst_41 = arith.constant dense<0.000000e+00> : vector<30x192xf32>
    %39 = tpu.matmul %2, %38, %cst_41 {dimension_numbers = #tpu.dot_dimension_numbers<[1], [0], [0], [1], [0, 0, 1, 1], [], []>} : vector<30x240xbf16>, vector<240x192xbf16>, vector<30x192xf32> -> vector<30x192xf32>
    %c5_42 = arith.constant 5 : index
    %c0_43 = arith.constant 0 : index
    %c0_44 = arith.constant 0 : index
    %40 = vector.load %arg3[%c5_42, %c0_43, %c0_44] : memref<6x64x30xf32, #tpu.memory_space<vmem>>, vector<1x64x30xf32>
    %41 = vector.shape_cast %40 : vector<1x64x30xf32> to vector<64x30xf32>
    %cst_45 = arith.constant dense<0.000000e+00> : vector<64x192xf32>
    %42 = tpu.matmul %41, %39, %cst_45 {dimension_numbers = #tpu.dot_dimension_numbers<[1], [0], [0], [1], [0, 0, 1, 1], [], []>} : vector<64x30xf32>, vector<30x192xf32>, vector<64x192xf32> -> vector<64x192xf32>
    %43 = arith.addf %36, %42 : vector<64x192xf32>
    %44 = vector.broadcast %0 : vector<1x192xf32> to vector<64x192xf32>
    %45 = arith.addf %43, %44 : vector<64x192xf32>
    %46 = vector.extract_strided_slice %45 {offsets = [0, 0], sizes = [64, 64], strides = [1, 1]} : vector<64x192xf32> to vector<64x64xf32>
    %c0_46 = arith.constant 0 : index
    %c0_47 = arith.constant 0 : index
    %c0_48 = arith.constant 0 : index
    %c0_49 = arith.constant 0 : index
    %47 = vector.load %arg5[%c0_46, %c0_47, %c0_48, %c0_49] : memref<1x3x64x64xf32, #tpu.memory_space<vmem>>, vector<1x1x64x64xf32>
    %48 = vector.shape_cast %47 : vector<1x1x64x64xf32> to vector<64x64xf32>
    %49 = vector.shape_cast %46 : vector<64x64xf32> to vector<1x1x64x64xf32>
    tpu.vector_store %arg5[%c0_46, %c0_47, %c0_48, %c0_49], %49 {strides = array<i32>} : memref<1x3x64x64xf32, #tpu.memory_space<vmem>>, vector<1x1x64x64xf32>,
    %50 = vector.extract_strided_slice %45 {offsets = [0, 64], sizes = [64, 64], strides = [1, 1]} : vector<64x192xf32> to vector<64x64xf32>
    %c0_50 = arith.constant 0 : index
    %c1_51 = arith.constant 1 : index
    %c0_52 = arith.constant 0 : index
    %c0_53 = arith.constant 0 : index
    %51 = vector.load %arg5[%c0_50, %c1_51, %c0_52, %c0_53] : memref<1x3x64x64xf32, #tpu.memory_space<vmem>>, vector<1x1x64x64xf32>
    %52 = vector.shape_cast %51 : vector<1x1x64x64xf32> to vector<64x64xf32>
    %53 = vector.shape_cast %50 : vector<64x64xf32> to vector<1x1x64x64xf32>
    tpu.vector_store %arg5[%c0_50, %c1_51, %c0_52, %c0_53], %53 {strides = array<i32>} : memref<1x3x64x64xf32, #tpu.memory_space<vmem>>, vector<1x1x64x64xf32>,
    %54 = vector.extract_strided_slice %45 {offsets = [0, 128], sizes = [64, 64], strides = [1, 1]} : vector<64x192xf32> to vector<64x64xf32>
    %c0_54 = arith.constant 0 : index
    %c2_55 = arith.constant 2 : index
    %c0_56 = arith.constant 0 : index
    %c0_57 = arith.constant 0 : index
    %55 = vector.load %arg5[%c0_54, %c2_55, %c0_56, %c0_57] : memref<1x3x64x64xf32, #tpu.memory_space<vmem>>, vector<1x1x64x64xf32>
    %56 = vector.shape_cast %55 : vector<1x1x64x64xf32> to vector<64x64xf32>
    %57 = vector.shape_cast %54 : vector<64x64xf32> to vector<1x1x64x64xf32>
    tpu.vector_store %arg5[%c0_54, %c2_55, %c0_56, %c0_57], %57 {strides = array<i32>} : memref<1x3x64x64xf32, #tpu.memory_space<vmem>>, vector<1x1x64x64xf32>,
    return
  }
  func.func @transform_0(%arg0: i32) -> (i32, i32, i32) {
    %c0_i32 = arith.constant 0 : i32
    %c0_i32_0 = arith.constant 0 : i32
    %c0_i32_1 = arith.constant 0 : i32
    return %arg0, %c0_i32, %c0_i32_0 : i32, i32, i32
  }
  func.func @transform_1(%arg0: i32) -> (i32, i32, i32) {
    %c0_i32 = arith.constant 0 : i32
    %c0_i32_0 = arith.constant 0 : i32
    %c0_i32_1 = arith.constant 0 : i32
    %c0_i32_2 = arith.constant 0 : i32
    return %c0_i32, %c0_i32_0, %c0_i32_1 : i32, i32, i32
  }
  func.func @transform_2(%arg0: i32) -> (i32, i32, i32) {
    %c0_i32 = arith.constant 0 : i32
    %c0_i32_0 = arith.constant 0 : i32
    %c0_i32_1 = arith.constant 0 : i32
    %c0_i32_2 = arith.constant 0 : i32
    return %c0_i32, %c0_i32_0, %c0_i32_1 : i32, i32, i32
  }
  func.func @transform_3(%arg0: i32) -> (i32, i32) {
    %c0_i32 = arith.constant 0 : i32
    %c0_i32_0 = arith.constant 0 : i32
    %c0_i32_1 = arith.constant 0 : i32
    return %c0_i32, %c0_i32_0 : i32, i32
  }
  func.func @transform_4(%arg0: i32) -> (i32, i32, i32, i32) {
    %c0_i32 = arith.constant 0 : i32
    %c0_i32_0 = arith.constant 0 : i32
    %c0_i32_1 = arith.constant 0 : i32
    %c0_i32_2 = arith.constant 0 : i32
    return %arg0, %c0_i32, %c0_i32_0, %c0_i32_1 : i32, i32, i32, i32
  }
}

</mosaic_0001>

<bundles_post_ra>
// kernel: conv_decoder_forward.4
= control target key start
LH: loop header
LB: loop body
LE: loop exit
PB: predicated region body
PF: predicated region fallthrough
CT: control target
= control target key end

     0   :  { %8 = vsyncpa [#allocation3], 0  ;;  %s594_s0 = inlined_call_operand.vmem [shape: bf16[2,32], index: 0, kind: input, shape index: {}]   ;;  %s595_s1 = inlined_call_operand.hbm [shape: bf16[32,800], index: 1, kind: input, shape index: {}]   ;;  %s596_s2 = inlined_call_operand.hbm [shape: f32[1,800], index: 2, kind: input, shape index: {}]   ;;  %s597_s3 = inlined_call_operand.vmem [shape: bf16[2,800], index: 3, kind: output, shape index: {}]  }
   0x1   :  { %9 = vsyncpa [#allocation5], 0  ;;  %s532_s12 = smov [#allocation2]   ;;  %s484_s16 = scalar_lea.hbm %s595_s1, 1792 }
   0x2   :  { %s17_s13 = sshll.u32 %s532_s12, 4  ;;  %p485_p0 = scmp.ne.s32.totalorder %s595_s1, %s484_s16  ;;  %s18_s13 = int_to_ptr.vmem [resolvable:$true] %s17_s13 }
   0x3   :  { %p488_p1 = scmp.lt.u32.totalorder %s484_s16, %s595_s1 }
   0x5   :  { %p490_p2 = pnand %p488_p1, %p485_p0 }
   0x7   :  { %493 = shalt.err (!%p490_p2)
}
   0x8   :  { %s494_s21 = scalar_lea.vmem %s18_s13, 1792  ;;  %p499_p4 = scmp.lt.s32.totalorder %s18_s13, %s18_s13 }
   0x9   :  { %p495_p3 = scmp.ne.s32.totalorder %s18_s13, %s494_s21  ;;  %p500_p5 = scmp.lt.s32.totalorder %s494_s21, %s494_s21 }
   0xb   :  { %p501_p6 = por %p500_p5, %p499_p4 }
   0xd   :  { %p502_p7 = pnand %p501_p6, %p495_p3 }
   0xf   :  { %505 = shalt.err (!%p502_p7)
}
  0x10   :  { %s533_s22 = smov 448   ;;  %s534_s23 = smov 28  }
  0x11   :  { %23 = dma.hbm_to_vmem [thread:$0]  %s595_s1, 1792, %s18_s13, [#allocation3], %s533_s22, %s533_s22, %s534_s23  }
  0x12   :  { %s535_s26 = smov [#allocation4]   ;;  %s506_s30 = scalar_lea.hbm %s596_s2, 112 }
  0x13   :  { %s30_s27 = sshll.u32 %s535_s26, 4  ;;  %p507_p8 = scmp.ne.s32.totalorder %s596_s2, %s506_s30  ;;  %s31_s27 = int_to_ptr.vmem [resolvable:$true] %s30_s27 }
  0x14   :  { %p510_p9 = scmp.lt.u32.totalorder %s506_s30, %s596_s2 }
  0x16   :  { %p512_p10 = pnand %p510_p9, %p507_p8 }
  0x18   :  { %515 = shalt.err (!%p512_p10)
}
  0x19   :  { %s516_s8 = scalar_lea.vmem %s31_s27, 112  ;;  %s520_s1 = scalar_lea.vmem %s31_s27, 128 }
  0x1a   :  { %p517_p11 = scmp.ne.s32.totalorder %s31_s27, %s516_s8  ;;  %p521_p12 = scmp.lt.s32.totalorder %s31_s27, %s31_s27 }
  0x1b   :  { %p522_p13 = scmp.lt.s32.totalorder %s520_s1, %s516_s8 }
  0x1d   :  { %p523_p0 = por %p522_p13, %p521_p12 }
  0x1f   :  { %p524_p1 = pnand %p523_p0, %p517_p11 }
  0x21   :  { %527 = shalt.err (!%p524_p1)
}
  0x22   :  { %33 = dma.hbm_to_vmem [thread:$0]  %s596_s2, 112, %s31_s27, [#allocation5]  }
  0x23   :  { %528 = dma.done.wait [#allocation3], 1792  }
  0x24   :  { %529 = vsyncadd [#allocation3], 4294965504 }
  0x25   :  { %530 = dma.done.wait [#allocation5], 112  }
  0x26   :  { %531 = vsyncadd [#allocation5], 4294967184  ;;  %v536_v0 = vmov 0   ;;  %v464_v1 = vld [vmem:[#allocation2 + $0x4] ss:$28 sps:$4 sm:$0xff]   ;;  %vm167_vm0 = vcmask 261120   ;;  %v60_v17 = vlaneseq }
  0x27   :  { %203 = vmatprep.mubr.bf16.mxu0 %v536_v0  ;;  %244 = vmatprep.mubr.bf16.mxu1 %v536_v0  ;;  %v466_v2 = vld [vmem:[#allocation2 + $0xc] ss:$28 sps:$4 sm:$0xff]   ;;  %v468_v3 = vld [vmem:[#allocation2] ss:$28 sps:$4 sm:$0xff]   ;;  %v474_v7 = vld [vmem:[#allocation2 + $0x38] ss:$28 sps:$4 sm:$0xff]  }
  0x28   :  { %171 = vmatprep.subr.bf16.mxu0 %v464_v1  ;;  %v469_v4 = vld [vmem:[#allocation2 + $0x8] ss:$28 sps:$4 sm:$0xff]   ;;  %212 = vmatprep.subr.bf16.mxu1 %v466_v2  ;;  %v470_v5 = vld [vmem:[#allocation2 + $0x3c] ss:$28 sps:$4 sm:$0xff]   ;;  %v41_v9 = vld [vmem:[%s594_s0] sm:$0x1] }
  0x29   :  { %172 = vmatpush1.bf16.msra.mxu0 %v468_v3  ;;  %213 = vmatpush1.bf16.msra.mxu1 %v469_v4  ;;  %v472_v6 = vld [vmem:[#allocation2 + $0x44] ss:$28 sps:$4 sm:$0xff]   ;;  %v478_v10 = vld [vmem:[#allocation2 + $0x14] ss:$28 sps:$4 sm:$0xff]   ;;  %v537_v13 = vmov 0.0   ;;  %vm538_vm1 = vmmov 0  }
  0x2a   :  { %173 = vmatprep.subr.bf16.mxu0 %v470_v5  ;;  %v475_v8 = vld [vmem:[#allocation2 + $0x40] ss:$28 sps:$4 sm:$0xff]   ;;  %214 = vmatprep.subr.bf16.mxu1 %v472_v6  ;;  %v476_v11 = vld [vmem:[#allocation2 + $0x10] ss:$28 sps:$4 sm:$0xff]   ;;  %v479_v12 = vld [vmem:[#allocation2 + $0x18] ss:$28 sps:$4 sm:$0xff]  }
  0x2b   :  { %v482_v14 = vld [vmem:[#allocation2 + $0x4c] ss:$28 sps:$4 sm:$0xff]   ;;  %v61_v18 = vshrl.u32 %v60_v17, 7  ;;  %v58_v21 = vld [vmem:[#allocation4] sm:$0x7f]  ;;  %vm404_vm2 = vcmask 1040384  }
  0x2c   :  { %v480_v15 = vld [vmem:[#allocation2 + $0x48] ss:$28 sps:$4 sm:$0xff]   ;;  %v483_v16 = vld [vmem:[#allocation2 + $0x50] ss:$28 sps:$4 sm:$0xff]   ;;  %v539_v24 = vmov 1966171168  }
  0x2d   :  { %174 = vmatpush1.bf16.msra.mxu0 %v474_v7  ;;  %215 = vmatpush1.bf16.msra.mxu1 %v475_v8  ;;  %v62_v19 = vsub.s32 0, %v61_v18  ;;  %v70_v20 = vsub.s32 2, %v61_v18  ;;  %v66_v22 = vsub.s32 1, %v61_v18  ;;  %v74_v23 = vsub.s32 3, %v61_v18 }
  0x2e   :  { %253 = vmatprep.subr.bf16.mxu0 %v478_v10  ;;  %448 = vmatprep.subr.bf16.mxu1 %v537_v13  ;;  %v359_v25 = vunpack.c.l.s4 %v539_v24  ;;  %v78_v37 = vsub.s32 4, %v61_v18  ;;  %v86_v38 = vsub.s32 6, %v61_v18  ;;  %v82_v43 = vsub.s32 5, %v61_v18 }
  0x2f   :  { %v63_v26 = vrot.slane %v58_v21, %v62_v19  ;;  %v71_v27 = vrot.slane %v58_v21, %v70_v20  ;;  %v67_v28 = vrot.slane %v58_v21, %v66_v22  ;;  %v75_v29 = vrot.slane %v58_v21, %v74_v23 }
  0x30   :  { %438 = vmatmul.mubr.msk.bf16.vlgmr.msra.gmra.mrb[0].mxu0 %vm167_vm0, %v41_v9  ;;  %439 = vmatmul.mubr.msk.bf16.vlgmr.msra.gmra.mrb[0].mxu1 %vm167_vm0, %v41_v9  ;;  %v360_v32 = vunpack.c.0.s8 %v359_v25  ;;  %vm405_vm3 = vcmask 1041409   ;;  %v79_v51 = vrot.slane %v58_v21, %v78_v37  ;;  %v87_v52 = vrot.slane %v58_v21, %v86_v38 }
  0x31   :  { %254 = vmatpush1.bf16.msra.mxu0 %v476_v11  ;;  %449 = vmatpush3.bf16.msra.mxu1 %v479_v12  ;;  %v83_v55 = vrot.slane %v58_v21, %v82_v43  ;;  %vm406_vm4 = vmor %vm405_vm3, %vm404_vm2  ;;  %vm407_vm5 = vcmask 1042434   ;;  %vm409_vm7 = vcmask 1043459   ;;  %vm411_vm9 = vcmask 1044484  }
  0x32   :  { %255 = vmatprep.subr.bf16.mxu0 %v482_v14  ;;  %450 = vmatprep.subr.bf16.mxu1 %v537_v13  ;;  %v363_v49 = vsub.s32 %v360_v32, %v61_v18  ;;  %vm408_vm6 = vmor %vm407_vm5, %vm406_vm4  ;;  %vm413_vm11 = vcmask 1045509   ;;  %vm415_vm13 = vcmask 260102  }
  0x33   :  { %285 = vmatprep.mubr.bf16.mxu0 %v536_v0  ;;  %452 = vmatprep.mubr.msk.bf16.mxu1 %vm538_vm1, %v537_v13  ;;  %vm410_vm8 = vmor %vm409_vm7, %vm408_vm6 }
  0x34   :  { %vm412_vm10 = vmor %vm411_vm9, %vm410_vm8 }
  0x35   :  { %256 = vmatpush1.bf16.msra.mxu0 %v480_v15  ;;  %451 = vmatpush3.bf16.msra.mxu1 %v483_v16  ;;  %vm414_vm12 = vmor %vm413_vm11, %vm412_vm10 }
  0x36   :  { %vm416_vm14 = vmor %vm415_vm13, %vm414_vm12 }
  0x38   :  { %440 = vmatmul.mubr.msk.bf16.vlgmr.msra.gmra.mrb[4].mxu0 %vm167_vm0, %v41_v9  ;;  %453 = vmatmul.mubr.msk.bf16.vlgmr.msra.gmra.mrb[4].mxu1 %vm167_vm0, %v41_v9 }
 0x103   :  { %v205_v30 = vpop.f32.mrb[0].mxu0  ;;  %v246_v31 = vpop.f32.mrb[0].mxu1 }
 0x104   :  { %v206_v33 = vadd.f32 %v205_v30, %v63_v26  ;;  %v247_v34 = vadd.f32 %v246_v31, %v71_v27  ;;  %v207_v35 = vpop.f32.mrb[1].mxu0  ;;  %v248_v36 = vpop.f32.mrb[1].mxu1 }
 0x105   :  { %v208_v39 = vadd.f32 %v207_v35, %v67_v28  ;;  %v249_v40 = vadd.f32 %v248_v36, %v75_v29  ;;  %v209_v41 = vpop.f32.mrb[2].mxu0  ;;  %v250_v42 = vpop.f32.mrb[2].mxu1 }
 0x106   :  { %v334_v44 = vmax.f32 %v206_v33, 0.0  ;;  %v336_v45 = vmax.f32 %v247_v34, 0.0  ;;  %v210_v46 = vpop.f32.mrb[3].mxu0  ;;  %v251_v47 = vpop.f32.mrb[3].mxu1 }
 0x107   :  { %v335_v48 = vmax.f32 %v208_v39, 0.0  ;;  %v337_v50 = vmax.f32 %v249_v40, 0.0 }
 0x109   :  { %v442_v53 = vpack.c.bf16 %v335_v48, %v334_v44  ;;  %v443_v54 = vpack.c.bf16 %v337_v50, %v336_v45 }
 0x10b   :  { %v364_v56 = vrot.slane %v442_v53, %v363_v49  ;;  %v371_v57 = vrot.slane %v443_v54, %v363_v49  ;;  %v287_v58 = vpop.f32.mrb[4].mxu0  ;;  %v328_v59 = vpop.f32.mrb[4].mxu1 }
 0x10c   :  { %v288_v60 = vadd.f32 %v287_v58, %v79_v51  ;;  %v329_v61 = vadd.f32 %v328_v59, %v87_v52  ;;  %v289_v62 = vpop.f32.mrb[5].mxu0  ;;  %v454_v63 = vpop.f32.mrb[5].mxu1 }
 0x10d   :  { %v386_v0 = vcombine.low %v364_v56, %v371_v57  ;;  %v290_v1 = vadd.f32 %v289_v62, %v83_v55  ;;  %v291_v2 = vpop.f32.mrb[6].mxu0  ;;  %v331_v3 = vpop.f32.mrb[6].mxu1 }
 0x10e   :  { %v338_v4 = vmax.f32 %v288_v60, 0.0  ;;  %v340_v5 = vmax.f32 %v329_v61, 0.0  ;;  %v292_v6 = vpop.f32.mrb[7].mxu0  ;;  %v455_v7 = vpop.f32.mrb[7].mxu1 }
 0x10f   :  { %v339_v8 = vmax.f32 %v290_v1, 0.0  ;;  %v394_v14 = vrot.slane %v386_v0, %v363_v49 }
 0x110   :  { %v347_v9 = vpack.c.bf16 %v340_v5, %v340_v5 }
 0x111   :  { %v444_v10 = vpack.c.bf16 %v339_v8, %v338_v4 }
 0x112   :  { %v385_v11 = vrot.slane %v347_v9, %v363_v49 }
 0x113   :  { %v378_v12 = vrot.slane %v444_v10, %v363_v49 }
 0x115   :  { %v387_v13 = vcombine.low %v378_v12, %v385_v11 }
 0x117   :  { %v401_v15 = vrot.slane %v387_v13, %v363_v49 }
 0x119   :  { %v402_v16 = vcombine.low %v394_v14, %v401_v15 }
 0x11b   :  { %417 = vst.msk [vmem:[%s597_s3] sm:$0x7f] %vm416_vm14, %v402_v16 }
 0x11c   :  { %422 = vsyncpa [#allocation3], 1 }
 0x11d   :  { %423 = vsyncpa [#allocation5], 1 }

// kernel: conv_decoder_forward.5
= control target key start
LH: loop header
LB: loop body
LE: loop exit
PB: predicated region body
PF: predicated region fallthrough
CT: control target
= control target key end

     0   :  { %9 = vsyncpa [#allocation3], 0  ;;  %s2277_s0 = inlined_call_operand.vmem [shape: bf16[2,5,160], index: 0, kind: input, shape index: {}]   ;;  %s2278_s1 = inlined_call_operand.hbm [shape: bf16[5,160,208], index: 1, kind: input, shape index: {}]   ;;  %s2279_s2 = inlined_call_operand.vmem [shape: f32[5,13,5], index: 2, kind: input, shape index: {}]   ;;  %s2280_s3 = inlined_call_operand.hbm [shape: f32[1,208], index: 3, kind: input, shape index: {}]   ;;  %s2281_s4 = inlined_call_operand.vmem [shape: bf16[2,13,208], index: 4, kind: output, shape index: {}]  }
   0x1   :  { %10 = vsyncpa [#allocation5], 0  ;;  %s2101_s15 = smov 0  }
   0x2 LB: > { %s2107_s16 = sadd.s32 4294967295, %s2069_s15   ;;  %p1645_p0 = scmp.ge.s32.totalorder %s2069_s15, 1  ;;  %s2069_s15 = sphi %s2101_s15, %s16_s15  }
   0x3   : > { %p136_p1 = scmp.lt.s32.totalorder %s2069_s15, 3  ;;  %s2071_s17 = smov [#allocation2]  }
   0x4   : > { %s148_s18 = sshll.u32 %s2071_s17, 4  ;;  %p2282_p3 = scmp.eq.s32.totalorder %s2107_s16, 0  ;;  %s149_s18 = int_to_ptr.vmem [resolvable:$true] %s148_s18 }
   0x5   : > { %p2111_p2 = pnand %p1645_p0, %p136_p1  ;;  %s2072_s20 = smov [#allocation4]  }
   0x6   : > { %s165_s21 = sshll.u32 %s2072_s20, 4  ;;  %s1999_s25 = scalar_lea.hbm %s2278_s1, 12800  ;;  %s2124_s21 = int_to_ptr.vmem [resolvable:$true] %s165_s21 }
   0x7   : > { %s2284_s19 = scalar_select %p2111_p2, 1, 0 }
   0x8   : > { %p1823_p4 = pneg %p2111_p2  ;;  %p2000_p6 = scmp.ne.s32.totalorder %s2278_s1, %s1999_s25 }
   0x9   : > { %p2006_p10 = scmp.lt.u32.totalorder %s1999_s25, %s2278_s1 }
   0xa   : > { %p2120_p5 = pnand %p2282_p3, %p1823_p4 }
   0xc   : > { %p2001_p7 = pneg %p2120_p5 }
   0xe   : > { %p2002_p8 = pnand %p2001_p7, %p2000_p6 }
  0x10   : > { %p2003_p9 = pneg %p2002_p8 }
  0x12   : > { %p2008_p11 = pnand %p2006_p10, %p2003_p9 }
  0x14   : > { %2011 = shalt.err (!%p2008_p11)
}
  0x15   : > { %s2012_s30 = scalar_lea.vmem %s149_s18, 12800  ;;  %p2020_p1 = scmp.lt.s32.totalorder %s149_s18, %s149_s18 }
  0x16   : > { %p2013_p12 = scmp.ne.s32.totalorder %s149_s18, %s2012_s30  ;;  %p2021_p4 = scmp.lt.s32.totalorder %s2012_s30, %s2012_s30 }
  0x18   : > { %p2015_p13 = pnand %p2013_p12, %p2001_p7  ;;  %p2022_p3 = por %p2021_p4, %p2020_p1 }
  0x1a   : > { %p2016_p0 = pneg %p2015_p13 }
  0x1c   : > { %p2023_p2 = pnand %p2022_p3, %p2016_p0 }
  0x1e   : > { %2026 = shalt.err (!%p2023_p2)
}
  0x1f   : > { %s2073_s5 = smov 128   ;;  %s2074_s6 = smov 8  }
  0x20   : > { %1826 = dma.hbm_to_vmem [thread:$0]  (!%p2120_p5), %s2278_s1, 12800, %s149_s18, [#allocation3], %s2073_s5, %s2073_s5, %s2074_s6  }
  0x21   : > { %s2027_s11 = scalar_lea.hbm %s2280_s3, 32 }
  0x22   : > { %p2028_p6 = scmp.ne.s32.totalorder %s2280_s3, %s2027_s11  ;;  %p2034_p8 = scmp.lt.u32.totalorder %s2027_s11, %s2280_s3 }
  0x24   : > { %p2030_p2 = pnand %p2028_p6, %p2001_p7 }
  0x26   : > { %p2031_p3 = pneg %p2030_p2 }
  0x28   : > { %p2036_p9 = pnand %p2034_p8, %p2031_p3 }
  0x2a   : > { %2039 = shalt.err (!%p2036_p9)
}
  0x2b   : > { %s2040_s18 = scalar_lea.vmem %s2124_s21, 32  ;;  %p2048_p13 = scmp.lt.s32.totalorder %s2124_s21, %s2124_s21 }
  0x2c   : > { %p2041_p10 = scmp.ne.s32.totalorder %s2124_s21, %s2040_s18  ;;  %p2049_p0 = scmp.lt.s32.totalorder %s2040_s18, %s2040_s18 }
  0x2e   : > { %p2043_p11 = pnand %p2041_p10, %p2001_p7  ;;  %p2050_p1 = por %p2049_p0, %p2048_p13 }
  0x30   : > { %p2044_p12 = pneg %p2043_p11 }
  0x32   : > { %p2051_p4 = pnand %p2050_p1, %p2044_p12 }
  0x34   : > { %2054 = shalt.err (!%p2051_p4)
}
  0x35   : > { %1829 = dma.hbm_to_vmem [thread:$0]  (!%p2120_p5), %s2280_s3, 32, %s2124_s21, [#allocation5]  }
  0x36   : > { %p2286_p6 = scmp.ne.s32.totalorder %s2284_s19, 0 }
  0x37   : > { %p2287_p2 = scmp.eq.s32.totalorder (!%p2286_p6), %s2107_s16, 0 }
  0x38   : > { %186 = sbr.rel (%p2286_p6) target bundleno = 851 (0x353), region = 36 }
  0x3f   : > { %2060 = dma.done.wait (%p2287_p2), [#allocation3], 12800   ;;  %p2288_p7 = pmov %p2287_p2 }
  0x40   : > { %p2289_p3 = pmov %p2287_p2 }
  0x41   : > { %2062 = vsyncadd (%p2288_p7), [#allocation3], 4294954496 }
  0x42   : > { %2064 = dma.done.wait (%p2289_p3), [#allocation5], 32   ;;  %p2290_p8 = pmov %p2287_p2 }
  0x43   : > { %v1847_v0 = vld [vmem:[#allocation2 + $0xa4] ss:$8 sps:$4 sm:$0xff]   ;;  %v1849_v1 = vld [vmem:[#allocation2 + $0xa0] ss:$8 sps:$4 sm:$0xff]   ;;  %v1850_v2 = vld [vmem:[#allocation2 + $0xb4] ss:$8 sps:$4 sm:$0xff]  }
  0x44   : > { %2066 = vsyncadd (%p2290_p8), [#allocation5], 4294967264  ;;  %523 = vmatprep.subr.bf16.mxu1 %v1847_v0  ;;  %v1852_v3 = vld [vmem:[#allocation2 + $0xb0] ss:$8 sps:$4 sm:$0xff]   ;;  %p216_p5 = scmp.lt.s32.totalorder %s2107_s16, 1  ;;  %vm355_vm0 = vcmask 261120  }
  0x45   : > { %524 = vmatpush1.bf16.msra.mxu1 %v1849_v1  ;;  %v1853_v4 = vld [vmem:[#allocation2 + $0xc4] ss:$8 sps:$4 sm:$0xff]   ;;  %v1855_v5 = vld [vmem:[#allocation2 + $0xc0] ss:$8 sps:$4 sm:$0xff]   ;;  %v1856_v6 = vld [vmem:[#allocation2 + $0xd4] ss:$8 sps:$4 sm:$0xff]  }
  0x46   : > { %525 = vmatprep.subr.bf16.mxu1 %v1850_v2  ;;  %s2292_s16 = smov (!%p216_p5, %s2107_s16), 1  ;;  %v1858_v7 = vld [vmem:[#allocation2 + $0xd0] ss:$8 sps:$4 sm:$0xff]   ;;  %v1871_v8 = vld [vmem:[#allocation2 + $0x4] ss:$8 sps:$4 sm:$0xff]   ;;  %v2075_v63 = vmov 0.0  }
  0x47   : > { %v1873_v9 = vld [vmem:[#allocation2] ss:$8 sps:$4 sm:$0xff]   ;;  %s1795_s19 = sshll.u32 %s2292_s16, 3  ;;  %v1859_v10 = vld [vmem:[#allocation2 + $0xe4] ss:$8 sps:$4 sm:$0xff]   ;;  %359 = vmatprep.subr.bf16.mxu0 %v1871_v8  ;;  %vm574_vm1 = vcmask 1044480  }
  0x48   : > { %360 = vmatpush1.bf16.msra.mxu0 %v1873_v9  ;;  %v1877_v11 = vld [vmem:[#allocation2 + $0x14] ss:$8 sps:$4 sm:$0xff]   ;;  %v1879_v12 = vld [vmem:[#allocation2 + $0x10] ss:$8 sps:$4 sm:$0xff]   ;;  %s220_s24 = scalar_lea.vmem %s2277_s0, %s1795_s19  ;;  %v1861_v13 = vld [vmem:[#allocation2 + $0xe0] ss:$8 sps:$4 sm:$0xff]  }
  0x49   : > { %526 = vmatpush1.bf16.msra.mxu1 %v1852_v3  ;;  %v1862_v14 = vld [vmem:[#allocation2 + $0xf4] ss:$8 sps:$4 sm:$0xff]   ;;  %361 = vmatprep.subr.bf16.mxu0 %v1877_v11  ;;  %v1883_v15 = vld [vmem:[#allocation2 + $0x24] ss:$8 sps:$4 sm:$0xff]   ;;  %v1864_v17 = vld [vmem:[#allocation2 + $0xf0] ss:$8 sps:$4 sm:$0xff]  }
  0x4a   : > { %527 = vmatprep.subr.bf16.mxu1 %v1853_v4  ;;  %v228_v16 = vld [vmem:[%s220_s24] sm:$0x77]  ;;  %v1891_v20 = vld [vmem:[#allocation2 + $0x34] ss:$8 sps:$4 sm:$0xff]   ;;  %v1893_v23 = vld [vmem:[#allocation2 + $0x30] ss:$8 sps:$4 sm:$0xff]  }
  0x4b   : > { %v1885_v18 = vld [vmem:[#allocation2 + $0x20] ss:$8 sps:$4 sm:$0xff]   ;;  %v2191_v19 = vcombine.high %v228_v16, %v228_v16  ;;  %v1865_v21 = vld [vmem:[#allocation2 + $0x104] ss:$8 sps:$4 sm:$0xff]   ;;  %v1868_v25 = vld [vmem:[#allocation2 + $0x114] ss:$8 sps:$4 sm:$0xff]   ;;  %v2197_v39 = vcombine.low %v228_v16, %v228_v16 }
  0x4c   : > { %362 = vmatpush1.bf16.msra.mxu0 %v1879_v12  ;;  %v1867_v22 = vld [vmem:[#allocation2 + $0x100] ss:$8 sps:$4 sm:$0xff]   ;;  %v1897_v24 = vld [vmem:[#allocation2 + $0x44] ss:$8 sps:$4 sm:$0xff]   ;;  %v1870_v26 = vld [vmem:[#allocation2 + $0x110] ss:$8 sps:$4 sm:$0xff]  }
  0x4d   : > { %528 = vmatpush1.bf16.msra.mxu1 %v1855_v5  ;;  %363 = vmatprep.subr.bf16.mxu0 %v1883_v15  ;;  %v1899_v27 = vld [vmem:[#allocation2 + $0x40] ss:$8 sps:$4 sm:$0xff]   ;;  %v1903_v28 = vld [vmem:[#allocation2 + $0x54] ss:$8 sps:$4 sm:$0xff]   ;;  %v1874_v29 = vld [vmem:[#allocation2 + $0x124] ss:$8 sps:$4 sm:$0xff]  }
  0x4e   : > { %529 = vmatprep.subr.bf16.mxu1 %v1856_v6  ;;  %1699 = vmatprep.mubr.msk.bf16.mxu1 %vm355_vm0, %v2191_v19  ;;  %v1876_v30 = vld [vmem:[#allocation2 + $0x120] ss:$8 sps:$4 sm:$0xff]   ;;  %v1905_v31 = vld [vmem:[#allocation2 + $0x50] ss:$8 sps:$4 sm:$0xff]   ;;  %v1909_v32 = vld [vmem:[#allocation2 + $0x64] ss:$8 sps:$4 sm:$0xff]  }
  0x4f   : > { %1678 = vmatprep.mubr.msk.bf16.mxu0 %vm355_vm0, %v2191_v19  ;;  %v1880_v33 = vld [vmem:[#allocation2 + $0x134] ss:$8 sps:$4 sm:$0xff]   ;;  %v1882_v34 = vld [vmem:[#allocation2 + $0x130] ss:$8 sps:$4 sm:$0xff]   ;;  %v1911_v35 = vld [vmem:[#allocation2 + $0x60] ss:$8 sps:$4 sm:$0xff]  }
  0x50   : > { %364 = vmatpush1.bf16.msra.mxu0 %v1885_v18  ;;  %v1915_v36 = vld [vmem:[#allocation2 + $0x74] ss:$8 sps:$4 sm:$0xff]   ;;  %v1890_v37 = vld [vmem:[#allocation2 + $0x144] ss:$8 sps:$4 sm:$0xff]   ;;  %v1888_v38 = vld [vmem:[#allocation2 + $0x140] ss:$8 sps:$4 sm:$0xff]  }
  0x51   : > { %530 = vmatpush1.bf16.msra.mxu1 %v1858_v7  ;;  %365 = vmatprep.subr.bf16.mxu0 %v1891_v20  ;;  %v1896_v40 = vld [vmem:[#allocation2 + $0x154] ss:$8 sps:$4 sm:$0xff]   ;;  %v1917_v41 = vld [vmem:[#allocation2 + $0x70] ss:$8 sps:$4 sm:$0xff]   ;;  %v1921_v42 = vld [vmem:[#allocation2 + $0x84] ss:$8 sps:$4 sm:$0xff]  }
  0x52   : > { %531 = vmatprep.subr.bf16.mxu1 %v1859_v10  ;;  %v1923_v43 = vld [vmem:[#allocation2 + $0x80] ss:$8 sps:$4 sm:$0xff]   ;;  %v1894_v44 = vld [vmem:[#allocation2 + $0x150] ss:$8 sps:$4 sm:$0xff]   ;;  %v1927_v45 = vld [vmem:[#allocation2 + $0x94] ss:$8 sps:$4 sm:$0xff]  }
  0x53   : > { %v1902_v46 = vld [vmem:[#allocation2 + $0x164] ss:$8 sps:$4 sm:$0xff]   ;;  %v1929_v47 = vld [vmem:[#allocation2 + $0x90] ss:$8 sps:$4 sm:$0xff]   ;;  %v1900_v48 = vld [vmem:[#allocation2 + $0x160] ss:$8 sps:$4 sm:$0xff]  }
  0x54   : > { %366 = vmatpush1.bf16.msra.mxu0 %v1893_v23  ;;  %v1908_v49 = vld [vmem:[#allocation2 + $0x174] ss:$8 sps:$4 sm:$0xff]   ;;  %v1906_v50 = vld [vmem:[#allocation2 + $0x170] ss:$8 sps:$4 sm:$0xff]   ;;  %v1914_v51 = vld [vmem:[#allocation2 + $0x184] ss:$8 sps:$4 sm:$0xff]  }
  0x55   : > { %532 = vmatpush1.bf16.msra.mxu1 %v1861_v13  ;;  %367 = vmatprep.subr.bf16.mxu0 %v1897_v24  ;;  %v1912_v52 = vld [vmem:[#allocation2 + $0x180] ss:$8 sps:$4 sm:$0xff]   ;;  %v1920_v53 = vld [vmem:[#allocation2 + $0x194] ss:$8 sps:$4 sm:$0xff]   ;;  %v1918_v54 = vld [vmem:[#allocation2 + $0x190] ss:$8 sps:$4 sm:$0xff]  }
  0x56   : > { %533 = vmatprep.subr.bf16.mxu1 %v1862_v14  ;;  %v1926_v55 = vld [vmem:[#allocation2 + $0x1a4] ss:$8 sps:$4 sm:$0xff]   ;;  %v1924_v56 = vld [vmem:[#allocation2 + $0x1a0] ss:$8 sps:$4 sm:$0xff]   ;;  %v1932_v57 = vld [vmem:[#allocation2 + $0x1b4] ss:$8 sps:$4 sm:$0xff]  }
  0x57   : > { %v1930_v58 = vld [vmem:[#allocation2 + $0x1b0] ss:$8 sps:$4 sm:$0xff]   ;;  %v1935_v59 = vld [vmem:[#allocation2 + $0x1c4] ss:$8 sps:$4 sm:$0xff]   ;;  %v1933_v60 = vld [vmem:[#allocation2 + $0x1c0] ss:$8 sps:$4 sm:$0xff]  }
  0x58   : > { %368 = vmatpush1.bf16.msra.mxu0 %v1899_v27  ;;  %v1938_v61 = vld [vmem:[#allocation2 + $0x1d4] ss:$8 sps:$4 sm:$0xff]   ;;  %v1936_v62 = vld [vmem:[#allocation2 + $0x1d0] ss:$8 sps:$4 sm:$0xff]   ;;  %v1947_v0 = vld [vmem:[#allocation2 + $0x284] ss:$8 sps:$4 sm:$0xff]  }
  0x59   : > { %534 = vmatpush1.bf16.msra.mxu1 %v1864_v17  ;;  %369 = vmatprep.subr.bf16.mxu0 %v1903_v28  ;;  %v1945_v1 = vld [vmem:[#allocation2 + $0x280] ss:$8 sps:$4 sm:$0xff]   ;;  %v1953_v2 = vld [vmem:[#allocation2 + $0x294] ss:$8 sps:$4 sm:$0xff]   ;;  %v1951_v3 = vld [vmem:[#allocation2 + $0x290] ss:$8 sps:$4 sm:$0xff]  }
  0x5a   : > { %535 = vmatprep.subr.bf16.mxu1 %v1865_v21  ;;  %v1959_v4 = vld [vmem:[#allocation2 + $0x2a4] ss:$8 sps:$4 sm:$0xff]   ;;  %v1957_v5 = vld [vmem:[#allocation2 + $0x2a0] ss:$8 sps:$4 sm:$0xff]   ;;  %v1965_v6 = vld [vmem:[#allocation2 + $0x2b4] ss:$8 sps:$4 sm:$0xff]  }
  0x5b   : > { %v1963_v7 = vld [vmem:[#allocation2 + $0x2b0] ss:$8 sps:$4 sm:$0xff]   ;;  %v1971_v8 = vld [vmem:[#allocation2 + $0x2c4] ss:$8 sps:$4 sm:$0xff]   ;;  %v1969_v9 = vld [vmem:[#allocation2 + $0x2c0] ss:$8 sps:$4 sm:$0xff]  }
  0x5c   : > { %370 = vmatpush1.bf16.msra.mxu0 %v1905_v31  ;;  %v1977_v10 = vld [vmem:[#allocation2 + $0x2d4] ss:$8 sps:$4 sm:$0xff]   ;;  %v1975_v11 = vld [vmem:[#allocation2 + $0x2d0] ss:$8 sps:$4 sm:$0xff]   ;;  %v1983_v12 = vld [vmem:[#allocation2 + $0x2e4] ss:$8 sps:$4 sm:$0xff]  }
  0x5d   : > { %536 = vmatpush1.bf16.msra.mxu1 %v1867_v22  ;;  %371 = vmatprep.subr.bf16.mxu0 %v1909_v32  ;;  %v1981_v13 = vld [vmem:[#allocation2 + $0x2e0] ss:$8 sps:$4 sm:$0xff]   ;;  %v1989_v14 = vld [vmem:[#allocation2 + $0x2f4] ss:$8 sps:$4 sm:$0xff]   ;;  %v1987_v15 = vld [vmem:[#allocation2 + $0x2f0] ss:$8 sps:$4 sm:$0xff]  }
  0x5e   : > { %537 = vmatprep.subr.bf16.mxu1 %v1868_v25  ;;  %v1995_v16 = vld [vmem:[#allocation2 + $0x304] ss:$8 sps:$4 sm:$0xff]   ;;  %v1993_v17 = vld [vmem:[#allocation2 + $0x300] ss:$8 sps:$4 sm:$0xff]   ;;  %v1998_v18 = vld [vmem:[#allocation2 + $0x314] ss:$8 sps:$4 sm:$0xff]  }
  0x5f   : > { %v1996_v20 = vld [vmem:[#allocation2 + $0x310] ss:$8 sps:$4 sm:$0xff]   ;;  %vm567_vm2 = vcmask 39936   ;;  %v401_v32 = vld [vmem:[%s2279_s2 + $0x8] sm:$0x1f]  ;;  %vm1552_vm3 = vcmask 1043456  }
  0x60   : > { %372 = vmatpush1.bf16.msra.mxu0 %v1911_v35  ;;  %v1700_v23 = vld [vmem:[%s2279_s2 + $0x10] sm:$0xff]  ;;  %vm1553_vm4 = vcmask 654340   ;;  %s1796_s19 = sshll.u32 %s2292_s16, 4  ;;  %vm1556_vm5 = vcmask 1042432   ;;  %vm1557_vm6 = vsmask.f32 2304 }
  0x61   : > { %538 = vmatpush1.bf16.msra.mxu1 %v1870_v26  ;;  %373 = vmatprep.subr.bf16.mxu0 %v1915_v36  ;;  %v1701_v26 = vld [vmem:[%s2279_s2 + $0x18] sm:$0x1f]  ;;  %v1939_v36 = vld [vmem:[#allocation2 + $0x1e0] ss:$8 sps:$4 sm:$0xff]   ;;  %vm1559_vm7 = vcmask 653316   ;;  %vm1554_vm9 = vmor %vm1553_vm4, %vm1552_vm3  ;;  %s225_s24 = scalar_lea.vmem %s2281_s4, %s1796_s19 }
  0x62   : > { %539 = vmatprep.subr.bf16.mxu1 %v1874_v29  ;;  %v400_v29 = vld [vmem:[%s2279_s2] sm:$0xff]  ;;  %vm1560_vm8 = vsmask.f32 6400  ;;  %vm1558_vm10 = vmand %vm1556_vm5, %vm1557_vm6 }
  0x63   : > { %vm1561_vm11 = vmand %vm1559_vm7, %vm1560_vm8 }
  0x64   : > { %374 = vmatpush1.bf16.msra.mxu0 %v1917_v41  ;;  %vm1562_vm12 = vmor %vm1561_vm11, %vm1558_vm10 }
  0x65   : > { %540 = vmatpush1.bf16.msra.mxu1 %v1876_v30  ;;  %375 = vmatprep.subr.bf16.mxu0 %v1921_v42  ;;  %v1942_v42 = vld [vmem:[#allocation2 + $0x1f0] ss:$8 sps:$4 sm:$0xff]  }
  0x66   : > { %541 = vmatprep.subr.bf16.mxu1 %v1880_v33 }
  0x68   : > { %376 = vmatpush1.bf16.msra.mxu0 %v1923_v43  ;;  %v1732_v43 = vld [vmem:[%s2279_s2 + $0x28] sm:$0x1f] }
  0x69   : > { %542 = vmatpush1.bf16.msra.mxu1 %v1882_v34  ;;  %377 = vmatprep.subr.bf16.mxu0 %v1927_v45  ;;  %v1941_v34 = vld [vmem:[#allocation2 + $0x1e4] ss:$8 sps:$4 sm:$0xff]   ;;  %v1948_v45 = vld [vmem:[#allocation2 + $0x200] ss:$8 sps:$4 sm:$0xff]  }
  0x6a   : > { %868 = vmatprep.subr.bf16.mxu1 %v1890_v37  ;;  %v1731_v37 = vld [vmem:[%s2279_s2 + $0x20] sm:$0xff] }
  0x6c   : > { %556 = vmatmul.mubr.bf16.vlgmr.msra.gmra.mrb[0].mxu1 %v2197_v39  ;;  %378 = vmatpush1.bf16.msra.mxu0 %v1929_v47  ;;  %v1954_v47 = vld [vmem:[#allocation2 + $0x210] ss:$8 sps:$4 sm:$0xff]  }
  0x6d   : > { %869 = vmatpush1.bf16.msra.mxu1 %v1888_v38  ;;  %1730 = vmatprep.mubr.msk.bf16.mxu1 %vm355_vm0, %v2191_v19 }
  0x6e   : > { %870 = vmatprep.subr.bf16.mxu1 %v1896_v40  ;;  %v1944_v40 = vld [vmem:[#allocation2 + $0x1f4] ss:$8 sps:$4 sm:$0xff]  }
  0x6f   : > { %392 = vmatmul.mubr.bf16.vlgmr.msra.gmra.mrb[0].mxu0 %v2197_v39 }
  0x70   : > { %645 = vmatprep.mubr.f32.mxu0 %v2075_v63 }
  0x71   : > { %871 = vmatpush1.bf16.msra.mxu1 %v1894_v44  ;;  %v1950_v44 = vld [vmem:[#allocation2 + $0x204] ss:$8 sps:$4 sm:$0xff]  }
  0x72   : > { %872 = vmatprep.subr.bf16.mxu1 %v1902_v46  ;;  %v1956_v46 = vld [vmem:[#allocation2 + $0x214] ss:$8 sps:$4 sm:$0xff]  }
  0x75   : > { %873 = vmatpush1.bf16.msra.mxu1 %v1900_v48  ;;  %v1962_v48 = vld [vmem:[#allocation2 + $0x224] ss:$8 sps:$4 sm:$0xff]  }
  0x76   : > { %874 = vmatprep.subr.bf16.mxu1 %v1908_v49  ;;  %v1960_v49 = vld [vmem:[#allocation2 + $0x220] ss:$8 sps:$4 sm:$0xff]  }
  0x79   : > { %875 = vmatpush1.bf16.msra.mxu1 %v1906_v50  ;;  %v1968_v50 = vld [vmem:[#allocation2 + $0x234] ss:$8 sps:$4 sm:$0xff]  }
  0x7a   : > { %876 = vmatprep.subr.bf16.mxu1 %v1914_v51  ;;  %v1966_v51 = vld [vmem:[#allocation2 + $0x230] ss:$8 sps:$4 sm:$0xff]  }
  0x7d   : > { %877 = vmatpush1.bf16.msra.mxu1 %v1912_v52  ;;  %v1974_v52 = vld [vmem:[#allocation2 + $0x244] ss:$8 sps:$4 sm:$0xff]  }
  0x7e   : > { %878 = vmatprep.subr.bf16.mxu1 %v1920_v53  ;;  %v1972_v53 = vld [vmem:[#allocation2 + $0x240] ss:$8 sps:$4 sm:$0xff]  }
  0x81   : > { %879 = vmatpush1.bf16.msra.mxu1 %v1918_v54  ;;  %v1980_v54 = vld [vmem:[#allocation2 + $0x254] ss:$8 sps:$4 sm:$0xff]  }
  0x82   : > { %880 = vmatprep.subr.bf16.mxu1 %v1926_v55  ;;  %v1986_v55 = vld [vmem:[#allocation2 + $0x264] ss:$8 sps:$4 sm:$0xff]  }
  0x85   : > { %881 = vmatpush1.bf16.msra.mxu1 %v1924_v56  ;;  %v1984_v56 = vld [vmem:[#allocation2 + $0x260] ss:$8 sps:$4 sm:$0xff]  }
  0x86   : > { %882 = vmatprep.subr.bf16.mxu1 %v1932_v57  ;;  %v1992_v57 = vld [vmem:[#allocation2 + $0x274] ss:$8 sps:$4 sm:$0xff]  }
  0x89   : > { %883 = vmatpush1.bf16.msra.mxu1 %v1930_v58  ;;  %v1990_v58 = vld [vmem:[#allocation2 + $0x270] ss:$8 sps:$4 sm:$0xff]  }
  0x8a   : > { %884 = vmatprep.subr.bf16.mxu1 %v1935_v59 }
  0x8d   : > { %885 = vmatpush1.bf16.msra.mxu1 %v1933_v60 }
  0x8e   : > { %886 = vmatprep.subr.bf16.mxu1 %v1938_v61 }
  0x91   : > { %887 = vmatpush1.bf16.msra.mxu1 %v1936_v62 }
  0x92   : > { %1384 = vmatprep.subr.bf16.mxu1 %v1947_v0 }
  0x94   : > { %901 = vmatmul.mubr.bf16.vlgmr.msra.gmra.mrb[4].mxu1 %v2197_v39 }
  0x95   : > { %1784 = vmatprep.mubr.msk.bf16.mxu1 %vm355_vm0, %v2191_v19  ;;  %1385 = vmatpush1.bf16.msra.mxu1 %v1945_v1 }
  0x96   : > { %1386 = vmatprep.subr.bf16.mxu1 %v1953_v2  ;;  %v1758_v2 = vld [vmem:[%s2279_s2 + $0x30] sm:$0xff] }
  0x99   : > { %1387 = vmatpush1.bf16.msra.mxu1 %v1951_v3 }
  0x9a   : > { %1388 = vmatprep.subr.bf16.mxu1 %v1959_v4 }
  0x9d   : > { %1389 = vmatpush1.bf16.msra.mxu1 %v1957_v5  ;;  %v1785_v5 = vld [vmem:[%s2279_s2 + $0x40] sm:$0xff] }
  0x9e   : > { %1390 = vmatprep.subr.bf16.mxu1 %v1965_v6  ;;  %v1786_v6 = vld [vmem:[%s2279_s2 + $0x48] sm:$0x1f] }
  0xa1   : > { %1391 = vmatpush1.bf16.msra.mxu1 %v1963_v7  ;;  %v1522_v7 = vlaneseq }
  0xa2   : > { %1392 = vmatprep.subr.bf16.mxu1 %v1971_v8 }
  0xa3   : > { %v1523_v8 = vshrl.u32 %v1522_v7, 7 }
  0xa5   : > { %1393 = vmatpush1.bf16.msra.mxu1 %v1969_v9  ;;  %v1524_v9 = vsub.s32 0, %v1523_v8 }
  0xa6   : > { %1394 = vmatprep.subr.bf16.mxu1 %v1977_v10  ;;  %v227_v10 = vld [vmem:[#allocation4] sm:$0x3] }
  0xa9   : > { %1395 = vmatpush1.bf16.msra.mxu1 %v1975_v11  ;;  %v1528_v11 = vsub.s32 1, %v1523_v8 }
  0xaa   : > { %1396 = vmatprep.subr.bf16.mxu1 %v1983_v12  ;;  %v1525_v12 = vrot.slane %v227_v10, %v1524_v9 }
  0xad   : > { %1397 = vmatpush1.bf16.msra.mxu1 %v1981_v13  ;;  %v1529_v13 = vrot.slane %v227_v10, %v1528_v11 }
  0xae   : > { %1398 = vmatprep.subr.bf16.mxu1 %v1989_v14 }
  0xb1   : > { %1399 = vmatpush1.bf16.msra.mxu1 %v1987_v15 }
  0xb2   : > { %1400 = vmatprep.subr.bf16.mxu1 %v1995_v16 }
  0xb5   : > { %1401 = vmatpush1.bf16.msra.mxu1 %v1993_v17 }
  0xb6   : > { %1402 = vmatprep.subr.bf16.mxu1 %v1998_v18 }
  0xb9   : > { %1403 = vmatpush1.bf16.msra.mxu1 %v1996_v20 }
  0xbc   : > { %1417 = vmatmul.mubr.bf16.vlgmr.msra.gmra.mrb[8].mxu1 %v2197_v39 }
 0x13f   : > { %v557_v21 = vpop.f32.mrb[0].mxu1 }
 0x140   : > { %v559_v22 = vpop.f32.mrb[1].mxu1 }
 0x141   : > { %v561_v24 = vpop.f32.mrb[2].mxu1  ;;  %1702 = vmatprep.subr.msk.mxu0 %vm574_vm1, %v559_v22 }
 0x142   : > { %v562_v25 = vpop.f32.mrb[3].mxu1  ;;  %1703 = vmatpush1.msk.msra.mxu0 %vm574_vm1, %v557_v21  ;;  %v393_v27 = vpop.f32.mrb[0].mxu0 }
 0x143   : > { %1704 = vmatmul.mubr.msk.f32.vlgmr.msra.gmra.mrb[4].mxu0 %vm567_vm2, %v1700_v23  ;;  %v395_v28 = vpop.f32.mrb[1].mxu0 }
 0x144   : > { %651 = vmatprep.mubr.f32.mxu0 %v2075_v63  ;;  %v397_v30 = vpop.f32.mrb[2].mxu0  ;;  %1706 = vmatprep.subr.msk.mxu0 %vm574_vm1, %v395_v28 }
 0x145   : > { %v398_v31 = vpop.f32.mrb[3].mxu0  ;;  %1707 = vmatpush1.msk.msra.mxu0 %vm574_vm1, %v393_v27  ;;  %v1563_v27 = vld [vmem:[%s225_s24 + $0x8] sm:$0x77] }
 0x147   : > { %1705 = vmatmul.mubr.msk.f32.gmra.mrb[6].mxu0 %vm567_vm2, %v1701_v26 }
 0x148   : > { %734 = vmatprep.mubr.f32.mxu0 %v2075_v63 }
 0x14b   : > { %1708 = vmatmul.mubr.msk.f32.vlgmr.msra.gmra.mrb[4].mxu0 %vm567_vm2, %v400_v29 }
 0x14c   : > { %740 = vmatprep.mubr.f32.mxu0 %v2075_v63 }
 0x14f   : > { %1709 = vmatmul.mubr.msk.f32.gmra.mrb[6].mxu0 %vm567_vm2, %v401_v32 }
 0x150   : > { %988 = vmatprep.mubr.f32.mxu0 %v2075_v63 }
 0x167   : > { %v902_v33 = vpop.f32.mrb[4].mxu1 }
 0x168   : > { %v904_v35 = vpop.f32.mrb[5].mxu1 }
 0x169   : > { %v906_v38 = vpop.f32.mrb[6].mxu1  ;;  %1733 = vmatprep.subr.msk.mxu0 %vm574_vm1, %v904_v35 }
 0x16a   : > { %v907_v41 = vpop.f32.mrb[7].mxu1  ;;  %1734 = vmatpush1.msk.msra.mxu0 %vm574_vm1, %v902_v33 }
 0x16b   : > { %1126 = vmatprep.subr.bf16.mxu0 %v1941_v34  ;;  %1735 = vmatmul.mubr.msk.f32.vlgmr.msra.gmra.mrb[4].mxu0 %vm567_vm2, %v1731_v37 }
 0x16c   : > { %1127 = vmatpush1.bf16.msra.mxu0 %v1939_v36  ;;  %994 = vmatprep.mubr.f32.mxu0 %v2075_v63 }
 0x16d   : > { %1128 = vmatprep.subr.bf16.mxu0 %v1944_v40 }
 0x16f   : > { %1736 = vmatmul.mubr.msk.f32.gmra.mrb[6].mxu0 %vm567_vm2, %v1732_v43 }
 0x170   : > { %1129 = vmatpush1.bf16.msra.mxu0 %v1942_v42  ;;  %1757 = vmatprep.mubr.msk.bf16.mxu0 %vm355_vm0, %v2191_v19  ;;  %v1978_v19 = vld [vmem:[#allocation2 + $0x250] ss:$8 sps:$4 sm:$0xff]  }
 0x171   : > { %1130 = vmatprep.subr.bf16.mxu0 %v1950_v44 }
 0x174   : > { %1131 = vmatpush1.bf16.msra.mxu0 %v1948_v45 }
 0x175   : > { %1132 = vmatprep.subr.bf16.mxu0 %v1956_v46 }
 0x178   : > { %1133 = vmatpush1.bf16.msra.mxu0 %v1954_v47 }
 0x179   : > { %1134 = vmatprep.subr.bf16.mxu0 %v1962_v48 }
 0x17c   : > { %1135 = vmatpush1.bf16.msra.mxu0 %v1960_v49 }
 0x17d   : > { %1136 = vmatprep.subr.bf16.mxu0 %v1968_v50 }
 0x180   : > { %1137 = vmatpush1.bf16.msra.mxu0 %v1966_v51 }
 0x181   : > { %1138 = vmatprep.subr.bf16.mxu0 %v1974_v52 }
 0x184   : > { %1139 = vmatpush1.bf16.msra.mxu0 %v1972_v53 }
 0x185   : > { %1140 = vmatprep.subr.bf16.mxu0 %v1980_v54 }
 0x188   : > { %1141 = vmatpush1.bf16.msra.mxu0 %v1978_v19 }
 0x189   : > { %1142 = vmatprep.subr.bf16.mxu0 %v1986_v55 }
 0x18c   : > { %1143 = vmatpush1.bf16.msra.mxu0 %v1984_v56 }
 0x18d   : > { %1144 = vmatprep.subr.bf16.mxu0 %v1992_v57 }
 0x18f   : > { %v1418_v59 = vpop.f32.mrb[8].mxu1 }
 0x190   : > { %1145 = vmatpush1.bf16.msra.mxu0 %v1990_v58  ;;  %v1420_v60 = vpop.f32.mrb[9].mxu1 }
 0x191   : > { %v1422_v61 = vpop.f32.mrb[10].mxu1 }
 0x192   : > { %v1423_v62 = vpop.f32.mrb[11].mxu1 }
 0x193   : > { %1159 = vmatmul.mubr.bf16.vlgmr.msra.gmra.mrb[8].mxu0 %v2197_v39  ;;  %v1759_v39 = vld [vmem:[%s2279_s2 + $0x38] sm:$0x1f] }
 0x194   : > { %1246 = vmatprep.mubr.f32.mxu0 %v2075_v63 }
 0x266   : > { %v1160_v0 = vpop.f32.mrb[8].mxu0 }
 0x267   : > { %v1162_v1 = vpop.f32.mrb[9].mxu0 }
 0x268   : > { %v1164_v3 = vpop.f32.mrb[10].mxu0  ;;  %1760 = vmatprep.subr.msk.mxu0 %vm574_vm1, %v1162_v1 }
 0x269   : > { %v1165_v4 = vpop.f32.mrb[11].mxu0  ;;  %1761 = vmatpush1.msk.msra.mxu0 %vm574_vm1, %v1160_v0 }
 0x26a   : > { %1762 = vmatmul.mubr.msk.f32.vlgmr.msra.gmra.mrb[4].mxu0 %vm567_vm2, %v1758_v2  ;;  %1787 = vmatprep.subr.msk.mxu0 %vm574_vm1, %v1420_v60 }
 0x26b   : > { %1252 = vmatprep.mubr.f32.mxu0 %v2075_v63  ;;  %1788 = vmatpush1.msk.msra.mxu0 %vm574_vm1, %v1418_v59 }
 0x26e   : > { %1763 = vmatmul.mubr.msk.f32.gmra.mrb[6].mxu0 %vm567_vm2, %v1759_v39 }
 0x26f   : > { %1504 = vmatprep.mubr.f32.mxu0 %v2075_v63 }
 0x272   : > { %1789 = vmatmul.mubr.msk.f32.vlgmr.msra.gmra.mrb[4].mxu0 %vm567_vm2, %v1785_v5 }
 0x273   : > { %1510 = vmatprep.mubr.f32.mxu0 %v2075_v63 }
 0x276   : > { %1790 = vmatmul.mubr.msk.f32.gmra.mrb[6].mxu0 %vm567_vm2, %v1786_v6 }
 0x345   : > { %v1506_v14 = vpop.f32.mrb[4].mxu0 }
 0x346   : > { %v1532_v15 = vadd.f32 %v1525_v12, %v1506_v14  ;;  %v1508_v16 = vpop.f32.mrb[5].mxu0 }
 0x347   : > { %v1533_v63 = vadd.f32 %v1529_v13, %v1508_v16 }
 0x348   : > { %v1536_v17 = vmax.f32 %v1532_v15, 0.0 }
 0x349   : > { %v1537_v18 = vmax.f32 %v1533_v63, 0.0  ;;  %v1512_v20 = vpop.f32.mrb[6].mxu0 }
 0x34a   : > { %v1534_v21 = vadd.f32 %v1525_v12, %v1512_v20  ;;  %v1514_v22 = vpop.f32.mrb[7].mxu0 }
 0x34b   : > { %v1797_v23 = vpack.c.bf16 %v1537_v18, %v1536_v17  ;;  %v1535_v24 = vadd.f32 %v1529_v13, %v1514_v22 }
 0x34c   : > { %v1538_v25 = vmax.f32 %v1534_v21, 0.0 }
 0x34d   : > { %1555 = vst.msk [vmem:[%s225_s24] sm:$0xff] %vm1554_vm9, %v1797_v23  ;;  %v1539_v26 = vmax.f32 %v1535_v24, 0.0 }
 0x34f   : > { %v1798_v28 = vpack.c.bf16 %v1539_v26, %v1538_v25 }
 0x351   : > { %v1564_v29 = vsel %vm1562_vm12, %v1798_v28, %v1563_v27 }
 0x352   : > { %1565 = vst [vmem:[%s225_s24 + $0x8] sm:$0x77] %v1564_v29 }
 0x353 PF: > { %s16_s15 = sadd.s32 1, %s2069_s15  }
 0x354   : > { %p13_p9 = scmp.ge.s32.totalorder %s16_s15, 4  }
 0x356   :  { %15 = sbr.rel (!%p13_p9) target bundleno = 2 (0x2), region = 83 }
 0x35d   :  { %1587 = vsyncpa [#allocation3], 1 }
 0x35e   :  { %1589 = vsyncpa [#allocation3 + $0x1], 1 }
 0x35f   :  { %1590 = vsyncpa [#allocation5], 1 }

// kernel: conv_decoder_forward.6
= control target key start
LH: loop header
LB: loop body
LE: loop exit
PB: predicated region body
PF: predicated region fallthrough
CT: control target
= control target key end

     0   :  { %s2964_s15 = smov 0   ;;  %s3640_s0 = inlined_call_operand.vmem [shape: bf16[2,13,208], index: 0, kind: input, shape index: {}]   ;;  %s3641_s1 = inlined_call_operand.vmem [shape: bf16[6,208,240], index: 1, kind: input, shape index: {}]   ;;  %s3642_s2 = inlined_call_operand.vmem [shape: f32[6,30,13], index: 2, kind: input, shape index: {}]   ;;  %s3643_s3 = inlined_call_operand.vmem [shape: f32[1,240], index: 3, kind: input, shape index: {}]   ;;  %s3644_s4 = inlined_call_operand.vmem [shape: bf16[2,30,240], index: 4, kind: output, shape index: {}]  }
   0x1 LB: > { %s2235_s16 = sadd.s32 4294967295, %s2935_s15   ;;  %p2239_p0 = scmp.ge.s32.totalorder %s2935_s15, 1  ;;  %s2935_s15 = sphi %s2964_s15, %s14_s15  }
   0x2   : > { %p162_p1 = scmp.lt.s32.totalorder %s2935_s15, 3 }
   0x4   : > { %p163_p2 = pnand %p2239_p0, %p162_p1 }
   0x5   : > { %v2692_v0 = vld [vmem:[%s3641_s1 + $0xd4] ss:$8 sps:$4 sm:$0xff] (!%p163_p2)   ;;  %v2694_v1 = vld [vmem:[%s3641_s1 + $0xd0] ss:$8 sps:$4 sm:$0xff] (!%p163_p2)   ;;  %v2695_v2 = vld [vmem:[%s3641_s1 + $0xe4] ss:$8 sps:$4 sm:$0xff] (!%p163_p2)  }
   0x6   : > { %166 = sbr.rel (%p163_p2) target bundleno = 868 (0x364), region = 36  ;;  %575 = vmatprep.subr.bf16.mxu1 (!%p163_p2), %v2692_v0  ;;  %v2697_v3 = vld [vmem:[%s3641_s1 + $0xe0] ss:$8 sps:$4 sm:$0xff] (!%p163_p2)   ;;  %v2698_v4 = vld [vmem:[%s3641_s1 + $0xf4] ss:$8 sps:$4 sm:$0xff] (!%p163_p2)   ;;  %p188_p3 = scmp.lt.s32.totalorder (!%p163_p2), %s2235_s16, 1 }
   0x7   : > { %576 = vmatpush1.bf16.msra.mxu1 (!%p163_p2), %v2694_v1  ;;  %v2700_v5 = vld [vmem:[%s3641_s1 + $0xf0] ss:$8 sps:$4 sm:$0xff] (!%p163_p2)   ;;  %v2701_v6 = vld [vmem:[%s3641_s1 + $0x104] ss:$8 sps:$4 sm:$0xff] (!%p163_p2)   ;;  %v2703_v7 = vld [vmem:[%s3641_s1 + $0x100] ss:$8 sps:$4 sm:$0xff] (!%p163_p2)  }
   0x8   : > { %577 = vmatprep.subr.bf16.mxu1 (!%p163_p2), %v2695_v2  ;;  %v2716_v8 = vld [vmem:[%s3641_s1 + $0x4] ss:$8 sps:$4 sm:$0xff] (!%p163_p2)   ;;  %v2704_v9 = vld [vmem:[%s3641_s1 + $0x114] ss:$8 sps:$4 sm:$0xff] (!%p163_p2)   ;;  %v2720_v10 = vld [vmem:[%s3641_s1] ss:$8 sps:$4 sm:$0xff] (!%p163_p2)  }
   0x9   : > { %371 = vmatprep.subr.bf16.mxu0 (!%p163_p2), %v2716_v8  ;;  %v2722_v11 = vld [vmem:[%s3641_s1 + $0x14] ss:$8 sps:$4 sm:$0xff] (!%p163_p2)   ;;  %v2706_v12 = vld [vmem:[%s3641_s1 + $0x110] ss:$8 sps:$4 sm:$0xff] (!%p163_p2)   ;;  %v2707_v13 = vld [vmem:[%s3641_s1 + $0x124] ss:$8 sps:$4 sm:$0xff] (!%p163_p2)  }
   0xa   : > { %372 = vmatpush1.bf16.msra.mxu0 (!%p163_p2), %v2720_v10  ;;  %v2726_v14 = vld [vmem:[%s3641_s1 + $0x10] ss:$8 sps:$4 sm:$0xff] (!%p163_p2)   ;;  %v2728_v15 = vld [vmem:[%s3641_s1 + $0x24] ss:$8 sps:$4 sm:$0xff] (!%p163_p2)   ;;  %v2709_v16 = vld [vmem:[%s3641_s1 + $0x120] ss:$8 sps:$4 sm:$0xff] (!%p163_p2)  }
   0xb   : > { %578 = vmatpush1.bf16.msra.mxu1 (!%p163_p2), %v2697_v3  ;;  %373 = vmatprep.subr.bf16.mxu0 (!%p163_p2), %v2722_v11  ;;  %v2732_v17 = vld [vmem:[%s3641_s1 + $0x20] ss:$8 sps:$4 sm:$0xff] (!%p163_p2)   ;;  %v2734_v18 = vld [vmem:[%s3641_s1 + $0x34] ss:$8 sps:$4 sm:$0xff] (!%p163_p2)   ;;  %v2738_v20 = vld [vmem:[%s3641_s1 + $0x30] ss:$8 sps:$4 sm:$0xff] (!%p163_p2)  }
   0xc   : > { %579 = vmatprep.subr.bf16.mxu1 (!%p163_p2), %v2698_v4  ;;  %v2710_v19 = vld [vmem:[%s3641_s1 + $0x134] ss:$8 sps:$4 sm:$0xff] (!%p163_p2)   ;;  %vm367_vm0 = vcmask (!%p163_p2), 654336   ;;  %v2712_v21 = vld [vmem:[%s3641_s1 + $0x130] ss:$8 sps:$4 sm:$0xff] (!%p163_p2)   ;;  %vm636_vm1 = vcmask (!%p163_p2), 1044480  }
   0xd   : > { %s3650_s16 = smov (!%p188_p3, %s2235_s16), 1  ;;  %v2713_v22 = vld [vmem:[%s3641_s1 + $0x144] ss:$8 sps:$4 sm:$0xff]   ;;  %v2744_v25 = vld [vmem:[%s3641_s1 + $0x40] ss:$8 sps:$4 sm:$0xff]   ;;  %vm2938_vm2 = vmmov 1  }
   0xe   : > { %374 = vmatpush1.bf16.msra.mxu0 %v2726_v14  ;;  %s2600_s29 = sshll.u32 %s3650_s16, 4  ;;  %v2740_v23 = vld [vmem:[%s3641_s1 + $0x44] ss:$8 sps:$4 sm:$0xff]   ;;  %v2715_v26 = vld [vmem:[%s3641_s1 + $0x140] ss:$8 sps:$4 sm:$0xff]   ;;  %vm3382_vm3 = vmpackc.low %vm636_vm1, %vm2938_vm2  ;;  %vm623_vm4 = vcmask 105472  }
   0xf   : > { %580 = vmatpush1.bf16.msra.mxu1 %v2700_v5  ;;  %375 = vmatprep.subr.bf16.mxu0 %v2728_v15  ;;  %s3038_s10 = scalar_lea.vmem %s3640_s0, %s2600_s29  ;;  %v2748_v27 = vld [vmem:[%s3641_s1 + $0x54] ss:$8 sps:$4 sm:$0xff]   ;;  %v2721_v29 = vld [vmem:[%s3641_s1 + $0x150] ss:$8 sps:$4 sm:$0xff]   ;;  %v2755_v31 = vld [vmem:[%s3641_s1 + $0x64] ss:$8 sps:$4 sm:$0xff]  }
  0x10   : > { %581 = vmatprep.subr.bf16.mxu1 %v2701_v6  ;;  %v3053_v24 = vld [vmem:[%s3038_s10 + $0x4] ss:$8 sps:$4 sm:$0x7f]   ;;  %v2718_v28 = vld [vmem:[%s3641_s1 + $0x154] ss:$8 sps:$4 sm:$0xff]   ;;  %s2601_s25 = sshll.u32 %s3650_s16, 5 }
  0x11   : > { %2325 = vmatprep.mubr.msk.bf16.mxu1 %vm367_vm0, %v3053_v24  ;;  %2272 = vmatprep.mubr.msk.bf16.mxu0 %vm367_vm0, %v3053_v24  ;;  %v2754_v30 = vld [vmem:[%s3641_s1 + $0x50] ss:$8 sps:$4 sm:$0xff]   ;;  %v2724_v32 = vld [vmem:[%s3641_s1 + $0x164] ss:$8 sps:$4 sm:$0xff]   ;;  %v2760_v33 = vld [vmem:[%s3641_s1 + $0x60] ss:$8 sps:$4 sm:$0xff]   ;;  %s197_s28 = scalar_lea.vmem %s3644_s4, %s2601_s25 }
  0x12   : > { %376 = vmatpush1.bf16.msra.mxu0 %v2732_v17  ;;  %v2727_v34 = vld [vmem:[%s3641_s1 + $0x160] ss:$8 sps:$4 sm:$0xff]   ;;  %v2761_v35 = vld [vmem:[%s3641_s1 + $0x74] ss:$8 sps:$4 sm:$0xff]   ;;  %v2733_v37 = vld [vmem:[%s3641_s1 + $0x170] ss:$8 sps:$4 sm:$0xff]  }
  0x13   : > { %582 = vmatpush1.bf16.msra.mxu1 %v2703_v7  ;;  %377 = vmatprep.subr.bf16.mxu0 %v2734_v18  ;;  %v2730_v36 = vld [vmem:[%s3641_s1 + $0x174] ss:$8 sps:$4 sm:$0xff]   ;;  %v2766_v38 = vld [vmem:[%s3641_s1 + $0x70] ss:$8 sps:$4 sm:$0xff]   ;;  %v2767_v39 = vld [vmem:[%s3641_s1 + $0x84] ss:$8 sps:$4 sm:$0xff]  }
  0x14   : > { %583 = vmatprep.subr.bf16.mxu1 %v2704_v9  ;;  %v2736_v40 = vld [vmem:[%s3641_s1 + $0x184] ss:$8 sps:$4 sm:$0xff]   ;;  %v2772_v41 = vld [vmem:[%s3641_s1 + $0x80] ss:$8 sps:$4 sm:$0xff]   ;;  %v2773_v43 = vld [vmem:[%s3641_s1 + $0x94] ss:$8 sps:$4 sm:$0xff]  }
  0x15   : > { %v2739_v42 = vld [vmem:[%s3641_s1 + $0x180] ss:$8 sps:$4 sm:$0xff]   ;;  %v2742_v44 = vld [vmem:[%s3641_s1 + $0x194] ss:$8 sps:$4 sm:$0xff]   ;;  %v2778_v45 = vld [vmem:[%s3641_s1 + $0x90] ss:$8 sps:$4 sm:$0xff]  }
  0x16   : > { %378 = vmatpush1.bf16.msra.mxu0 %v2738_v20  ;;  %v2745_v46 = vld [vmem:[%s3641_s1 + $0x190] ss:$8 sps:$4 sm:$0xff]   ;;  %v2779_v47 = vld [vmem:[%s3641_s1 + $0xa4] ss:$8 sps:$4 sm:$0xff]   ;;  %v2751_v50 = vld [vmem:[%s3641_s1 + $0x1a0] ss:$8 sps:$4 sm:$0xff]  }
  0x17   : > { %584 = vmatpush1.bf16.msra.mxu1 %v2706_v12  ;;  %379 = vmatprep.subr.bf16.mxu0 %v2740_v23  ;;  %v2753_v48 = vld [vmem:[%s3641_s1 + $0x1a4] ss:$8 sps:$4 sm:$0xff]   ;;  %v3132_v49 = vld [vmem:[%s3038_s10] ss:$8 sps:$4 sm:$0x7f]   ;;  %vm2170_vm5 = vcmask 1043456  }
  0x18   : > { %585 = vmatprep.subr.bf16.mxu1 %v2707_v13  ;;  %v2784_v51 = vld [vmem:[%s3641_s1 + $0xa0] ss:$8 sps:$4 sm:$0xff]   ;;  %v2759_v52 = vld [vmem:[%s3641_s1 + $0x1b4] ss:$8 sps:$4 sm:$0xff]   ;;  %v2790_v54 = vld [vmem:[%s3641_s1 + $0xb0] ss:$8 sps:$4 sm:$0xff]  }
  0x19   : > { %v2785_v53 = vld [vmem:[%s3641_s1 + $0xb4] ss:$8 sps:$4 sm:$0xff]   ;;  %v2757_v55 = vld [vmem:[%s3641_s1 + $0x1b0] ss:$8 sps:$4 sm:$0xff]   ;;  %v2791_v56 = vld [vmem:[%s3641_s1 + $0xc4] ss:$8 sps:$4 sm:$0xff]  }
  0x1a   : > { %380 = vmatpush1.bf16.msra.mxu0 %v2744_v25  ;;  %v2765_v57 = vld [vmem:[%s3641_s1 + $0x1c4] ss:$8 sps:$4 sm:$0xff]   ;;  %v2796_v58 = vld [vmem:[%s3641_s1 + $0xc0] ss:$8 sps:$4 sm:$0xff]   ;;  %v2771_v60 = vld [vmem:[%s3641_s1 + $0x1d4] ss:$8 sps:$4 sm:$0xff]  }
  0x1b   : > { %586 = vmatpush1.bf16.msra.mxu1 %v2709_v16  ;;  %381 = vmatprep.subr.bf16.mxu0 %v2748_v27  ;;  %v2763_v59 = vld [vmem:[%s3641_s1 + $0x1c0] ss:$8 sps:$4 sm:$0xff]   ;;  %v2769_v61 = vld [vmem:[%s3641_s1 + $0x1d0] ss:$8 sps:$4 sm:$0xff]   ;;  %v2777_v62 = vld [vmem:[%s3641_s1 + $0x1e4] ss:$8 sps:$4 sm:$0xff]  }
  0x1c   : > { %587 = vmatprep.subr.bf16.mxu1 %v2710_v19  ;;  %v2775_v63 = vld [vmem:[%s3641_s1 + $0x1e0] ss:$8 sps:$4 sm:$0xff]   ;;  %v2783_v0 = vld [vmem:[%s3641_s1 + $0x1f4] ss:$8 sps:$4 sm:$0xff]   ;;  %v2781_v1 = vld [vmem:[%s3641_s1 + $0x1f0] ss:$8 sps:$4 sm:$0xff]  }
  0x1d   : > { %v2789_v2 = vld [vmem:[%s3641_s1 + $0x204] ss:$8 sps:$4 sm:$0xff]   ;;  %v2787_v3 = vld [vmem:[%s3641_s1 + $0x200] ss:$8 sps:$4 sm:$0xff]   ;;  %v2795_v4 = vld [vmem:[%s3641_s1 + $0x214] ss:$8 sps:$4 sm:$0xff]  }
  0x1e   : > { %382 = vmatpush1.bf16.msra.mxu0 %v2754_v30  ;;  %v2793_v5 = vld [vmem:[%s3641_s1 + $0x210] ss:$8 sps:$4 sm:$0xff]   ;;  %v2799_v6 = vld [vmem:[%s3641_s1 + $0x224] ss:$8 sps:$4 sm:$0xff]   ;;  %v2797_v7 = vld [vmem:[%s3641_s1 + $0x220] ss:$8 sps:$4 sm:$0xff]  }
  0x1f   : > { %588 = vmatpush1.bf16.msra.mxu1 %v2712_v21  ;;  %383 = vmatprep.subr.bf16.mxu0 %v2755_v31  ;;  %v2802_v8 = vld [vmem:[%s3641_s1 + $0x234] ss:$8 sps:$4 sm:$0xff]   ;;  %v2800_v9 = vld [vmem:[%s3641_s1 + $0x230] ss:$8 sps:$4 sm:$0xff]   ;;  %v2805_v10 = vld [vmem:[%s3641_s1 + $0x244] ss:$8 sps:$4 sm:$0xff]  }
  0x20   : > { %589 = vmatprep.subr.bf16.mxu1 %v2713_v22  ;;  %v2803_v11 = vld [vmem:[%s3641_s1 + $0x240] ss:$8 sps:$4 sm:$0xff]   ;;  %v2808_v12 = vld [vmem:[%s3641_s1 + $0x254] ss:$8 sps:$4 sm:$0xff]   ;;  %v2806_v13 = vld [vmem:[%s3641_s1 + $0x250] ss:$8 sps:$4 sm:$0xff]  }
  0x21   : > { %v2811_v14 = vld [vmem:[%s3641_s1 + $0x264] ss:$8 sps:$4 sm:$0xff]   ;;  %v2809_v15 = vld [vmem:[%s3641_s1 + $0x260] ss:$8 sps:$4 sm:$0xff]   ;;  %v2937_v16 = vmov 0.0   ;;  %vm2171_vm6 = vcmask 916484  }
  0x22   : > { %384 = vmatpush1.bf16.msra.mxu0 %v2760_v33  ;;  %v2812_v17 = vld [vmem:[%s3641_s1 + $0x340] ss:$8 sps:$4 sm:$0xff]   ;;  %v2814_v18 = vld [vmem:[%s3641_s1 + $0x344] ss:$8 sps:$4 sm:$0xff]   ;;  %v2815_v19 = vld [vmem:[%s3641_s1 + $0x350] ss:$8 sps:$4 sm:$0xff]  }
  0x23   : > { %590 = vmatpush1.bf16.msra.mxu1 %v2715_v26  ;;  %385 = vmatprep.subr.bf16.mxu0 %v2761_v35  ;;  %v2817_v20 = vld [vmem:[%s3641_s1 + $0x354] ss:$8 sps:$4 sm:$0xff]   ;;  %v2818_v21 = vld [vmem:[%s3641_s1 + $0x360] ss:$8 sps:$4 sm:$0xff]   ;;  %v2820_v22 = vld [vmem:[%s3641_s1 + $0x364] ss:$8 sps:$4 sm:$0xff]  }
  0x24   : > { %591 = vmatprep.subr.bf16.mxu1 %v2718_v28  ;;  %v2821_v23 = vld [vmem:[%s3641_s1 + $0x370] ss:$8 sps:$4 sm:$0xff]   ;;  %v2823_v25 = vld [vmem:[%s3641_s1 + $0x374] ss:$8 sps:$4 sm:$0xff]   ;;  %v2826_v26 = vld [vmem:[%s3641_s1 + $0x384] ss:$8 sps:$4 sm:$0xff]  }
  0x25   : > { %v2824_v27 = vld [vmem:[%s3641_s1 + $0x380] ss:$8 sps:$4 sm:$0xff]   ;;  %v2827_v28 = vld [vmem:[%s3641_s1 + $0x390] ss:$8 sps:$4 sm:$0xff]   ;;  %v2832_v31 = vld [vmem:[%s3641_s1 + $0x3a4] ss:$8 sps:$4 sm:$0xff]  }
  0x26   : > { %386 = vmatpush1.bf16.msra.mxu0 %v2766_v38  ;;  %v2830_v30 = vld [vmem:[%s3641_s1 + $0x3a0] ss:$8 sps:$4 sm:$0xff]   ;;  %v2838_v33 = vld [vmem:[%s3641_s1 + $0x3b4] ss:$8 sps:$4 sm:$0xff]   ;;  %v2844_v35 = vld [vmem:[%s3641_s1 + $0x3c4] ss:$8 sps:$4 sm:$0xff]  }
  0x27   : > { %592 = vmatpush1.bf16.msra.mxu1 %v2721_v29  ;;  %387 = vmatprep.subr.bf16.mxu0 %v2767_v39  ;;  %v2829_v29 = vld [vmem:[%s3641_s1 + $0x394] ss:$8 sps:$4 sm:$0xff]   ;;  %v2854_v38 = vld [vmem:[%s3641_s1 + $0x3e0] ss:$8 sps:$4 sm:$0xff]   ;;  %v2856_v39 = vld [vmem:[%s3641_s1 + $0x3e4] ss:$8 sps:$4 sm:$0xff]  }
  0x28   : > { %593 = vmatprep.subr.bf16.mxu1 %v2724_v32  ;;  %v2836_v32 = vld [vmem:[%s3641_s1 + $0x3b0] ss:$8 sps:$4 sm:$0xff]   ;;  %vm3627_vm7 = vmor %vm2171_vm6, %vm2170_vm5  ;;  %vm2176_vm8 = vcmask 1042432   ;;  %vm2177_vm9 = vcmask 915460  }
  0x29   : > { %vm2178_vm10 = vmor %vm2177_vm9, %vm2176_vm8 }
  0x2a   : > { %388 = vmatpush1.bf16.msra.mxu0 %v2772_v41  ;;  %v2862_v41 = vld [vmem:[%s3641_s1 + $0x3f4] ss:$8 sps:$4 sm:$0xff]  }
  0x2b   : > { %594 = vmatpush1.bf16.msra.mxu1 %v2727_v34  ;;  %389 = vmatprep.subr.bf16.mxu0 %v2773_v43  ;;  %v2842_v34 = vld [vmem:[%s3641_s1 + $0x3c0] ss:$8 sps:$4 sm:$0xff]   ;;  %v2868_v43 = vld [vmem:[%s3641_s1 + $0x404] ss:$8 sps:$4 sm:$0xff]  }
  0x2c   : > { %595 = vmatprep.subr.bf16.mxu1 %v2730_v36  ;;  %v2848_v36 = vld [vmem:[%s3641_s1 + $0x3d0] ss:$8 sps:$4 sm:$0xff]  }
  0x2e   : > { %390 = vmatpush1.bf16.msra.mxu0 %v2778_v45  ;;  %v2874_v45 = vld [vmem:[%s3641_s1 + $0x414] ss:$8 sps:$4 sm:$0xff]  }
  0x2f   : > { %596 = vmatpush1.bf16.msra.mxu1 %v2733_v37  ;;  %391 = vmatprep.subr.bf16.mxu0 %v2779_v47  ;;  %v2850_v37 = vld [vmem:[%s3641_s1 + $0x3d4] ss:$8 sps:$4 sm:$0xff]   ;;  %v2880_v47 = vld [vmem:[%s3641_s1 + $0x424] ss:$8 sps:$4 sm:$0xff]  }
  0x30   : > { %597 = vmatprep.subr.bf16.mxu1 %v2736_v40  ;;  %v2860_v40 = vld [vmem:[%s3641_s1 + $0x3f0] ss:$8 sps:$4 sm:$0xff]  }
  0x32   : > { %392 = vmatpush1.bf16.msra.mxu0 %v2784_v51  ;;  %v2890_v51 = vld [vmem:[%s3641_s1 + $0x440] ss:$8 sps:$4 sm:$0xff]  }
  0x33   : > { %598 = vmatpush1.bf16.msra.mxu1 %v2739_v42  ;;  %393 = vmatprep.subr.bf16.mxu0 %v2785_v53  ;;  %v2866_v42 = vld [vmem:[%s3641_s1 + $0x400] ss:$8 sps:$4 sm:$0xff]   ;;  %v2896_v53 = vld [vmem:[%s3641_s1 + $0x450] ss:$8 sps:$4 sm:$0xff]  }
  0x34   : > { %599 = vmatprep.subr.bf16.mxu1 %v2742_v44  ;;  %v2872_v44 = vld [vmem:[%s3641_s1 + $0x410] ss:$8 sps:$4 sm:$0xff]  }
  0x36   : > { %394 = vmatpush1.bf16.msra.mxu0 %v2790_v54  ;;  %v2898_v54 = vld [vmem:[%s3641_s1 + $0x454] ss:$8 sps:$4 sm:$0xff]  }
  0x37   : > { %600 = vmatpush1.bf16.msra.mxu1 %v2745_v46  ;;  %395 = vmatprep.subr.bf16.mxu0 %v2791_v56  ;;  %v2878_v46 = vld [vmem:[%s3641_s1 + $0x420] ss:$8 sps:$4 sm:$0xff]   ;;  %v2904_v56 = vld [vmem:[%s3641_s1 + $0x464] ss:$8 sps:$4 sm:$0xff]  }
  0x38   : > { %996 = vmatprep.subr.bf16.mxu1 %v2753_v48  ;;  %v2884_v48 = vld [vmem:[%s3641_s1 + $0x430] ss:$8 sps:$4 sm:$0xff]  }
  0x3a   : > { %608 = vmatmul.mubr.bf16.vlgmr.msra.gmra.mrb[0].mxu1 %v3132_v49  ;;  %396 = vmatpush1.bf16.msra.mxu0 %v2796_v58  ;;  %v2910_v58 = vld [vmem:[%s3641_s1 + $0x474] ss:$8 sps:$4 sm:$0xff]  }
  0x3b   : > { %997 = vmatpush1.bf16.msra.mxu1 %v2751_v50  ;;  %2394 = vmatprep.mubr.msk.bf16.mxu1 %vm367_vm0, %v3053_v24  ;;  %v2886_v50 = vld [vmem:[%s3641_s1 + $0x434] ss:$8 sps:$4 sm:$0xff]  }
  0x3c   : > { %998 = vmatprep.subr.bf16.mxu1 %v2759_v52  ;;  %v2892_v52 = vld [vmem:[%s3641_s1 + $0x444] ss:$8 sps:$4 sm:$0xff]  }
  0x3d   : > { %404 = vmatmul.mubr.bf16.vlgmr.msra.gmra.mrb[0].mxu0 %v3132_v49 }
  0x3e   : > { %707 = vmatprep.mubr.f32.mxu0 %v2937_v16 }
  0x3f   : > { %999 = vmatpush1.bf16.msra.mxu1 %v2757_v55  ;;  %v2902_v55 = vld [vmem:[%s3641_s1 + $0x460] ss:$8 sps:$4 sm:$0xff]  }
  0x40   : > { %1000 = vmatprep.subr.bf16.mxu1 %v2765_v57  ;;  %v2908_v57 = vld [vmem:[%s3641_s1 + $0x470] ss:$8 sps:$4 sm:$0xff]  }
  0x43   : > { %1001 = vmatpush1.bf16.msra.mxu1 %v2763_v59  ;;  %v2913_v59 = vld [vmem:[%s3641_s1 + $0x484] ss:$8 sps:$4 sm:$0xff]  }
  0x44   : > { %1002 = vmatprep.subr.bf16.mxu1 %v2771_v60  ;;  %v2911_v60 = vld [vmem:[%s3641_s1 + $0x480] ss:$8 sps:$4 sm:$0xff]  }
  0x47   : > { %1003 = vmatpush1.bf16.msra.mxu1 %v2769_v61  ;;  %v2916_v61 = vld [vmem:[%s3641_s1 + $0x494] ss:$8 sps:$4 sm:$0xff]  }
  0x48   : > { %1004 = vmatprep.subr.bf16.mxu1 %v2777_v62  ;;  %v2914_v62 = vld [vmem:[%s3641_s1 + $0x490] ss:$8 sps:$4 sm:$0xff]  }
  0x4b   : > { %1005 = vmatpush1.bf16.msra.mxu1 %v2775_v63  ;;  %v2919_v63 = vld [vmem:[%s3641_s1 + $0x4a4] ss:$8 sps:$4 sm:$0xff]  }
  0x4c   : > { %1006 = vmatprep.subr.bf16.mxu1 %v2783_v0  ;;  %v2917_v0 = vld [vmem:[%s3641_s1 + $0x4a0] ss:$8 sps:$4 sm:$0xff]  }
  0x4f   : > { %1007 = vmatpush1.bf16.msra.mxu1 %v2781_v1  ;;  %v2922_v1 = vld [vmem:[%s3641_s1 + $0x4b4] ss:$8 sps:$4 sm:$0xff]  }
  0x50   : > { %1008 = vmatprep.subr.bf16.mxu1 %v2789_v2  ;;  %v2920_v2 = vld [vmem:[%s3641_s1 + $0x4b0] ss:$8 sps:$4 sm:$0xff]  }
  0x53   : > { %1009 = vmatpush1.bf16.msra.mxu1 %v2787_v3 }
  0x54   : > { %1010 = vmatprep.subr.bf16.mxu1 %v2795_v4  ;;  %v2925_v4 = vld [vmem:[%s3641_s1 + $0x4c4] ss:$8 sps:$4 sm:$0xff]  }
  0x57   : > { %1011 = vmatpush1.bf16.msra.mxu1 %v2793_v5 }
  0x58   : > { %1012 = vmatprep.subr.bf16.mxu1 %v2799_v6 }
  0x5b   : > { %1013 = vmatpush1.bf16.msra.mxu1 %v2797_v7 }
  0x5c   : > { %1014 = vmatprep.subr.bf16.mxu1 %v2802_v8 }
  0x5f   : > { %1015 = vmatpush1.bf16.msra.mxu1 %v2800_v9  ;;  %v2584_v9 = vld [vmem:[%s3642_s2 + $0xa0] sm:$0xff] }
  0x60   : > { %1016 = vmatprep.subr.bf16.mxu1 %v2805_v10  ;;  %v2923_v10 = vld [vmem:[%s3641_s1 + $0x4c0] ss:$8 sps:$4 sm:$0xff]  }
  0x63   : > { %1017 = vmatpush1.bf16.msra.mxu1 %v2803_v11 }
  0x64   : > { %1018 = vmatprep.subr.bf16.mxu1 %v2808_v12  ;;  %v2928_v12 = vld [vmem:[%s3641_s1 + $0x4d4] ss:$8 sps:$4 sm:$0xff]  }
  0x67   : > { %1019 = vmatpush1.bf16.msra.mxu1 %v2806_v13  ;;  %v2326_v13 = vld [vmem:[%s3642_s2 + $0x20] sm:$0xff] }
  0x68   : > { %1020 = vmatprep.subr.bf16.mxu1 %v2811_v14  ;;  %v2926_v14 = vld [vmem:[%s3641_s1 + $0x4d0] ss:$8 sps:$4 sm:$0xff]  }
  0x6b   : > { %1021 = vmatpush1.bf16.msra.mxu1 %v2809_v15 }
  0x6c   : > { %1636 = vmatprep.subr.bf16.mxu1 %v2814_v18 }
  0x6e   : > { %1029 = vmatmul.mubr.bf16.vlgmr.msra.gmra.mrb[4].mxu1 %v3132_v49 }
  0x6f   : > { %2520 = vmatprep.mubr.msk.bf16.mxu1 %vm367_vm0, %v3053_v24  ;;  %1637 = vmatpush1.bf16.msra.mxu1 %v2812_v17  ;;  %v2327_v17 = vld [vmem:[%s3642_s2 + $0x28] sm:$0xff] }
  0x70   : > { %1638 = vmatprep.subr.bf16.mxu1 %v2817_v20 }
  0x73   : > { %1639 = vmatpush1.bf16.msra.mxu1 %v2815_v19 }
  0x74   : > { %1640 = vmatprep.subr.bf16.mxu1 %v2820_v22 }
  0x77   : > { %1641 = vmatpush1.bf16.msra.mxu1 %v2818_v21 }
  0x78   : > { %1642 = vmatprep.subr.bf16.mxu1 %v2823_v25  ;;  %v2329_v25 = vld [vmem:[%s3642_s2 + $0x38] sm:$0x3f] }
  0x7b   : > { %1643 = vmatpush1.bf16.msra.mxu1 %v2821_v23  ;;  %v2328_v23 = vld [vmem:[%s3642_s2 + $0x30] sm:$0xff] }
  0x7c   : > { %1644 = vmatprep.subr.bf16.mxu1 %v2826_v26  ;;  %v414_v26 = vld [vmem:[%s3642_s2] sm:$0xff] }
  0x7f   : > { %1645 = vmatpush1.bf16.msra.mxu1 %v2824_v27  ;;  %v415_v27 = vld [vmem:[%s3642_s2 + $0x8] sm:$0xff] }
  0x80   : > { %1646 = vmatprep.subr.bf16.mxu1 %v2829_v29  ;;  %v417_v29 = vld [vmem:[%s3642_s2 + $0x18] sm:$0x3f] }
  0x83   : > { %1647 = vmatpush1.bf16.msra.mxu1 %v2827_v28  ;;  %v416_v28 = vld [vmem:[%s3642_s2 + $0x10] sm:$0xff] }
  0x84   : > { %1648 = vmatprep.subr.bf16.mxu1 %v2832_v31 }
  0x87   : > { %1649 = vmatpush1.bf16.msra.mxu1 %v2830_v30 }
  0x88   : > { %1650 = vmatprep.subr.bf16.mxu1 %v2838_v33 }
  0x8b   : > { %1651 = vmatpush1.bf16.msra.mxu1 %v2836_v32 }
  0x8c   : > { %1652 = vmatprep.subr.bf16.mxu1 %v2844_v35 }
  0x8f   : > { %1653 = vmatpush1.bf16.msra.mxu1 %v2842_v34 }
  0x90   : > { %1654 = vmatprep.subr.bf16.mxu1 %v2850_v37  ;;  %v2833_v37 = vld [vmem:[%s3641_s1 + $0x270] ss:$8 sps:$4 sm:$0xff]  }
  0x93   : > { %1655 = vmatpush1.bf16.msra.mxu1 %v2848_v36  ;;  %v2835_v36 = vld [vmem:[%s3641_s1 + $0x274] ss:$8 sps:$4 sm:$0xff]  }
  0x94   : > { %1656 = vmatprep.subr.bf16.mxu1 %v2856_v39  ;;  %v2841_v39 = vld [vmem:[%s3641_s1 + $0x284] ss:$8 sps:$4 sm:$0xff]  }
  0x97   : > { %1657 = vmatpush1.bf16.msra.mxu1 %v2854_v38  ;;  %v2395_v38 = vld [vmem:[%s3642_s2 + $0x40] sm:$0xff] }
  0x98   : > { %1658 = vmatprep.subr.bf16.mxu1 %v2862_v41  ;;  %v2396_v41 = vld [vmem:[%s3642_s2 + $0x48] sm:$0xff] }
  0x9b   : > { %1659 = vmatpush1.bf16.msra.mxu1 %v2860_v40  ;;  %v2839_v40 = vld [vmem:[%s3641_s1 + $0x280] ss:$8 sps:$4 sm:$0xff]  }
  0x9c   : > { %1660 = vmatprep.subr.bf16.mxu1 %v2868_v43  ;;  %v2845_v43 = vld [vmem:[%s3641_s1 + $0x290] ss:$8 sps:$4 sm:$0xff]  }
  0x9f   : > { %1661 = vmatpush1.bf16.msra.mxu1 %v2866_v42  ;;  %v2847_v42 = vld [vmem:[%s3641_s1 + $0x294] ss:$8 sps:$4 sm:$0xff]  }
  0xa0   : > { %1956 = vmatprep.subr.bf16.mxu1 %v2874_v45  ;;  %v2853_v45 = vld [vmem:[%s3641_s1 + $0x2a4] ss:$8 sps:$4 sm:$0xff]  }
  0xa2   : > { %1669 = vmatmul.mubr.bf16.vlgmr.msra.gmra.mrb[8].mxu1 %v3132_v49 }
  0xa3   : > { %1957 = vmatpush1.bf16.msra.mxu1 %v2872_v44  ;;  %2583 = vmatprep.mubr.msk.bf16.mxu1 %vm367_vm0, %v3053_v24  ;;  %v2397_v44 = vld [vmem:[%s3642_s2 + $0x50] sm:$0xff] }
  0xa4   : > { %1958 = vmatprep.subr.bf16.mxu1 %v2880_v47  ;;  %v2398_v47 = vld [vmem:[%s3642_s2 + $0x58] sm:$0x3f] }
  0xa7   : > { %1959 = vmatpush1.bf16.msra.mxu1 %v2878_v46  ;;  %v2851_v46 = vld [vmem:[%s3641_s1 + $0x2a0] ss:$8 sps:$4 sm:$0xff]  }
  0xa8   : > { %1960 = vmatprep.subr.bf16.mxu1 %v2886_v50  ;;  %v2857_v50 = vld [vmem:[%s3641_s1 + $0x2b0] ss:$8 sps:$4 sm:$0xff]  }
  0xab   : > { %1961 = vmatpush1.bf16.msra.mxu1 %v2884_v48  ;;  %v2859_v48 = vld [vmem:[%s3641_s1 + $0x2b4] ss:$8 sps:$4 sm:$0xff]  }
  0xac   : > { %1962 = vmatprep.subr.bf16.mxu1 %v2892_v52  ;;  %v2863_v52 = vld [vmem:[%s3641_s1 + $0x2c0] ss:$8 sps:$4 sm:$0xff]  }
  0xaf   : > { %1963 = vmatpush1.bf16.msra.mxu1 %v2890_v51  ;;  %v2865_v51 = vld [vmem:[%s3641_s1 + $0x2c4] ss:$8 sps:$4 sm:$0xff]  }
  0xb0   : > { %1964 = vmatprep.subr.bf16.mxu1 %v2898_v54  ;;  %v2877_v54 = vld [vmem:[%s3641_s1 + $0x2e4] ss:$8 sps:$4 sm:$0xff]  }
  0xb3   : > { %1965 = vmatpush1.bf16.msra.mxu1 %v2896_v53  ;;  %v2871_v53 = vld [vmem:[%s3641_s1 + $0x2d4] ss:$8 sps:$4 sm:$0xff]  }
  0xb4   : > { %1966 = vmatprep.subr.bf16.mxu1 %v2904_v56  ;;  %v2883_v56 = vld [vmem:[%s3641_s1 + $0x2f4] ss:$8 sps:$4 sm:$0xff]  }
  0xb7   : > { %1967 = vmatpush1.bf16.msra.mxu1 %v2902_v55  ;;  %v2875_v55 = vld [vmem:[%s3641_s1 + $0x2e0] ss:$8 sps:$4 sm:$0xff]  }
  0xb8   : > { %1968 = vmatprep.subr.bf16.mxu1 %v2910_v58  ;;  %v2889_v58 = vld [vmem:[%s3641_s1 + $0x304] ss:$8 sps:$4 sm:$0xff]  }
  0xbb   : > { %1969 = vmatpush1.bf16.msra.mxu1 %v2908_v57  ;;  %v2881_v57 = vld [vmem:[%s3641_s1 + $0x2f0] ss:$8 sps:$4 sm:$0xff]  }
  0xbc   : > { %1970 = vmatprep.subr.bf16.mxu1 %v2913_v59  ;;  %v2887_v59 = vld [vmem:[%s3641_s1 + $0x300] ss:$8 sps:$4 sm:$0xff]  }
  0xbf   : > { %1971 = vmatpush1.bf16.msra.mxu1 %v2911_v60  ;;  %v2895_v60 = vld [vmem:[%s3641_s1 + $0x314] ss:$8 sps:$4 sm:$0xff]  }
  0xc0   : > { %1972 = vmatprep.subr.bf16.mxu1 %v2916_v61  ;;  %v2893_v61 = vld [vmem:[%s3641_s1 + $0x310] ss:$8 sps:$4 sm:$0xff]  }
  0xc3   : > { %1973 = vmatpush1.bf16.msra.mxu1 %v2914_v62  ;;  %v2901_v62 = vld [vmem:[%s3641_s1 + $0x324] ss:$8 sps:$4 sm:$0xff]  }
  0xc4   : > { %1974 = vmatprep.subr.bf16.mxu1 %v2919_v63  ;;  %v2899_v63 = vld [vmem:[%s3641_s1 + $0x320] ss:$8 sps:$4 sm:$0xff]  }
  0xc7   : > { %1975 = vmatpush1.bf16.msra.mxu1 %v2917_v0  ;;  %v2907_v0 = vld [vmem:[%s3641_s1 + $0x334] ss:$8 sps:$4 sm:$0xff]  }
  0xc8   : > { %1976 = vmatprep.subr.bf16.mxu1 %v2922_v1  ;;  %v2905_v1 = vld [vmem:[%s3641_s1 + $0x330] ss:$8 sps:$4 sm:$0xff]  }
  0xcb   : > { %1977 = vmatpush1.bf16.msra.mxu1 %v2920_v2 }
  0xcc   : > { %1978 = vmatprep.subr.bf16.mxu1 %v2925_v4 }
  0xcf   : > { %1979 = vmatpush1.bf16.msra.mxu1 %v2923_v10 }
  0xd0   : > { %1980 = vmatprep.subr.bf16.mxu1 %v2928_v12 }
  0xd3   : > { %1981 = vmatpush1.bf16.msra.mxu1 %v2926_v14 }
  0xd6   : > { %1989 = vmatmul.mubr.bf16.vlgmr.msra.gmra.mrb[12].mxu1 %v3132_v49 }
 0x10d   : > { %v609_v3 = vpop.f32.mrb[0].mxu1 }
 0x10e   : > { %v611_v5 = vpop.f32.mrb[1].mxu1 }
 0x10f   : > { %v613_v6 = vpop.f32.mrb[2].mxu1 }
 0x110   : > { %v2609_v7 = vpack.c.bf16 %v613_v6, %v609_v3  ;;  %v615_v8 = vpop.f32.mrb[3].mxu1  ;;  %v405_v15 = vpop.f32.mrb[0].mxu0 }
 0x111   : > { %v2606_v11 = vpack.c.bf16 %v615_v8, %v611_v5  ;;  %v407_v18 = vpop.f32.mrb[1].mxu0 }
 0x112   : > { %v409_v19 = vpop.f32.mrb[2].mxu0 }
 0x113   : > { %2608 = vmatprep.subr.msk.bf16.mxu0 %vm3382_vm3, %v2606_v11  ;;  %v2615_v20 = vpack.c.bf16 %v409_v19, %v405_v15  ;;  %v411_v21 = vpop.f32.mrb[3].mxu0 }
 0x114   : > { %2611 = vmatpush1.bf16.msk.msra.mxu0 %vm3382_vm3, %v2609_v7  ;;  %v2612_v22 = vpack.c.bf16 %v411_v21, %v407_v18  ;;  %v2458_v21 = vld [vmem:[%s3642_s2 + $0x60] sm:$0xff] }
 0x116   : > { %2614 = vmatprep.subr.msk.bf16.mxu0 %vm3382_vm3, %v2612_v22  ;;  %v2459_v22 = vld [vmem:[%s3642_s2 + $0x68] sm:$0xff] }
 0x117   : > { %2332 = vmatmul.mubr.msk.f32.vlgmr.msra.gmra.mrb[4].mxu0 %vm623_vm4, %v2326_v13 }
 0x118   : > { %713 = vmatprep.mubr.f32.mxu0 %v2937_v16  ;;  %2617 = vmatpush1.bf16.msk.msra.mxu0 %vm3382_vm3, %v2615_v20 }
 0x11b   : > { %2333 = vmatmul.mubr.msk.f32.gmra.mrb[6].mxu0 %vm623_vm4, %v2327_v17 }
 0x11c   : > { %719 = vmatprep.mubr.f32.mxu0 %v2937_v16 }
 0x11f   : > { %2334 = vmatmul.mubr.msk.f32.gmra.mrb[8].mxu0 %vm623_vm4, %v2328_v23  ;;  %v2460_v23 = vld [vmem:[%s3642_s2 + $0x70] sm:$0xff] }
 0x120   : > { %725 = vmatprep.mubr.f32.mxu0 %v2937_v16 }
 0x123   : > { %2335 = vmatmul.mubr.msk.f32.gmra.mrb[10].mxu0 %vm623_vm4, %v2329_v25  ;;  %v2461_v25 = vld [vmem:[%s3642_s2 + $0x78] sm:$0x3f] }
 0x124   : > { %814 = vmatprep.mubr.f32.mxu0 %v2937_v16 }
 0x127   : > { %2338 = vmatmul.mubr.msk.f32.vlgmr.msra.gmra.mrb[4].mxu0 %vm623_vm4, %v414_v26  ;;  %v2521_v26 = vld [vmem:[%s3642_s2 + $0x80] sm:$0xff] }
 0x128   : > { %820 = vmatprep.mubr.f32.mxu0 %v2937_v16 }
 0x12b   : > { %2339 = vmatmul.mubr.msk.f32.gmra.mrb[6].mxu0 %vm623_vm4, %v415_v27  ;;  %v2522_v27 = vld [vmem:[%s3642_s2 + $0x88] sm:$0xff] }
 0x12c   : > { %826 = vmatprep.mubr.f32.mxu0 %v2937_v16 }
 0x12f   : > { %2340 = vmatmul.mubr.msk.f32.gmra.mrb[8].mxu0 %vm623_vm4, %v416_v28  ;;  %v2523_v28 = vld [vmem:[%s3642_s2 + $0x90] sm:$0xff] }
 0x130   : > { %832 = vmatprep.mubr.f32.mxu0 %v2937_v16 }
 0x133   : > { %2341 = vmatmul.mubr.msk.f32.gmra.mrb[10].mxu0 %vm623_vm4, %v417_v29  ;;  %v2524_v29 = vld [vmem:[%s3642_s2 + $0x98] sm:$0x3f] }
 0x134   : > { %1126 = vmatprep.mubr.f32.mxu0 %v2937_v16 }
 0x141   : > { %v1030_v30 = vpop.f32.mrb[4].mxu1 }
 0x142   : > { %v1032_v31 = vpop.f32.mrb[5].mxu1 }
 0x143   : > { %v1034_v32 = vpop.f32.mrb[6].mxu1 }
 0x144   : > { %v2621_v33 = vpack.c.bf16 %v1034_v32, %v1030_v30  ;;  %v1036_v34 = vpop.f32.mrb[7].mxu1  ;;  %v2585_v30 = vld [vmem:[%s3642_s2 + $0xa8] sm:$0xff]  ;;  %v2587_v32 = vld [vmem:[%s3642_s2 + $0xb8] sm:$0x3f] }
 0x145   : > { %v2618_v35 = vpack.c.bf16 %v1036_v34, %v1032_v31  ;;  %v2586_v31 = vld [vmem:[%s3642_s2 + $0xb0] sm:$0xff] }
 0x147   : > { %2620 = vmatprep.subr.msk.bf16.mxu0 %vm3382_vm3, %v2618_v35 }
 0x148   : > { %2623 = vmatpush1.bf16.msk.msra.mxu0 %vm3382_vm3, %v2621_v33  ;;  %v2120_v33 = vlaneseq }
 0x149   : > { %1316 = vmatprep.subr.bf16.mxu0 %v2835_v36  ;;  %v199_v36 = vld [vmem:[%s3643_s3] sm:$0x3] }
 0x14a   : > { %v2121_v34 = vshrl.u32 %v2120_v33, 7 }
 0x14b   : > { %2401 = vmatmul.mubr.msk.f32.vlgmr.msra.gmra.mrb[4].mxu0 %vm623_vm4, %v2395_v38 }
 0x14c   : > { %1317 = vmatpush1.bf16.msra.mxu0 %v2833_v37  ;;  %1132 = vmatprep.mubr.f32.mxu0 %v2937_v16  ;;  %v2122_v35 = vsub.s32 0, %v2121_v34  ;;  %v2126_v37 = vsub.s32 1, %v2121_v34 }
 0x14d   : > { %1318 = vmatprep.subr.bf16.mxu0 %v2841_v39 }
 0x14e   : > { %v2123_v38 = vrot.slane %v199_v36, %v2122_v35  ;;  %v2127_v39 = vrot.slane %v199_v36, %v2126_v37 }
 0x14f   : > { %2402 = vmatmul.mubr.msk.f32.gmra.mrb[6].mxu0 %vm623_vm4, %v2396_v41 }
 0x150   : > { %1319 = vmatpush1.bf16.msra.mxu0 %v2839_v40  ;;  %1138 = vmatprep.mubr.f32.mxu0 %v2937_v16 }
 0x151   : > { %1320 = vmatprep.subr.bf16.mxu0 %v2847_v42 }
 0x153   : > { %2403 = vmatmul.mubr.msk.f32.gmra.mrb[8].mxu0 %vm623_vm4, %v2397_v44 }
 0x154   : > { %1321 = vmatpush1.bf16.msra.mxu0 %v2845_v43  ;;  %1144 = vmatprep.mubr.f32.mxu0 %v2937_v16 }
 0x155   : > { %1322 = vmatprep.subr.bf16.mxu0 %v2853_v45 }
 0x157   : > { %2404 = vmatmul.mubr.msk.f32.gmra.mrb[10].mxu0 %vm623_vm4, %v2398_v47 }
 0x158   : > { %1323 = vmatpush1.bf16.msra.mxu0 %v2851_v46  ;;  %2457 = vmatprep.mubr.msk.bf16.mxu0 %vm367_vm0, %v3053_v24  ;;  %v2869_v24 = vld [vmem:[%s3641_s1 + $0x2d0] ss:$8 sps:$4 sm:$0xff]  }
 0x159   : > { %1324 = vmatprep.subr.bf16.mxu0 %v2859_v48 }
 0x15c   : > { %1325 = vmatpush1.bf16.msra.mxu0 %v2857_v50 }
 0x15d   : > { %1326 = vmatprep.subr.bf16.mxu0 %v2865_v51 }
 0x160   : > { %1327 = vmatpush1.bf16.msra.mxu0 %v2863_v52 }
 0x161   : > { %1328 = vmatprep.subr.bf16.mxu0 %v2871_v53 }
 0x164   : > { %1329 = vmatpush1.bf16.msra.mxu0 %v2869_v24 }
 0x165   : > { %1330 = vmatprep.subr.bf16.mxu0 %v2877_v54 }
 0x168   : > { %1331 = vmatpush1.bf16.msra.mxu0 %v2875_v55 }
 0x169   : > { %1332 = vmatprep.subr.bf16.mxu0 %v2883_v56 }
 0x16c   : > { %1333 = vmatpush1.bf16.msra.mxu0 %v2881_v57 }
 0x16d   : > { %1334 = vmatprep.subr.bf16.mxu0 %v2889_v58 }
 0x170   : > { %1335 = vmatpush1.bf16.msra.mxu0 %v2887_v59 }
 0x171   : > { %1336 = vmatprep.subr.bf16.mxu0 %v2895_v60 }
 0x174   : > { %1337 = vmatpush1.bf16.msra.mxu0 %v2893_v61 }
 0x175   : > { %1338 = vmatprep.subr.bf16.mxu0 %v2901_v62  ;;  %v1670_v2 = vpop.f32.mrb[8].mxu1 }
 0x176   : > { %v1672_v3 = vpop.f32.mrb[9].mxu1 }
 0x177   : > { %v1674_v4 = vpop.f32.mrb[10].mxu1 }
 0x178   : > { %1339 = vmatpush1.bf16.msra.mxu0 %v2899_v63  ;;  %v2633_v5 = vpack.c.bf16 %v1674_v4, %v1670_v2  ;;  %v1676_v6 = vpop.f32.mrb[11].mxu1 }
 0x179   : > { %1340 = vmatprep.subr.bf16.mxu0 %v2907_v0  ;;  %v2630_v7 = vpack.c.bf16 %v1676_v6, %v1672_v3 }
 0x17c   : > { %1341 = vmatpush1.bf16.msra.mxu0 %v2905_v1 }
 0x17f   : > { %1349 = vmatmul.mubr.bf16.vlgmr.msra.gmra.mrb[12].mxu0 %v3132_v49 }
 0x180   : > { %1446 = vmatprep.mubr.f32.mxu0 %v2937_v16 }
 0x1a9   : > { %v1990_v8 = vpop.f32.mrb[12].mxu1 }
 0x1aa   : > { %v1992_v10 = vpop.f32.mrb[13].mxu1 }
 0x1ab   : > { %v1994_v11 = vpop.f32.mrb[14].mxu1 }
 0x1ac   : > { %v2639_v12 = vpack.c.bf16 %v1994_v11, %v1990_v8  ;;  %v1996_v13 = vpop.f32.mrb[15].mxu1 }
 0x1ad   : > { %v2636_v14 = vpack.c.bf16 %v1996_v13, %v1992_v10 }
 0x252   : > { %v1350_v15 = vpop.f32.mrb[12].mxu0 }
 0x253   : > { %v1352_v17 = vpop.f32.mrb[13].mxu0 }
 0x254   : > { %v1354_v18 = vpop.f32.mrb[14].mxu0 }
 0x255   : > { %v2627_v19 = vpack.c.bf16 %v1354_v18, %v1350_v15  ;;  %v1356_v20 = vpop.f32.mrb[15].mxu0 }
 0x256   : > { %v2624_v49 = vpack.c.bf16 %v1356_v20, %v1352_v17 }
 0x258   : > { %2626 = vmatprep.subr.msk.bf16.mxu0 %vm3382_vm3, %v2624_v49 }
 0x259   : > { %2629 = vmatpush1.bf16.msk.msra.mxu0 %vm3382_vm3, %v2627_v19 }
 0x25a   : > { %2632 = vmatprep.subr.msk.bf16.mxu0 %vm3382_vm3, %v2630_v7 }
 0x25c   : > { %2464 = vmatmul.mubr.msk.f32.vlgmr.msra.gmra.mrb[4].mxu0 %vm623_vm4, %v2458_v21 }
 0x25d   : > { %2635 = vmatpush1.bf16.msk.msra.mxu0 %vm3382_vm3, %v2633_v5  ;;  %1452 = vmatprep.mubr.f32.mxu0 %v2937_v16 }
 0x25e   : > { %2638 = vmatprep.subr.msk.bf16.mxu0 %vm3382_vm3, %v2636_v14 }
 0x260   : > { %2465 = vmatmul.mubr.msk.f32.gmra.mrb[6].mxu0 %vm623_vm4, %v2459_v22 }
 0x261   : > { %1458 = vmatprep.mubr.f32.mxu0 %v2937_v16 }
 0x264   : > { %2466 = vmatmul.mubr.msk.f32.gmra.mrb[8].mxu0 %vm623_vm4, %v2460_v23 }
 0x265   : > { %1464 = vmatprep.mubr.f32.mxu0 %v2937_v16 }
 0x268   : > { %2467 = vmatmul.mubr.msk.f32.gmra.mrb[10].mxu0 %vm623_vm4, %v2461_v25 }
 0x269   : > { %1766 = vmatprep.mubr.f32.mxu0 %v2937_v16 }
 0x26c   : > { %2527 = vmatmul.mubr.msk.f32.vlgmr.msra.gmra.mrb[4].mxu0 %vm623_vm4, %v2521_v26 }
 0x26d   : > { %1772 = vmatprep.mubr.f32.mxu0 %v2937_v16  ;;  %2641 = vmatpush1.bf16.msk.msra.mxu0 %vm3382_vm3, %v2639_v12 }
 0x270   : > { %2528 = vmatmul.mubr.msk.f32.gmra.mrb[6].mxu0 %vm623_vm4, %v2522_v27 }
 0x271   : > { %1778 = vmatprep.mubr.f32.mxu0 %v2937_v16 }
 0x274   : > { %2529 = vmatmul.mubr.msk.f32.gmra.mrb[8].mxu0 %vm623_vm4, %v2523_v28 }
 0x275   : > { %1784 = vmatprep.mubr.f32.mxu0 %v2937_v16 }
 0x278   : > { %2530 = vmatmul.mubr.msk.f32.gmra.mrb[10].mxu0 %vm623_vm4, %v2524_v29 }
 0x279   : > { %2086 = vmatprep.mubr.f32.mxu0 %v2937_v16 }
 0x27c   : > { %2590 = vmatmul.mubr.msk.f32.vlgmr.msra.gmra.mrb[4].mxu0 %vm623_vm4, %v2584_v9 }
 0x27d   : > { %2092 = vmatprep.mubr.f32.mxu0 %v2937_v16 }
 0x280   : > { %2591 = vmatmul.mubr.msk.f32.gmra.mrb[6].mxu0 %vm623_vm4, %v2585_v30 }
 0x281   : > { %2098 = vmatprep.mubr.f32.mxu0 %v2937_v16 }
 0x284   : > { %2592 = vmatmul.mubr.msk.f32.gmra.mrb[8].mxu0 %vm623_vm4, %v2586_v31 }
 0x285   : > { %2104 = vmatprep.mubr.f32.mxu0 %v2937_v16 }
 0x288   : > { %2593 = vmatmul.mubr.msk.f32.gmra.mrb[10].mxu0 %vm623_vm4, %v2587_v32 }
 0x34f   : > { %v2088_v40 = vpop.f32.mrb[4].mxu0 }
 0x350   : > { %v2130_v41 = vadd.f32 %v2123_v38, %v2088_v40  ;;  %v2090_v42 = vpop.f32.mrb[5].mxu0 }
 0x351   : > { %v2131_v16 = vadd.f32 %v2127_v39, %v2090_v42 }
 0x352   : > { %v2138_v43 = vmax.f32 %v2130_v41, 0.0 }
 0x353   : > { %v2139_v44 = vmax.f32 %v2131_v16, 0.0  ;;  %v2094_v45 = vpop.f32.mrb[6].mxu0 }
 0x354   : > { %v2132_v47 = vadd.f32 %v2123_v38, %v2094_v45  ;;  %v2096_v48 = vpop.f32.mrb[7].mxu0 }
 0x355   : > { %v2602_v50 = vpack.c.bf16 %v2139_v44, %v2138_v43  ;;  %v2133_v51 = vadd.f32 %v2127_v39, %v2096_v48 }
 0x356   : > { %v2140_v52 = vmax.f32 %v2132_v47, 0.0 }
 0x357   : > { %2173 = vst.msk [vmem:[%s197_s28] sm:$0xff] %vm3627_vm7, %v2602_v50  ;;  %v2141_v53 = vmax.f32 %v2133_v51, 0.0  ;;  %v2100_v24 = vpop.f32.mrb[8].mxu0 }
 0x358   : > { %v2134_v54 = vadd.f32 %v2123_v38, %v2100_v24  ;;  %v2102_v55 = vpop.f32.mrb[9].mxu0 }
 0x359   : > { %v2603_v56 = vpack.c.bf16 %v2141_v53, %v2140_v52  ;;  %v2135_v57 = vadd.f32 %v2127_v39, %v2102_v55 }
 0x35a   : > { %v2142_v58 = vmax.f32 %v2134_v54, 0.0 }
 0x35b   : > { %2174 = vst.msk [vmem:[%s197_s28 + $0x8] sm:$0xff] %vm3627_vm7, %v2603_v56  ;;  %v2143_v59 = vmax.f32 %v2135_v57, 0.0  ;;  %v2106_v60 = vpop.f32.mrb[10].mxu0 }
 0x35c   : > { %v2136_v61 = vadd.f32 %v2123_v38, %v2106_v60  ;;  %v2108_v62 = vpop.f32.mrb[11].mxu0 }
 0x35d   : > { %v2604_v63 = vpack.c.bf16 %v2143_v59, %v2142_v58  ;;  %v2137_v0 = vadd.f32 %v2127_v39, %v2108_v62 }
 0x35e   : > { %v2144_v1 = vmax.f32 %v2136_v61, 0.0 }
 0x35f   : > { %2175 = vst.msk [vmem:[%s197_s28 + $0x10] sm:$0xff] %vm3627_vm7, %v2604_v63  ;;  %v2145_v2 = vmax.f32 %v2137_v0, 0.0 }
 0x361   : > { %v2605_v3 = vpack.c.bf16 %v2145_v2, %v2144_v1 }
 0x363   : > { %2179 = vst.msk [vmem:[%s197_s28 + $0x18] sm:$0x77] %vm2178_vm10, %v2605_v3 }
 0x364 PF: > { %s14_s15 = sadd.s32 1, %s2935_s15  }
 0x365   : > { %p11_p4 = scmp.ge.s32.totalorder %s14_s15, 4  }
 0x367   :  { %13 = sbr.rel (!%p11_p4) target bundleno = 1 (0x1), region = 76 }

// kernel: conv_decoder_forward.7
= control target key start
LH: loop header
LB: loop body
LE: loop exit
PB: predicated region body
PF: predicated region fallthrough
CT: control target
= control target key end

     0   :  { %9 = vsyncpa [#allocation3], 0  ;;  %s4909_s0 = inlined_call_operand.vmem [shape: bf16[2,30,240], index: 0, kind: input, shape index: {}]   ;;  %s4910_s1 = inlined_call_operand.vmem [shape: bf16[6,240,192], index: 1, kind: input, shape index: {}]   ;;  %s4911_s2 = inlined_call_operand.vmem [shape: f32[6,64,30], index: 2, kind: input, shape index: {}]   ;;  %s4912_s3 = inlined_call_operand.vmem [shape: f32[1,192], index: 3, kind: input, shape index: {}]   ;;  %s4913_s4 = inlined_call_operand.hbm [shape: f32[2,3,64,64], index: 4, kind: output, shape index: {}]  }
   0x1   :  { %11 = vsyncpa [#allocation3 + $0x1], 0  ;;  %s3806_s15 = smov 0   ;;  %s3808_s16 = smov 0  }
   0x2   :  { %s3810_s17 = smov 0   ;;  %s3812_s18 = smov 0  }
   0x3 LB: > { %s3827_s19 = sadd.s32 4294967295, %s3773_s18   ;;  %s2769_s20 = sadd.s32 4294967294, %s3773_s18   ;;  %s3773_s18 = sphi %s3812_s18, %s4921_s18   ;;  %s3769_s17 = sphi %s3810_s17, %s4920_s17   ;;  %s3765_s16 = sphi %s3808_s16, %s4919_s16   ;;  %s3761_s15 = sphi %s3806_s15, %s4918_s15  }
   0x4   : > { %s3831_s21 = sadd.s32 1, %s3773_s18   ;;  %s113_s22 = sadd.s32 1, %s3769_s17 }
   0x5   : > { %s110_s23 = ssub.s32 %s3773_s18, %s3831_s21  ;;  %p123_p0 = scmp.ne.s32.totalorder %s3769_s17, %s3765_s16 }
   0x6   : > { %p111_p1 = scmp.eq.s32.totalorder %s110_s23, 0  ;;  %p124_p2 = scmp.eq.s32.totalorder %s3827_s19, 1 }
   0x7   : > { %p129_p3 = scmp.ne.s32.totalorder %s3765_s16, %s3761_s15  ;;  %p130_p4 = scmp.eq.s32.totalorder %s2769_s20, 1 }
   0x8   : > { %s3842_s24 = scalar_select %p111_p1, %s3769_s17, %s113_s22  }
   0x9   : > { %p3844_p5 = por %p124_p2, %p123_p0  ;;  %p3848_p6 = por %p130_p4, %p129_p3 }
   0xa   : > { %p2772_p7 = scmp.ge.s32.totalorder %s3773_s18, 1  ;;  %p165_p8 = scmp.lt.s32.totalorder %s3773_s18, 3 }
   0xc   : > { %p166_p9 = pnand %p2772_p7, %p165_p8 }
   0xd   : > { %v3431_v0 = vld [vmem:[%s4910_s1 + $0xf4] ss:$8 sps:$4 sm:$0xff] (!%p166_p9)   ;;  %v3433_v1 = vld [vmem:[%s4910_s1 + $0xf0] ss:$8 sps:$4 sm:$0xff] (!%p166_p9)   ;;  %v3434_v2 = vld [vmem:[%s4910_s1 + $0x104] ss:$8 sps:$4 sm:$0xff] (!%p166_p9)  }
   0xe   : > { %169 = sbr.rel (%p166_p9) target bundleno = 1343 (0x53f), region = 36  ;;  %649 = vmatprep.subr.bf16.mxu1 (!%p166_p9), %v3431_v0  ;;  %v3436_v3 = vld [vmem:[%s4910_s1 + $0x100] ss:$8 sps:$4 sm:$0xff] (!%p166_p9)   ;;  %v3437_v4 = vld [vmem:[%s4910_s1 + $0x114] ss:$8 sps:$4 sm:$0xff] (!%p166_p9)   ;;  %p191_p10 = scmp.lt.s32.totalorder (!%p166_p9), %s3827_s19, 1 }
   0xf   : > { %650 = vmatpush1.bf16.msra.mxu1 (!%p166_p9), %v3433_v1  ;;  %v3439_v5 = vld [vmem:[%s4910_s1 + $0x110] ss:$8 sps:$4 sm:$0xff] (!%p166_p9)   ;;  %v3440_v6 = vld [vmem:[%s4910_s1 + $0x124] ss:$8 sps:$4 sm:$0xff] (!%p166_p9)   ;;  %v3442_v7 = vld [vmem:[%s4910_s1 + $0x120] ss:$8 sps:$4 sm:$0xff] (!%p166_p9)  }
  0x10   : > { %651 = vmatprep.subr.bf16.mxu1 (!%p166_p9), %v3434_v2  ;;  %v3443_v8 = vld [vmem:[%s4910_s1 + $0x134] ss:$8 sps:$4 sm:$0xff] (!%p166_p9)   ;;  %v3445_v9 = vld [vmem:[%s4910_s1 + $0x130] ss:$8 sps:$4 sm:$0xff] (!%p166_p9)   ;;  %v3446_v10 = vld [vmem:[%s4910_s1 + $0x144] ss:$8 sps:$4 sm:$0xff] (!%p166_p9)  }
  0x11   : > { %v3448_v11 = vld [vmem:[%s4910_s1 + $0x140] ss:$8 sps:$4 sm:$0xff] (!%p166_p9)   ;;  %v3449_v12 = vld [vmem:[%s4910_s1 + $0x154] ss:$8 sps:$4 sm:$0xff] (!%p166_p9)   ;;  %vm400_vm0 = vcmask (!%p166_p9), 916480   ;;  %v3775_v41 = vmov (!%p166_p9), 0.0  }
  0x12   : > { %v3451_v14 = vld [vmem:[%s4910_s1 + $0x150] ss:$8 sps:$4 sm:$0xff] (!%p166_p9)   ;;  %v3452_v15 = vld [vmem:[%s4910_s1 + $0x164] ss:$8 sps:$4 sm:$0xff] (!%p166_p9)   ;;  %v3454_v16 = vld [vmem:[%s4910_s1 + $0x160] ss:$8 sps:$4 sm:$0xff] (!%p166_p9)  }
  0x13   : > { %652 = vmatpush1.bf16.msra.mxu1 (!%p166_p9), %v3436_v3  ;;  %v3455_v17 = vld [vmem:[%s4910_s1 + $0x174] ss:$8 sps:$4 sm:$0xff] (!%p166_p9)   ;;  %v3457_v18 = vld [vmem:[%s4910_s1 + $0x170] ss:$8 sps:$4 sm:$0xff] (!%p166_p9)   ;;  %v3458_v19 = vld [vmem:[%s4910_s1 + $0x184] ss:$8 sps:$4 sm:$0xff] (!%p166_p9)  }
  0x14   : > { %653 = vmatprep.subr.bf16.mxu1 (!%p166_p9), %v3437_v4  ;;  %v3460_v20 = vld [vmem:[%s4910_s1 + $0x180] ss:$8 sps:$4 sm:$0xff] (!%p166_p9)   ;;  %v3461_v21 = vld [vmem:[%s4910_s1 + $0x194] ss:$8 sps:$4 sm:$0xff] (!%p166_p9)   ;;  %v3463_v22 = vld [vmem:[%s4910_s1 + $0x190] ss:$8 sps:$4 sm:$0xff] (!%p166_p9)  }
  0x15   : > { %s192_s20 = scalar_select %p191_p10, %s3827_s19, 1  ;;  %v3464_v23 = vld [vmem:[%s4910_s1 + $0x1a4] ss:$8 sps:$4 sm:$0xff]   ;;  %v3466_v24 = vld [vmem:[%s4910_s1 + $0x1a0] ss:$8 sps:$4 sm:$0xff]   ;;  %vm736_vm1 = vcmask 1045504  }
  0x16   : > { %v3467_v25 = vld [vmem:[%s4910_s1 + $0x1b4] ss:$8 sps:$4 sm:$0xff]   ;;  %v3469_v26 = vld [vmem:[%s4910_s1 + $0x1b0] ss:$8 sps:$4 sm:$0xff]   ;;  %v3470_v27 = vld [vmem:[%s4910_s1 + $0x1c4] ss:$8 sps:$4 sm:$0xff]  }
  0x17   : > { %654 = vmatpush1.bf16.msra.mxu1 %v3439_v5  ;;  %s3240_s29 = sshll.u32 %s192_s20, 5  ;;  %v3472_v28 = vld [vmem:[%s4910_s1 + $0x1c0] ss:$8 sps:$4 sm:$0xff]   ;;  %v3473_v29 = vld [vmem:[%s4910_s1 + $0x1d4] ss:$8 sps:$4 sm:$0xff]   ;;  %vm3776_vm2 = vmmov 1  }
  0x18   : > { %655 = vmatprep.subr.bf16.mxu1 %v3440_v6  ;;  %s3892_s10 = scalar_lea.vmem %s4909_s0, %s3240_s29  ;;  %v3475_v30 = vld [vmem:[%s4910_s1 + $0x1d0] ss:$8 sps:$4 sm:$0xff]   ;;  %v3482_v34 = vld [vmem:[%s4910_s1 + $0x4] ss:$8 sps:$4 sm:$0xff]   ;;  %v3484_v35 = vld [vmem:[%s4910_s1] ss:$8 sps:$4 sm:$0xff]  }
  0x19   : > { %v3901_v13 = vld [vmem:[%s3892_s10 + $0x4] ss:$8 sps:$4 sm:$0xff]   ;;  %v3959_v31 = vld [vmem:[%s3892_s10] ss:$8 sps:$4 sm:$0xff]   ;;  %407 = vmatprep.subr.bf16.mxu0 %v3482_v34  ;;  %v3485_v36 = vld [vmem:[%s4910_s1 + $0x14] ss:$8 sps:$4 sm:$0xff]  }
  0x1a   : > { %2871 = vmatprep.mubr.msk.bf16.mxu1 %vm400_vm0, %v3901_v13  ;;  %2809 = vmatprep.mubr.msk.bf16.mxu0 %vm400_vm0, %v3901_v13  ;;  %v3962_v32 = vld [vmem:[%s3892_s10 + $0x14] ss:$8 sps:$4 sm:$0x7f]   ;;  %v3968_v33 = vld [vmem:[%s3892_s10 + $0x10] ss:$8 sps:$4 sm:$0x7f]   ;;  %vm4067_vm3 = vmpackc.low %vm736_vm1, %vm3776_vm2 }
  0x1b   : > { %656 = vmatpush1.bf16.msra.mxu1 %v3442_v7  ;;  %408 = vmatpush1.bf16.msra.mxu0 %v3484_v35  ;;  %v3487_v37 = vld [vmem:[%s4910_s1 + $0x10] ss:$8 sps:$4 sm:$0xff]   ;;  %v3488_v38 = vld [vmem:[%s4910_s1 + $0x24] ss:$8 sps:$4 sm:$0xff]   ;;  %v3490_v39 = vld [vmem:[%s4910_s1 + $0x20] ss:$8 sps:$4 sm:$0xff]  }
  0x1c   : > { %657 = vmatprep.subr.bf16.mxu1 %v3443_v8  ;;  %409 = vmatprep.subr.bf16.mxu0 %v3485_v36  ;;  %v3491_v40 = vld [vmem:[%s4910_s1 + $0x34] ss:$8 sps:$4 sm:$0xff]   ;;  %v3496_v42 = vld [vmem:[%s4910_s1 + $0x30] ss:$8 sps:$4 sm:$0xff]   ;;  %v3497_v43 = vld [vmem:[%s4910_s1 + $0x44] ss:$8 sps:$4 sm:$0xff]  }
  0x1d   : > { %v3502_v44 = vld [vmem:[%s4910_s1 + $0x40] ss:$8 sps:$4 sm:$0xff]   ;;  %v3503_v45 = vld [vmem:[%s4910_s1 + $0x54] ss:$8 sps:$4 sm:$0xff]   ;;  %v3508_v46 = vld [vmem:[%s4910_s1 + $0x50] ss:$8 sps:$4 sm:$0xff]  }
  0x1e   : > { %v3509_v47 = vld [vmem:[%s4910_s1 + $0x64] ss:$8 sps:$4 sm:$0xff]   ;;  %v3514_v48 = vld [vmem:[%s4910_s1 + $0x60] ss:$8 sps:$4 sm:$0xff]   ;;  %v3515_v49 = vld [vmem:[%s4910_s1 + $0x74] ss:$8 sps:$4 sm:$0xff]  }
  0x1f   : > { %658 = vmatpush1.bf16.msra.mxu1 %v3445_v9  ;;  %410 = vmatpush1.bf16.msra.mxu0 %v3487_v37  ;;  %v3520_v50 = vld [vmem:[%s4910_s1 + $0x70] ss:$8 sps:$4 sm:$0xff]   ;;  %v3521_v51 = vld [vmem:[%s4910_s1 + $0x84] ss:$8 sps:$4 sm:$0xff]   ;;  %v3526_v52 = vld [vmem:[%s4910_s1 + $0x80] ss:$8 sps:$4 sm:$0xff]  }
  0x20   : > { %659 = vmatprep.subr.bf16.mxu1 %v3446_v10  ;;  %411 = vmatprep.subr.bf16.mxu0 %v3488_v38  ;;  %v3527_v53 = vld [vmem:[%s4910_s1 + $0x94] ss:$8 sps:$4 sm:$0xff]   ;;  %v3532_v54 = vld [vmem:[%s4910_s1 + $0x90] ss:$8 sps:$4 sm:$0xff]   ;;  %v3533_v55 = vld [vmem:[%s4910_s1 + $0xa4] ss:$8 sps:$4 sm:$0xff]  }
  0x21   : > { %v3538_v56 = vld [vmem:[%s4910_s1 + $0xa0] ss:$8 sps:$4 sm:$0xff]   ;;  %v3539_v57 = vld [vmem:[%s4910_s1 + $0xb4] ss:$8 sps:$4 sm:$0xff]   ;;  %v3544_v58 = vld [vmem:[%s4910_s1 + $0xb0] ss:$8 sps:$4 sm:$0xff]  }
  0x22   : > { %v3545_v59 = vld [vmem:[%s4910_s1 + $0xc4] ss:$8 sps:$4 sm:$0xff]   ;;  %v3550_v60 = vld [vmem:[%s4910_s1 + $0xc0] ss:$8 sps:$4 sm:$0xff]   ;;  %v3551_v61 = vld [vmem:[%s4910_s1 + $0xd4] ss:$8 sps:$4 sm:$0xff]  }
  0x23   : > { %660 = vmatpush1.bf16.msra.mxu1 %v3448_v11  ;;  %412 = vmatpush1.bf16.msra.mxu0 %v3490_v39  ;;  %v3556_v62 = vld [vmem:[%s4910_s1 + $0xd0] ss:$8 sps:$4 sm:$0xff]   ;;  %v3557_v63 = vld [vmem:[%s4910_s1 + $0xe4] ss:$8 sps:$4 sm:$0xff]   ;;  %v3562_v0 = vld [vmem:[%s4910_s1 + $0xe0] ss:$8 sps:$4 sm:$0xff]  }
  0x24   : > { %661 = vmatprep.subr.bf16.mxu1 %v3449_v12  ;;  %413 = vmatprep.subr.bf16.mxu0 %v3491_v40  ;;  %vm711_vm4 = vcmask 244736   ;;  %v3523_v34 = vld [vmem:[%s4910_s1 + $0x230] ss:$8 sps:$4 sm:$0xff]   ;;  %v2878_v35 = vld [vmem:[%s4911_s2 + $0x68] sm:$0xff]  ;;  %v3537_v39 = vld [vmem:[%s4910_s1 + $0x254] ss:$8 sps:$4 sm:$0xff]  }
  0x25   : > { %v3531_v36 = vld [vmem:[%s4910_s1 + $0x244] ss:$8 sps:$4 sm:$0xff]   ;;  %v3529_v37 = vld [vmem:[%s4910_s1 + $0x240] ss:$8 sps:$4 sm:$0xff]   ;;  %v2879_v38 = vld [vmem:[%s4911_s2 + $0x70] sm:$0xff]  ;;  %s188_s11 = sand.u32 1, %s3765_s16  }
  0x26   : > { %v3535_v40 = vld [vmem:[%s4910_s1 + $0x250] ss:$8 sps:$4 sm:$0xff]   ;;  %v3128_v12 = vld [vmem:[%s4911_s2 + $0x128] sm:$0xff]  ;;  %s3385_s13 = smul.u32 192, %s188_s11  ;;  %vm2634_vm5 = vcmask 523264   ;;  %s3777_s20 = smov 64  }
  0x27   : > { %662 = vmatpush1.bf16.msra.mxu1 %v3451_v14  ;;  %414 = vmatpush1.bf16.msra.mxu0 %v3496_v42  ;;  %v2880_v42 = vld [vmem:[%s4911_s2 + $0x78] sm:$0xff]  ;;  %s3386_s22 = smul.u32 3072, %s3827_s19  ;;  %s4868_s19 = scalar_lea.sflag [#allocation3], %s188_s11 }
  0x28   : > { %663 = vmatprep.subr.bf16.mxu1 %v3452_v15  ;;  %415 = vmatprep.subr.bf16.mxu0 %v3497_v43  ;;  %v3495_v15 = vld [vmem:[%s4910_s1 + $0x1e4] ss:$8 sps:$4 sm:$0xff]   ;;  %s4771_s14 = scalar_lea.vmem [#allocation2], %s3385_s13  ;;  %s3778_s5 = smov [#allocation2]  }
  0x29   : > { %v3543_v43 = vld [vmem:[%s4910_s1 + $0x264] ss:$8 sps:$4 sm:$0xff]   ;;  %s2707_s23 = sshll.u32 %s4771_s14, 4  ;;  %s4858_s29 = scalar_lea.hbm %s4913_s4, %s3386_s22  ;;  %s4860_s23 = int_to_ptr.vmem [resolvable:$true] %s2707_s23 }
  0x2a   : > { %s3711_s30 = scalar_lea.vmem %s4860_s23, 3072  ;;  %s3715_s6 = sshll.u32 %s3778_s5, 4  ;;  %s3716_s6 = int_to_ptr.vmem [resolvable:$false] %s3715_s6 }
  0x2b   : > { %664 = vmatpush1.bf16.msra.mxu1 %v3454_v16  ;;  %416 = vmatpush1.bf16.msra.mxu0 %v3502_v44  ;;  %v2873_v16 = vld [vmem:[%s4911_s2 + $0x40] sm:$0xff]  ;;  %p3712_p11 = scmp.ne.s32.totalorder %s4860_s23, %s3711_s30  ;;  %s3717_s7 = scalar_lea.vmem %s3716_s6, 6144 }
  0x2c   : > { %665 = vmatprep.subr.bf16.mxu1 %v3455_v17  ;;  %417 = vmatprep.subr.bf16.mxu0 %v3503_v45  ;;  %v3493_v17 = vld [vmem:[%s4910_s1 + $0x1e0] ss:$8 sps:$4 sm:$0xff]   ;;  %v3549_v45 = vld [vmem:[%s4910_s1 + $0x274] ss:$8 sps:$4 sm:$0xff]   ;;  %p3718_p0 = scmp.lt.s32.totalorder %s4860_s23, %s3716_s6  ;;  %p3719_p1 = scmp.lt.s32.totalorder %s3717_s7, %s3711_s30 }
  0x2d   : > { %v3541_v44 = vld [vmem:[%s4910_s1 + $0x260] ss:$8 sps:$4 sm:$0xff]   ;;  %p3713_p12 = pnand %p3712_p11, %p3844_p5 }
  0x2e   : > { %p3720_p2 = por %p3719_p1, %p3718_p0 }
  0x2f   : > { %666 = vmatpush1.bf16.msra.mxu1 %v3457_v18  ;;  %418 = vmatpush1.bf16.msra.mxu0 %v3508_v46  ;;  %v3501_v18 = vld [vmem:[%s4910_s1 + $0x1f4] ss:$8 sps:$4 sm:$0xff]   ;;  %v3547_v46 = vld [vmem:[%s4910_s1 + $0x270] ss:$8 sps:$4 sm:$0xff]   ;;  %p3714_p13 = pneg %p3713_p12 }
  0x30   : > { %667 = vmatprep.subr.bf16.mxu1 %v3458_v19  ;;  %419 = vmatprep.subr.bf16.mxu0 %v3509_v47  ;;  %v3499_v19 = vld [vmem:[%s4910_s1 + $0x1f0] ss:$8 sps:$4 sm:$0xff]   ;;  %v3555_v47 = vld [vmem:[%s4910_s1 + $0x284] ss:$8 sps:$4 sm:$0xff]  }
  0x31   : > { %p3721_p3 = pnand %p3720_p2, %p3714_p13 }
  0x33   : > { %668 = vmatpush1.bf16.msra.mxu1 %v3460_v20  ;;  %420 = vmatpush1.bf16.msra.mxu0 %v3514_v48  ;;  %v2874_v20 = vld [vmem:[%s4911_s2 + $0x48] sm:$0xff] }
  0x34   : > { %669 = vmatprep.subr.bf16.mxu1 %v3461_v21  ;;  %421 = vmatprep.subr.bf16.mxu0 %v3515_v49  ;;  %v3507_v21 = vld [vmem:[%s4910_s1 + $0x204] ss:$8 sps:$4 sm:$0xff]   ;;  %v3553_v48 = vld [vmem:[%s4910_s1 + $0x280] ss:$8 sps:$4 sm:$0xff]   ;;  %v3561_v49 = vld [vmem:[%s4910_s1 + $0x294] ss:$8 sps:$4 sm:$0xff]  }
  0x37   : > { %670 = vmatpush1.bf16.msra.mxu1 %v3463_v22  ;;  %422 = vmatpush1.bf16.msra.mxu0 %v3520_v50  ;;  %v3505_v22 = vld [vmem:[%s4910_s1 + $0x200] ss:$8 sps:$4 sm:$0xff]   ;;  %v3559_v50 = vld [vmem:[%s4910_s1 + $0x290] ss:$8 sps:$4 sm:$0xff]  }
  0x38   : > { %671 = vmatprep.subr.bf16.mxu1 %v3464_v23  ;;  %423 = vmatprep.subr.bf16.mxu0 %v3521_v51  ;;  %v2875_v23 = vld [vmem:[%s4911_s2 + $0x50] sm:$0xff]  ;;  %v3565_v51 = vld [vmem:[%s4910_s1 + $0x2a4] ss:$8 sps:$4 sm:$0xff]  }
  0x3b   : > { %672 = vmatpush1.bf16.msra.mxu1 %v3466_v24  ;;  %424 = vmatpush1.bf16.msra.mxu0 %v3526_v52  ;;  %v3513_v24 = vld [vmem:[%s4910_s1 + $0x214] ss:$8 sps:$4 sm:$0xff]   ;;  %v3563_v52 = vld [vmem:[%s4910_s1 + $0x2a0] ss:$8 sps:$4 sm:$0xff]  }
  0x3c   : > { %673 = vmatprep.subr.bf16.mxu1 %v3467_v25  ;;  %425 = vmatprep.subr.bf16.mxu0 %v3527_v53  ;;  %v3511_v25 = vld [vmem:[%s4910_s1 + $0x210] ss:$8 sps:$4 sm:$0xff]   ;;  %v3568_v53 = vld [vmem:[%s4910_s1 + $0x2b4] ss:$8 sps:$4 sm:$0xff]  }
  0x3f   : > { %674 = vmatpush1.bf16.msra.mxu1 %v3469_v26  ;;  %426 = vmatpush1.bf16.msra.mxu0 %v3532_v54  ;;  %v2876_v26 = vld [vmem:[%s4911_s2 + $0x58] sm:$0xff] }
  0x40   : > { %675 = vmatprep.subr.bf16.mxu1 %v3470_v27  ;;  %427 = vmatprep.subr.bf16.mxu0 %v3533_v55  ;;  %v3519_v27 = vld [vmem:[%s4910_s1 + $0x224] ss:$8 sps:$4 sm:$0xff]   ;;  %v3566_v54 = vld [vmem:[%s4910_s1 + $0x2b0] ss:$8 sps:$4 sm:$0xff]  }
  0x41   : > { %v3571_v55 = vld [vmem:[%s4910_s1 + $0x2c4] ss:$8 sps:$4 sm:$0xff]  }
  0x43   : > { %676 = vmatpush1.bf16.msra.mxu1 %v3472_v28  ;;  %428 = vmatpush1.bf16.msra.mxu0 %v3538_v56  ;;  %v3517_v28 = vld [vmem:[%s4910_s1 + $0x220] ss:$8 sps:$4 sm:$0xff]  }
  0x44   : > { %677 = vmatprep.subr.bf16.mxu1 %v3473_v29  ;;  %429 = vmatprep.subr.bf16.mxu0 %v3539_v57  ;;  %v2877_v29 = vld [vmem:[%s4911_s2 + $0x60] sm:$0xff]  ;;  %v3574_v57 = vld [vmem:[%s4910_s1 + $0x2d4] ss:$8 sps:$4 sm:$0xff]  }
  0x45   : > { %v3569_v56 = vld [vmem:[%s4910_s1 + $0x2c0] ss:$8 sps:$4 sm:$0xff]  }
  0x47   : > { %678 = vmatpush1.bf16.msra.mxu1 %v3475_v30  ;;  %430 = vmatpush1.bf16.msra.mxu0 %v3544_v58  ;;  %v3525_v30 = vld [vmem:[%s4910_s1 + $0x234] ss:$8 sps:$4 sm:$0xff]   ;;  %v3572_v58 = vld [vmem:[%s4910_s1 + $0x2d0] ss:$8 sps:$4 sm:$0xff]  }
  0x48   : > { %431 = vmatprep.subr.bf16.mxu0 %v3545_v59  ;;  %v3577_v59 = vld [vmem:[%s4910_s1 + $0x2e4] ss:$8 sps:$4 sm:$0xff]  }
  0x4a   : > { %682 = vmatmul.mubr.bf16.vlgmr.msra.gmra.mrb[0].mxu1 %v3959_v31 }
  0x4b   : > { %2872 = vmatprep.mubr.msk.bf16.mxu1 %vm400_vm0, %v3962_v32  ;;  %432 = vmatpush1.bf16.msra.mxu0 %v3550_v60  ;;  %v3575_v60 = vld [vmem:[%s4910_s1 + $0x2e0] ss:$8 sps:$4 sm:$0xff]  }
  0x4c   : > { %433 = vmatprep.subr.bf16.mxu0 %v3551_v61  ;;  %v3580_v61 = vld [vmem:[%s4910_s1 + $0x2f4] ss:$8 sps:$4 sm:$0xff]  }
  0x4f   : > { %434 = vmatpush1.bf16.msra.mxu0 %v3556_v62  ;;  %v3578_v62 = vld [vmem:[%s4910_s1 + $0x2f0] ss:$8 sps:$4 sm:$0xff]  }
  0x50   : > { %435 = vmatprep.subr.bf16.mxu0 %v3557_v63  ;;  %v3583_v63 = vld [vmem:[%s4910_s1 + $0x304] ss:$8 sps:$4 sm:$0xff]  }
  0x52   : > { %692 = vmatmul.mubr.bf16.gmra.mrb[4].mxu1 %v3968_v33 }
  0x53   : > { %807 = vmatprep.mubr.f32.mxu1 %v3775_v41  ;;  %436 = vmatpush1.bf16.msra.mxu0 %v3562_v0  ;;  %v3581_v0 = vld [vmem:[%s4910_s1 + $0x300] ss:$8 sps:$4 sm:$0xff]  }
  0x56   : > { %440 = vmatmul.mubr.bf16.vlgmr.msra.gmra.mrb[0].mxu0 %v3959_v31 }
  0x57   : > { %2810 = vmatprep.mubr.msk.bf16.mxu0 %vm400_vm0, %v3962_v32 }
  0x5e   : > { %450 = vmatmul.mubr.bf16.gmra.mrb[4].mxu0 %v3968_v33 }
  0x5f   : > { %950 = vmatprep.mubr.f32.mxu0 %v3775_v41 }
 0x11d   : > { %v683_v1 = vpop.f32.mrb[0].mxu1 }
 0x11e   : > { %v685_v2 = vpop.f32.mrb[1].mxu1 }
 0x11f   : > { %v687_v3 = vpop.f32.mrb[2].mxu1 }
 0x120   : > { %v3243_v4 = vpack.c.bf16 %v687_v3, %v683_v1  ;;  %v689_v5 = vpop.f32.mrb[3].mxu1  ;;  %v3586_v1 = vld [vmem:[%s4910_s1 + $0x314] ss:$8 sps:$4 sm:$0xff]   ;;  %v3589_v3 = vld [vmem:[%s4910_s1 + $0x324] ss:$8 sps:$4 sm:$0xff]  }
 0x121   : > { %v3241_v6 = vpack.c.bf16 %v689_v5, %v685_v2  ;;  %v3584_v2 = vld [vmem:[%s4910_s1 + $0x310] ss:$8 sps:$4 sm:$0xff]   ;;  %v3592_v5 = vld [vmem:[%s4910_s1 + $0x334] ss:$8 sps:$4 sm:$0xff]  }
 0x123   : > { %3242 = vmatprep.subr.bf16.mxu1 %v3241_v6  ;;  %v3590_v6 = vld [vmem:[%s4910_s1 + $0x330] ss:$8 sps:$4 sm:$0xff]  }
 0x124   : > { %3244 = vmatpush1.bf16.msra.mxu1 %v3243_v4  ;;  %v3587_v4 = vld [vmem:[%s4910_s1 + $0x320] ss:$8 sps:$4 sm:$0xff]  }
 0x125   : > { %v693_v7 = vpop.f32.mrb[4].mxu1 }
 0x126   : > { %v695_v8 = vpop.f32.mrb[5].mxu1 }
 0x127   : > { %v697_v9 = vpop.f32.mrb[6].mxu1 }
 0x128   : > { %v3248_v10 = vpack.c.bf16 %v697_v9, %v693_v7  ;;  %v699_v11 = vpop.f32.mrb[7].mxu1  ;;  %v3595_v7 = vld [vmem:[%s4910_s1 + $0x344] ss:$8 sps:$4 sm:$0xff]   ;;  %v3598_v9 = vld [vmem:[%s4910_s1 + $0x354] ss:$8 sps:$4 sm:$0xff]  }
 0x129   : > { %v3245_v14 = vpack.c.bf16 %v699_v11, %v695_v8  ;;  %v3593_v8 = vld [vmem:[%s4910_s1 + $0x340] ss:$8 sps:$4 sm:$0xff]   ;;  %v3601_v11 = vld [vmem:[%s4910_s1 + $0x364] ss:$8 sps:$4 sm:$0xff]  }
 0x12b   : > { %3247 = vmatprep.subr.msk.bf16.mxu1 %vm4067_vm3, %v3245_v14  ;;  %v3599_v14 = vld [vmem:[%s4910_s1 + $0x360] ss:$8 sps:$4 sm:$0xff]  }
 0x12c   : > { %3250 = vmatpush1.bf16.msk.msra.mxu1 %vm4067_vm3, %v3248_v10  ;;  %v3596_v10 = vld [vmem:[%s4910_s1 + $0x350] ss:$8 sps:$4 sm:$0xff]  }
 0x12d   : > { %1180 = vmatprep.subr.bf16.mxu1 %v3495_v15  ;;  %v3604_v15 = vld [vmem:[%s4910_s1 + $0x374] ss:$8 sps:$4 sm:$0xff]  }
 0x12f   : > { %2883 = vmatmul.mubr.msk.f32.vlgmr.msra.gmra.mrb[8].mxu1 %vm711_vm4, %v2873_v16  ;;  %v3602_v16 = vld [vmem:[%s4910_s1 + $0x370] ss:$8 sps:$4 sm:$0xff]  }
 0x130   : > { %1181 = vmatpush1.bf16.msra.mxu1 %v3493_v17  ;;  %813 = vmatprep.mubr.f32.mxu1 %v3775_v41  ;;  %v3607_v17 = vld [vmem:[%s4910_s1 + $0x384] ss:$8 sps:$4 sm:$0xff]  }
 0x131   : > { %1182 = vmatprep.subr.bf16.mxu1 %v3501_v18  ;;  %v3605_v18 = vld [vmem:[%s4910_s1 + $0x380] ss:$8 sps:$4 sm:$0xff]  }
 0x133   : > { %2884 = vmatmul.mubr.msk.f32.gmra.mrb[10].mxu1 %vm711_vm4, %v2874_v20  ;;  %v3608_v20 = vld [vmem:[%s4910_s1 + $0x390] ss:$8 sps:$4 sm:$0xff]  }
 0x134   : > { %1183 = vmatpush1.bf16.msra.mxu1 %v3499_v19  ;;  %819 = vmatprep.mubr.f32.mxu1 %v3775_v41  ;;  %v3610_v19 = vld [vmem:[%s4910_s1 + $0x394] ss:$8 sps:$4 sm:$0xff]  }
 0x135   : > { %1184 = vmatprep.subr.bf16.mxu1 %v3507_v21  ;;  %v3613_v21 = vld [vmem:[%s4910_s1 + $0x3a4] ss:$8 sps:$4 sm:$0xff]  }
 0x137   : > { %2885 = vmatmul.mubr.msk.f32.gmra.mrb[12].mxu1 %vm711_vm4, %v2875_v23  ;;  %v3616_v23 = vld [vmem:[%s4910_s1 + $0x3b4] ss:$8 sps:$4 sm:$0xff]  }
 0x138   : > { %1185 = vmatpush1.bf16.msra.mxu1 %v3505_v22  ;;  %825 = vmatprep.mubr.f32.mxu1 %v3775_v41  ;;  %v3611_v22 = vld [vmem:[%s4910_s1 + $0x3a0] ss:$8 sps:$4 sm:$0xff]  }
 0x139   : > { %1186 = vmatprep.subr.bf16.mxu1 %v3513_v24  ;;  %v3614_v24 = vld [vmem:[%s4910_s1 + $0x3b0] ss:$8 sps:$4 sm:$0xff]  }
 0x13b   : > { %2886 = vmatmul.mubr.msk.f32.gmra.mrb[14].mxu1 %vm711_vm4, %v2876_v26 }
 0x13c   : > { %1187 = vmatpush1.bf16.msra.mxu1 %v3511_v25  ;;  %831 = vmatprep.mubr.f32.mxu1 %v3775_v41  ;;  %v441_v25 = vpop.f32.mrb[0].mxu0 }
 0x13d   : > { %1188 = vmatprep.subr.bf16.mxu1 %v3519_v27  ;;  %v443_v26 = vpop.f32.mrb[1].mxu0 }
 0x13e   : > { %v445_v27 = vpop.f32.mrb[2].mxu0 }
 0x13f   : > { %2887 = vmatmul.mubr.msk.f32.gmra.mrb[16].mxu1 %vm711_vm4, %v2877_v29  ;;  %v447_v29 = vpop.f32.mrb[3].mxu0 }
 0x140   : > { %1189 = vmatpush1.bf16.msra.mxu1 %v3517_v28  ;;  %837 = vmatprep.mubr.f32.mxu1 %v3775_v41  ;;  %v3253_v28 = vpack.c.bf16 %v445_v27, %v441_v25  ;;  %v3688_v25 = vld [vmem:[%s4910_s1 + $0x534] ss:$8 sps:$4 sm:$0xff]  }
 0x141   : > { %1190 = vmatprep.subr.bf16.mxu1 %v3525_v30  ;;  %v3251_v30 = vpack.c.bf16 %v447_v29, %v443_v26  ;;  %v3689_v29 = vld [vmem:[%s4910_s1 + $0x540] ss:$8 sps:$4 sm:$0xff]  }
 0x143   : > { %2888 = vmatmul.mubr.msk.f32.gmra.mrb[18].mxu1 %vm711_vm4, %v2878_v35  ;;  %3252 = vmatprep.subr.bf16.mxu0 %v3251_v30  ;;  %v3691_v30 = vld [vmem:[%s4910_s1 + $0x544] ss:$8 sps:$4 sm:$0xff]  }
 0x144   : > { %1191 = vmatpush1.bf16.msra.mxu1 %v3523_v34  ;;  %843 = vmatprep.mubr.f32.mxu1 %v3775_v41  ;;  %v451_v34 = vpop.f32.mrb[4].mxu0 }
 0x145   : > { %1192 = vmatprep.subr.bf16.mxu1 %v3531_v36  ;;  %3254 = vmatpush1.bf16.msra.mxu0 %v3253_v28  ;;  %v453_v35 = vpop.f32.mrb[5].mxu0 }
 0x146   : > { %v455_v36 = vpop.f32.mrb[6].mxu0 }
 0x147   : > { %2889 = vmatmul.mubr.msk.f32.gmra.mrb[20].mxu1 %vm711_vm4, %v2879_v38  ;;  %v457_v38 = vpop.f32.mrb[7].mxu0 }
 0x148   : > { %1193 = vmatpush1.bf16.msra.mxu1 %v3529_v37  ;;  %849 = vmatprep.mubr.f32.mxu1 %v3775_v41  ;;  %v3258_v37 = vpack.c.bf16 %v455_v36, %v451_v34  ;;  %v3694_v36 = vld [vmem:[%s4910_s1 + $0x554] ss:$8 sps:$4 sm:$0xff]  }
 0x149   : > { %1194 = vmatprep.subr.bf16.mxu1 %v3537_v39  ;;  %v3255_v39 = vpack.c.bf16 %v457_v38, %v453_v35  ;;  %v3692_v38 = vld [vmem:[%s4910_s1 + $0x550] ss:$8 sps:$4 sm:$0xff]  }
 0x14b   : > { %2890 = vmatmul.mubr.msk.f32.gmra.mrb[22].mxu1 %vm711_vm4, %v2880_v42  ;;  %3257 = vmatprep.subr.msk.bf16.mxu0 %vm4067_vm3, %v3255_v39  ;;  %v462_v42 = vld [vmem:[%s4911_s2 + $0x10] sm:$0xff]  ;;  %v2963_v39 = vld [vmem:[%s4911_s2 + $0x80] sm:$0xff] }
 0x14c   : > { %1195 = vmatpush1.bf16.msra.mxu1 %v3535_v40  ;;  %2961 = vmatprep.mubr.msk.bf16.mxu1 %vm400_vm0, %v3901_v13  ;;  %v461_v40 = vld [vmem:[%s4911_s2 + $0x8] sm:$0xff] }
 0x14d   : > { %1196 = vmatprep.subr.bf16.mxu1 %v3543_v43  ;;  %3260 = vmatpush1.bf16.msk.msra.mxu0 %vm4067_vm3, %v3258_v37  ;;  %v463_v43 = vld [vmem:[%s4911_s2 + $0x18] sm:$0xff] }
 0x150   : > { %1197 = vmatpush1.bf16.msra.mxu1 %v3541_v44  ;;  %v464_v44 = vld [vmem:[%s4911_s2 + $0x20] sm:$0xff] }
 0x151   : > { %1198 = vmatprep.subr.bf16.mxu1 %v3549_v45  ;;  %v465_v45 = vld [vmem:[%s4911_s2 + $0x28] sm:$0xff] }
 0x154   : > { %1199 = vmatpush1.bf16.msra.mxu1 %v3547_v46  ;;  %v466_v46 = vld [vmem:[%s4911_s2 + $0x30] sm:$0xff] }
 0x155   : > { %1200 = vmatprep.subr.bf16.mxu1 %v3555_v47  ;;  %v467_v47 = vld [vmem:[%s4911_s2 + $0x38] sm:$0xff] }
 0x158   : > { %1201 = vmatpush1.bf16.msra.mxu1 %v3553_v48 }
 0x159   : > { %1202 = vmatprep.subr.bf16.mxu1 %v3561_v49 }
 0x15c   : > { %1203 = vmatpush1.bf16.msra.mxu1 %v3559_v50 }
 0x15d   : > { %1204 = vmatprep.subr.bf16.mxu1 %v3565_v51 }
 0x160   : > { %1205 = vmatpush1.bf16.msra.mxu1 %v3563_v52 }
 0x161   : > { %1206 = vmatprep.subr.bf16.mxu1 %v3568_v53 }
 0x164   : > { %1207 = vmatpush1.bf16.msra.mxu1 %v3566_v54 }
 0x165   : > { %1208 = vmatprep.subr.bf16.mxu1 %v3571_v55 }
 0x168   : > { %1209 = vmatpush1.bf16.msra.mxu1 %v3569_v56 }
 0x169   : > { %1582 = vmatprep.subr.bf16.mxu1 %v3574_v57 }
 0x16b   : > { %1213 = vmatmul.mubr.bf16.vlgmr.msra.gmra.mrb[24].mxu1 %v3959_v31 }
 0x16c   : > { %1583 = vmatpush1.bf16.msra.mxu1 %v3572_v58  ;;  %2962 = vmatprep.mubr.msk.bf16.mxu1 %vm400_vm0, %v3962_v32 }
 0x16d   : > { %1584 = vmatprep.subr.bf16.mxu1 %v3577_v59 }
 0x170   : > { %1585 = vmatpush1.bf16.msra.mxu1 %v3575_v60 }
 0x171   : > { %1586 = vmatprep.subr.bf16.mxu1 %v3580_v61 }
 0x173   : > { %1223 = vmatmul.mubr.bf16.gmra.mrb[28].mxu1 %v3968_v33 }
 0x174   : > { %1587 = vmatpush1.bf16.msra.mxu1 %v3578_v62  ;;  %3041 = vmatprep.mubr.msk.bf16.mxu1 %vm400_vm0, %v3901_v13 }
 0x175   : > { %1588 = vmatprep.subr.bf16.mxu1 %v3583_v63 }
 0x178   : > { %1589 = vmatpush1.bf16.msra.mxu1 %v3581_v0  ;;  %v3638_v0 = vld [vmem:[%s4910_s1 + $0x4b0] ss:$8 sps:$4 sm:$0xff]  }
 0x179   : > { %1590 = vmatprep.subr.bf16.mxu1 %v3586_v1  ;;  %v3640_v1 = vld [vmem:[%s4910_s1 + $0x4b4] ss:$8 sps:$4 sm:$0xff]  }
 0x17c   : > { %1591 = vmatpush1.bf16.msra.mxu1 %v3584_v2  ;;  %v3644_v2 = vld [vmem:[%s4910_s1 + $0x4c0] ss:$8 sps:$4 sm:$0xff]  }
 0x17d   : > { %1592 = vmatprep.subr.bf16.mxu1 %v3589_v3  ;;  %v3646_v3 = vld [vmem:[%s4910_s1 + $0x4c4] ss:$8 sps:$4 sm:$0xff]  }
 0x180   : > { %1593 = vmatpush1.bf16.msra.mxu1 %v3587_v4  ;;  %v3650_v4 = vld [vmem:[%s4910_s1 + $0x4d0] ss:$8 sps:$4 sm:$0xff]  }
 0x181   : > { %1594 = vmatprep.subr.bf16.mxu1 %v3592_v5  ;;  %v3652_v5 = vld [vmem:[%s4910_s1 + $0x4d4] ss:$8 sps:$4 sm:$0xff]  }
 0x184   : > { %1595 = vmatpush1.bf16.msra.mxu1 %v3590_v6  ;;  %v3656_v6 = vld [vmem:[%s4910_s1 + $0x4e0] ss:$8 sps:$4 sm:$0xff]  }
 0x185   : > { %1596 = vmatprep.subr.bf16.mxu1 %v3595_v7  ;;  %v3658_v7 = vld [vmem:[%s4910_s1 + $0x4e4] ss:$8 sps:$4 sm:$0xff]  }
 0x188   : > { %1597 = vmatpush1.bf16.msra.mxu1 %v3593_v8  ;;  %v3662_v8 = vld [vmem:[%s4910_s1 + $0x4f0] ss:$8 sps:$4 sm:$0xff]  }
 0x189   : > { %1598 = vmatprep.subr.bf16.mxu1 %v3598_v9  ;;  %v3664_v9 = vld [vmem:[%s4910_s1 + $0x4f4] ss:$8 sps:$4 sm:$0xff]  }
 0x18c   : > { %1599 = vmatpush1.bf16.msra.mxu1 %v3596_v10  ;;  %v3668_v10 = vld [vmem:[%s4910_s1 + $0x500] ss:$8 sps:$4 sm:$0xff]  }
 0x18d   : > { %1600 = vmatprep.subr.bf16.mxu1 %v3601_v11  ;;  %v3670_v11 = vld [vmem:[%s4910_s1 + $0x504] ss:$8 sps:$4 sm:$0xff]  }
 0x190   : > { %1601 = vmatpush1.bf16.msra.mxu1 %v3599_v14  ;;  %v3674_v14 = vld [vmem:[%s4910_s1 + $0x510] ss:$8 sps:$4 sm:$0xff]  }
 0x191   : > { %1602 = vmatprep.subr.bf16.mxu1 %v3604_v15  ;;  %v3676_v15 = vld [vmem:[%s4910_s1 + $0x514] ss:$8 sps:$4 sm:$0xff]  }
 0x194   : > { %1603 = vmatpush1.bf16.msra.mxu1 %v3602_v16 }
 0x195   : > { %1604 = vmatprep.subr.bf16.mxu1 %v3607_v17 }
 0x198   : > { %1605 = vmatpush1.bf16.msra.mxu1 %v3605_v18 }
 0x199   : > { %1606 = vmatprep.subr.bf16.mxu1 %v3610_v19 }
 0x19c   : > { %1607 = vmatpush1.bf16.msra.mxu1 %v3608_v20 }
 0x19d   : > { %1608 = vmatprep.subr.bf16.mxu1 %v3613_v21  ;;  %v3680_v21 = vld [vmem:[%s4910_s1 + $0x520] ss:$8 sps:$4 sm:$0xff]  }
 0x1a0   : > { %1609 = vmatpush1.bf16.msra.mxu1 %v3611_v22  ;;  %v3682_v22 = vld [vmem:[%s4910_s1 + $0x524] ss:$8 sps:$4 sm:$0xff]  }
 0x1a1   : > { %1610 = vmatprep.subr.bf16.mxu1 %v3616_v23 }
 0x1a4   : > { %1611 = vmatpush1.bf16.msra.mxu1 %v3614_v24  ;;  %v3686_v24 = vld [vmem:[%s4910_s1 + $0x530] ss:$8 sps:$4 sm:$0xff]  }
 0x1a5   : > { %2386 = vmatprep.subr.bf16.mxu1 %v3640_v1  ;;  %v3706_v1 = vld [vmem:[%s4910_s1 + $0x594] ss:$8 sps:$4 sm:$0xff]  }
 0x1a7   : > { %1615 = vmatmul.mubr.bf16.vlgmr.msra.gmra.mrb[32].mxu1 %v3959_v31 }
 0x1a8   : > { %3042 = vmatprep.mubr.msk.bf16.mxu1 %vm400_vm0, %v3962_v32  ;;  %2387 = vmatpush1.bf16.msra.mxu1 %v3638_v0  ;;  %v2966_v0 = vld [vmem:[%s4911_s2 + $0x98] sm:$0xff] }
 0x1a9   : > { %2388 = vmatprep.subr.bf16.mxu1 %v3646_v3  ;;  %v2967_v3 = vld [vmem:[%s4911_s2 + $0xa0] sm:$0xff] }
 0x1ac   : > { %2389 = vmatpush1.bf16.msra.mxu1 %v3644_v2  ;;  %v3704_v2 = vld [vmem:[%s4910_s1 + $0x590] ss:$8 sps:$4 sm:$0xff]  }
 0x1ad   : > { %2390 = vmatprep.subr.bf16.mxu1 %v3652_v5  ;;  %v2969_v5 = vld [vmem:[%s4911_s2 + $0xb0] sm:$0xff] }
 0x1af   : > { %1625 = vmatmul.mubr.bf16.gmra.mrb[36].mxu1 %v3968_v33 }
 0x1b0   : > { %3201 = vmatprep.mubr.msk.bf16.mxu1 %vm400_vm0, %v3901_v13  ;;  %v460_v13 = vld [vmem:[%s4911_s2] sm:$0xff]  ;;  %2391 = vmatpush1.bf16.msra.mxu1 %v3650_v4  ;;  %v2968_v4 = vld [vmem:[%s4911_s2 + $0xa8] sm:$0xff] }
 0x1b1   : > { %2893 = vmatmul.mubr.msk.f32.vlgmr.msra.gmra.mrb[8].mxu0 %vm711_vm4, %v460_v13  ;;  %2392 = vmatprep.subr.bf16.mxu1 %v3658_v7  ;;  %v3695_v13 = vld [vmem:[%s4910_s1 + $0x560] ss:$8 sps:$4 sm:$0xff]  }
 0x1b2   : > { %956 = vmatprep.mubr.f32.mxu0 %v3775_v41 }
 0x1b4   : > { %2393 = vmatpush1.bf16.msra.mxu1 %v3656_v6  ;;  %v2970_v6 = vld [vmem:[%s4911_s2 + $0xb8] sm:$0xff] }
 0x1b5   : > { %2894 = vmatmul.mubr.msk.f32.gmra.mrb[10].mxu0 %vm711_vm4, %v461_v40  ;;  %2394 = vmatprep.subr.bf16.mxu1 %v3664_v9  ;;  %v3697_v40 = vld [vmem:[%s4910_s1 + $0x564] ss:$8 sps:$4 sm:$0xff]  }
 0x1b6   : > { %962 = vmatprep.mubr.f32.mxu0 %v3775_v41 }
 0x1b8   : > { %2395 = vmatpush1.bf16.msra.mxu1 %v3662_v8 }
 0x1b9   : > { %2895 = vmatmul.mubr.msk.f32.gmra.mrb[12].mxu0 %vm711_vm4, %v462_v42  ;;  %2396 = vmatprep.subr.bf16.mxu1 %v3670_v11  ;;  %v2964_v42 = vld [vmem:[%s4911_s2 + $0x88] sm:$0xff] }
 0x1ba   : > { %968 = vmatprep.mubr.f32.mxu0 %v3775_v41 }
 0x1bc   : > { %2397 = vmatpush1.bf16.msra.mxu1 %v3668_v10 }
 0x1bd   : > { %2896 = vmatmul.mubr.msk.f32.gmra.mrb[14].mxu0 %vm711_vm4, %v463_v43  ;;  %2398 = vmatprep.subr.bf16.mxu1 %v3676_v15  ;;  %v3700_v43 = vld [vmem:[%s4910_s1 + $0x574] ss:$8 sps:$4 sm:$0xff]  }
 0x1be   : > { %974 = vmatprep.mubr.f32.mxu0 %v3775_v41 }
 0x1c0   : > { %2399 = vmatpush1.bf16.msra.mxu1 %v3674_v14 }
 0x1c1   : > { %2897 = vmatmul.mubr.msk.f32.gmra.mrb[16].mxu0 %vm711_vm4, %v464_v44  ;;  %2400 = vmatprep.subr.bf16.mxu1 %v3682_v22  ;;  %v3698_v44 = vld [vmem:[%s4910_s1 + $0x570] ss:$8 sps:$4 sm:$0xff]  }
 0x1c2   : > { %980 = vmatprep.mubr.f32.mxu0 %v3775_v41  ;;  %v3620_v22 = vld [vmem:[%s4910_s1 + $0x3d0] ss:$8 sps:$4 sm:$0xff]  }
 0x1c4   : > { %2401 = vmatpush1.bf16.msra.mxu1 %v3680_v21  ;;  %v3622_v21 = vld [vmem:[%s4910_s1 + $0x3d4] ss:$8 sps:$4 sm:$0xff]  }
 0x1c5   : > { %2898 = vmatmul.mubr.msk.f32.gmra.mrb[18].mxu0 %vm711_vm4, %v465_v45  ;;  %2402 = vmatprep.subr.bf16.mxu1 %v3688_v25  ;;  %v2965_v45 = vld [vmem:[%s4911_s2 + $0x90] sm:$0xff]  ;;  %v3623_v25 = vld [vmem:[%s4910_s1 + $0x3e0] ss:$8 sps:$4 sm:$0xff]  }
 0x1c6   : > { %986 = vmatprep.mubr.f32.mxu0 %v3775_v41 }
 0x1c8   : > { %2403 = vmatpush1.bf16.msra.mxu1 %v3686_v24  ;;  %v3625_v24 = vld [vmem:[%s4910_s1 + $0x3e4] ss:$8 sps:$4 sm:$0xff]  }
 0x1c9   : > { %2899 = vmatmul.mubr.msk.f32.gmra.mrb[20].mxu0 %vm711_vm4, %v466_v46  ;;  %2404 = vmatprep.subr.bf16.mxu1 %v3691_v30  ;;  %v3703_v46 = vld [vmem:[%s4910_s1 + $0x584] ss:$8 sps:$4 sm:$0xff]  }
 0x1ca   : > { %992 = vmatprep.mubr.f32.mxu0 %v3775_v41  ;;  %v3631_v30 = vld [vmem:[%s4910_s1 + $0x404] ss:$8 sps:$4 sm:$0xff]  }
 0x1cc   : > { %2405 = vmatpush1.bf16.msra.mxu1 %v3689_v29  ;;  %v3046_v29 = vld [vmem:[%s4911_s2 + $0xd8] sm:$0xff] }
 0x1cd   : > { %2900 = vmatmul.mubr.msk.f32.gmra.mrb[22].mxu0 %vm711_vm4, %v467_v47  ;;  %2406 = vmatprep.subr.bf16.mxu1 %v3694_v36  ;;  %v3701_v47 = vld [vmem:[%s4910_s1 + $0x580] ss:$8 sps:$4 sm:$0xff]   ;;  %v3634_v36 = vld [vmem:[%s4910_s1 + $0x414] ss:$8 sps:$4 sm:$0xff]  }
 0x1ce   : > { %1336 = vmatprep.mubr.f32.mxu0 %v3775_v41 }
 0x1d0   : > { %2407 = vmatpush1.bf16.msra.mxu1 %v3692_v38  ;;  %v3048_v38 = vld [vmem:[%s4911_s2 + $0xe8] sm:$0xff] }
 0x1d1   : > { %2408 = vmatprep.subr.bf16.mxu1 %v3697_v40  ;;  %v3049_v40 = vld [vmem:[%s4911_s2 + $0xf0] sm:$0xff] }
 0x1d4   : > { %2409 = vmatpush1.bf16.msra.mxu1 %v3695_v13  ;;  %v3635_v13 = vld [vmem:[%s4910_s1 + $0x420] ss:$8 sps:$4 sm:$0xff]  }
 0x1d5   : > { %2410 = vmatprep.subr.bf16.mxu1 %v3700_v43  ;;  %v3641_v43 = vld [vmem:[%s4910_s1 + $0x430] ss:$8 sps:$4 sm:$0xff]  }
 0x1d8   : > { %2411 = vmatpush1.bf16.msra.mxu1 %v3698_v44  ;;  %v3050_v44 = vld [vmem:[%s4911_s2 + $0xf8] sm:$0xff] }
 0x1d9   : > { %2412 = vmatprep.subr.bf16.mxu1 %v3703_v46  ;;  %v3647_v46 = vld [vmem:[%s4910_s1 + $0x440] ss:$8 sps:$4 sm:$0xff]  }
 0x1dc   : > { %2413 = vmatpush1.bf16.msra.mxu1 %v3701_v47  ;;  %v3707_v47 = vld [vmem:[%s3892_s10 + $0x4] ss:$8 sps:$4 sm:$0xff]  }
 0x1dd   : > { %2414 = vmatprep.subr.bf16.mxu1 %v3706_v1  ;;  %v3653_v1 = vld [vmem:[%s4910_s1 + $0x450] ss:$8 sps:$4 sm:$0xff]  }
 0x1e0   : > { %2415 = vmatpush1.bf16.msra.mxu1 %v3704_v2  ;;  %v3661_v2 = vld [vmem:[%s4910_s1 + $0x464] ss:$8 sps:$4 sm:$0xff]  }
 0x1e3   : > { %2419 = vmatmul.mubr.bf16.vlgmr.msra.gmra.mrb[40].mxu1 %v3959_v31 }
 0x1e4   : > { %3202 = vmatprep.mubr.msk.bf16.mxu1 %vm400_vm0, %v3962_v32 }
 0x1eb   : > { %2429 = vmatmul.mubr.bf16.gmra.mrb[44].mxu1 %v3968_v33 }
 0x1ec   : > { %2584 = vmatprep.mubr.f32.mxu1 %v3775_v41 }
 0x202   : > { %v4352_v48 = vpop.f32.mrb[8].mxu1 }
 0x203   : > { %v4354_v49 = vpop.f32.mrb[9].mxu1 }
 0x206   : > { %v4356_v50 = vpop.f32.mrb[10].mxu1 }
 0x207   : > { %v4358_v51 = vpop.f32.mrb[11].mxu1 }
 0x20a   : > { %v4360_v52 = vpop.f32.mrb[12].mxu1 }
 0x20b   : > { %v4362_v53 = vpop.f32.mrb[13].mxu1 }
 0x20e   : > { %v4364_v54 = vpop.f32.mrb[14].mxu1 }
 0x20f   : > { %v4366_v55 = vpop.f32.mrb[15].mxu1 }
 0x212   : > { %v4368_v56 = vpop.f32.mrb[16].mxu1 }
 0x213   : > { %v4370_v57 = vpop.f32.mrb[17].mxu1 }
 0x216   : > { %v4372_v58 = vpop.f32.mrb[18].mxu1 }
 0x217   : > { %v4374_v59 = vpop.f32.mrb[19].mxu1 }
 0x21a   : > { %v4376_v60 = vpop.f32.mrb[20].mxu1 }
 0x21b   : > { %v4378_v61 = vpop.f32.mrb[21].mxu1 }
 0x21e   : > { %v4380_v62 = vpop.f32.mrb[22].mxu1 }
 0x21f   : > { %v4382_v63 = vpop.f32.mrb[23].mxu1 }
 0x23e   : > { %v1214_v16 = vpop.f32.mrb[24].mxu1 }
 0x23f   : > { %v1216_v17 = vpop.f32.mrb[25].mxu1 }
 0x240   : > { %v1218_v18 = vpop.f32.mrb[26].mxu1 }
 0x241   : > { %v3263_v19 = vpack.c.bf16 %v1218_v18, %v1214_v16  ;;  %v1220_v20 = vpop.f32.mrb[27].mxu1  ;;  %v3619_v18 = vld [vmem:[%s4910_s1 + $0x3c4] ss:$8 sps:$4 sm:$0xff]  }
 0x242   : > { %v3261_v23 = vpack.c.bf16 %v1220_v20, %v1216_v17  ;;  %v3043_v20 = vld [vmem:[%s4911_s2 + $0xc0] sm:$0xff] }
 0x244   : > { %3262 = vmatprep.subr.bf16.mxu0 %v3261_v23  ;;  %v3044_v23 = vld [vmem:[%s4911_s2 + $0xc8] sm:$0xff] }
 0x245   : > { %3264 = vmatpush1.bf16.msra.mxu0 %v3263_v19  ;;  %v3617_v19 = vld [vmem:[%s4910_s1 + $0x3c0] ss:$8 sps:$4 sm:$0xff]  }
 0x246   : > { %v1224_v26 = vpop.f32.mrb[28].mxu1 }
 0x247   : > { %v1226_v27 = vpop.f32.mrb[29].mxu1 }
 0x248   : > { %v1228_v28 = vpop.f32.mrb[30].mxu1 }
 0x249   : > { %v3268_v34 = vpack.c.bf16 %v1228_v28, %v1224_v26  ;;  %v1230_v35 = vpop.f32.mrb[31].mxu1  ;;  %v3045_v26 = vld [vmem:[%s4911_s2 + $0xd0] sm:$0xff] }
 0x24a   : > { %v3265_v37 = vpack.c.bf16 %v1230_v35, %v1226_v27  ;;  %v3628_v27 = vld [vmem:[%s4910_s1 + $0x3f4] ss:$8 sps:$4 sm:$0xff]   ;;  %v3626_v28 = vld [vmem:[%s4910_s1 + $0x3f0] ss:$8 sps:$4 sm:$0xff]   ;;  %v3047_v35 = vld [vmem:[%s4911_s2 + $0xe0] sm:$0xff] }
 0x24c   : > { %3267 = vmatprep.subr.msk.bf16.mxu0 %vm4067_vm3, %v3265_v37  ;;  %v3632_v37 = vld [vmem:[%s4910_s1 + $0x410] ss:$8 sps:$4 sm:$0xff]  }
 0x24d   : > { %3270 = vmatpush1.bf16.msk.msra.mxu0 %vm4067_vm3, %v3268_v34  ;;  %v3629_v34 = vld [vmem:[%s4910_s1 + $0x400] ss:$8 sps:$4 sm:$0xff]  }
 0x250   : > { %2973 = vmatmul.mubr.msk.f32.vlgmr.msra.gmra.mrb[8].mxu0 %vm711_vm4, %v2963_v39  ;;  %v3637_v39 = vld [vmem:[%s4910_s1 + $0x424] ss:$8 sps:$4 sm:$0xff]  }
 0x251   : > { %1342 = vmatprep.mubr.f32.mxu0 %v3775_v41 }
 0x254   : > { %2974 = vmatmul.mubr.msk.f32.gmra.mrb[10].mxu0 %vm711_vm4, %v2964_v42  ;;  %v3643_v42 = vld [vmem:[%s4910_s1 + $0x434] ss:$8 sps:$4 sm:$0xff]  }
 0x255   : > { %1348 = vmatprep.mubr.f32.mxu0 %v3775_v41 }
 0x258   : > { %2975 = vmatmul.mubr.msk.f32.gmra.mrb[12].mxu0 %vm711_vm4, %v2965_v45  ;;  %v3649_v45 = vld [vmem:[%s4910_s1 + $0x444] ss:$8 sps:$4 sm:$0xff]  }
 0x259   : > { %1354 = vmatprep.mubr.f32.mxu0 %v3775_v41 }
 0x25c   : > { %2976 = vmatmul.mubr.msk.f32.gmra.mrb[14].mxu0 %vm711_vm4, %v2966_v0  ;;  %v3655_v0 = vld [vmem:[%s4910_s1 + $0x454] ss:$8 sps:$4 sm:$0xff]  }
 0x25d   : > { %1360 = vmatprep.mubr.f32.mxu0 %v3775_v41 }
 0x260   : > { %2977 = vmatmul.mubr.msk.f32.gmra.mrb[16].mxu0 %vm711_vm4, %v2967_v3  ;;  %v3659_v3 = vld [vmem:[%s4910_s1 + $0x460] ss:$8 sps:$4 sm:$0xff]  }
 0x261   : > { %1366 = vmatprep.mubr.f32.mxu0 %v3775_v41 }
 0x264   : > { %2978 = vmatmul.mubr.msk.f32.gmra.mrb[18].mxu0 %vm711_vm4, %v2968_v4  ;;  %v3667_v4 = vld [vmem:[%s4910_s1 + $0x474] ss:$8 sps:$4 sm:$0xff]  }
 0x265   : > { %1372 = vmatprep.mubr.f32.mxu0 %v3775_v41 }
 0x268   : > { %2979 = vmatmul.mubr.msk.f32.gmra.mrb[20].mxu0 %vm711_vm4, %v2969_v5  ;;  %v3665_v5 = vld [vmem:[%s4910_s1 + $0x470] ss:$8 sps:$4 sm:$0xff]  }
 0x269   : > { %1378 = vmatprep.mubr.f32.mxu0 %v3775_v41 }
 0x26c   : > { %2980 = vmatmul.mubr.msk.f32.gmra.mrb[22].mxu0 %vm711_vm4, %v2970_v6  ;;  %v3673_v6 = vld [vmem:[%s4910_s1 + $0x484] ss:$8 sps:$4 sm:$0xff]  }
 0x26d   : > { %1738 = vmatprep.mubr.f32.mxu0 %v3775_v41 }
 0x27a   : > { %v1616_v31 = vpop.f32.mrb[32].mxu1 }
 0x27b   : > { %v1618_v32 = vpop.f32.mrb[33].mxu1 }
 0x27c   : > { %v1620_v7 = vpop.f32.mrb[34].mxu1 }
 0x27d   : > { %v3273_v8 = vpack.c.bf16 %v1620_v7, %v1616_v31  ;;  %v1622_v9 = vpop.f32.mrb[35].mxu1  ;;  %v3671_v31 = vld [vmem:[%s4910_s1 + $0x480] ss:$8 sps:$4 sm:$0xff]   ;;  %v3677_v7 = vld [vmem:[%s4910_s1 + $0x490] ss:$8 sps:$4 sm:$0xff]  }
 0x27e   : > { %v3271_v10 = vpack.c.bf16 %v1622_v9, %v1618_v32  ;;  %v3679_v32 = vld [vmem:[%s4910_s1 + $0x494] ss:$8 sps:$4 sm:$0xff]   ;;  %v3683_v9 = vld [vmem:[%s4910_s1 + $0x4a0] ss:$8 sps:$4 sm:$0xff]  }
 0x280   : > { %3272 = vmatprep.subr.bf16.mxu0 %v3271_v10  ;;  %v3708_v10 = vld [vmem:[%s3892_s10] ss:$8 sps:$4 sm:$0xff]  }
 0x281   : > { %3274 = vmatpush1.bf16.msra.mxu0 %v3273_v8  ;;  %v3685_v8 = vld [vmem:[%s4910_s1 + $0x4a4] ss:$8 sps:$4 sm:$0xff]  }
 0x282   : > { %v1626_v11 = vpop.f32.mrb[36].mxu1 }
 0x283   : > { %v1628_v14 = vpop.f32.mrb[37].mxu1 }
 0x284   : > { %v1630_v15 = vpop.f32.mrb[38].mxu1 }
 0x285   : > { %v3278_v16 = vpack.c.bf16 %v1630_v15, %v1626_v11  ;;  %v1632_v17 = vpop.f32.mrb[39].mxu1  ;;  %v3709_v11 = vld [vmem:[%s3892_s10 + $0x14] ss:$8 sps:$4 sm:$0x7f]  }
 0x286   : > { %v3275_v33 = vpack.c.bf16 %v1632_v17, %v1628_v14  ;;  %v3710_v14 = vld [vmem:[%s3892_s10 + $0x10] ss:$8 sps:$4 sm:$0x7f]  }
 0x288   : > { %3277 = vmatprep.subr.msk.bf16.mxu0 %vm4067_vm3, %v3275_v33 }
 0x289   : > { %3280 = vmatpush1.bf16.msk.msra.mxu0 %vm4067_vm3, %v3278_v16 }
 0x28a   : > { %1984 = vmatprep.subr.bf16.mxu0 %v3619_v18 }
 0x28c   : > { %3053 = vmatmul.mubr.msk.f32.vlgmr.msra.gmra.mrb[8].mxu0 %vm711_vm4, %v3043_v20 }
 0x28d   : > { %1985 = vmatpush1.bf16.msra.mxu0 %v3617_v19  ;;  %1744 = vmatprep.mubr.f32.mxu0 %v3775_v41 }
 0x28e   : > { %1986 = vmatprep.subr.bf16.mxu0 %v3622_v21 }
 0x290   : > { %3054 = vmatmul.mubr.msk.f32.gmra.mrb[10].mxu0 %vm711_vm4, %v3044_v23 }
 0x291   : > { %1987 = vmatpush1.bf16.msra.mxu0 %v3620_v22  ;;  %1750 = vmatprep.mubr.f32.mxu0 %v3775_v41 }
 0x292   : > { %1988 = vmatprep.subr.bf16.mxu0 %v3625_v24 }
 0x294   : > { %3055 = vmatmul.mubr.msk.f32.gmra.mrb[12].mxu0 %vm711_vm4, %v3045_v26  ;;  %v3210_v26 = vld [vmem:[%s4911_s2 + $0x178] sm:$0xff] }
 0x295   : > { %1989 = vmatpush1.bf16.msra.mxu0 %v3623_v25  ;;  %1756 = vmatprep.mubr.f32.mxu0 %v3775_v41 }
 0x296   : > { %1990 = vmatprep.subr.bf16.mxu0 %v3628_v27 }
 0x298   : > { %3056 = vmatmul.mubr.msk.f32.gmra.mrb[14].mxu0 %vm711_vm4, %v3046_v29 }
 0x299   : > { %1991 = vmatpush1.bf16.msra.mxu0 %v3626_v28  ;;  %1762 = vmatprep.mubr.f32.mxu0 %v3775_v41 }
 0x29a   : > { %1992 = vmatprep.subr.bf16.mxu0 %v3631_v30 }
 0x29c   : > { %3057 = vmatmul.mubr.msk.f32.gmra.mrb[16].mxu0 %vm711_vm4, %v3047_v35 }
 0x29d   : > { %1993 = vmatpush1.bf16.msra.mxu0 %v3629_v34  ;;  %1768 = vmatprep.mubr.f32.mxu0 %v3775_v41 }
 0x29e   : > { %1994 = vmatprep.subr.bf16.mxu0 %v3634_v36 }
 0x2a0   : > { %3058 = vmatmul.mubr.msk.f32.gmra.mrb[18].mxu0 %vm711_vm4, %v3048_v38 }
 0x2a1   : > { %1995 = vmatpush1.bf16.msra.mxu0 %v3632_v37  ;;  %1774 = vmatprep.mubr.f32.mxu0 %v3775_v41 }
 0x2a2   : > { %1996 = vmatprep.subr.bf16.mxu0 %v3637_v39 }
 0x2a4   : > { %3059 = vmatmul.mubr.msk.f32.gmra.mrb[20].mxu0 %vm711_vm4, %v3049_v40 }
 0x2a5   : > { %1997 = vmatpush1.bf16.msra.mxu0 %v3635_v13  ;;  %1780 = vmatprep.mubr.f32.mxu0 %v3775_v41 }
 0x2a6   : > { %1998 = vmatprep.subr.bf16.mxu0 %v3643_v42  ;;  %v3123_v42 = vld [vmem:[%s4911_s2 + $0x100] sm:$0xff] }
 0x2a8   : > { %3060 = vmatmul.mubr.msk.f32.gmra.mrb[22].mxu0 %vm711_vm4, %v3050_v44  ;;  %v3125_v44 = vld [vmem:[%s4911_s2 + $0x110] sm:$0xff] }
 0x2a9   : > { %1999 = vmatpush1.bf16.msra.mxu0 %v3641_v43  ;;  %3121 = vmatprep.mubr.msk.bf16.mxu0 %vm400_vm0, %v3707_v47  ;;  %v3124_v43 = vld [vmem:[%s4911_s2 + $0x108] sm:$0xff]  ;;  %v3129_v47 = vld [vmem:[%s4911_s2 + $0x130] sm:$0xff] }
 0x2aa   : > { %2000 = vmatprep.subr.bf16.mxu0 %v3649_v45  ;;  %v3126_v45 = vld [vmem:[%s4911_s2 + $0x118] sm:$0xff] }
 0x2ad   : > { %2001 = vmatpush1.bf16.msra.mxu0 %v3647_v46  ;;  %v3127_v46 = vld [vmem:[%s4911_s2 + $0x120] sm:$0xff] }
 0x2ae   : > { %2002 = vmatprep.subr.bf16.mxu0 %v3655_v0  ;;  %v3130_v0 = vld [vmem:[%s4911_s2 + $0x138] sm:$0xff] }
 0x2b1   : > { %2003 = vmatpush1.bf16.msra.mxu0 %v3653_v1  ;;  %v3203_v1 = vld [vmem:[%s4911_s2 + $0x140] sm:$0xff] }
 0x2b2   : > { %2004 = vmatprep.subr.bf16.mxu0 %v3661_v2  ;;  %v3204_v2 = vld [vmem:[%s4911_s2 + $0x148] sm:$0xff] }
 0x2b5   : > { %2005 = vmatpush1.bf16.msra.mxu0 %v3659_v3  ;;  %v3205_v3 = vld [vmem:[%s4911_s2 + $0x150] sm:$0xff] }
 0x2b6   : > { %2006 = vmatprep.subr.bf16.mxu0 %v3667_v4  ;;  %v2420_v15 = vpop.f32.mrb[40].mxu1  ;;  %v3206_v4 = vld [vmem:[%s4911_s2 + $0x158] sm:$0xff] }
 0x2b7   : > { %v2422_v16 = vpop.f32.mrb[41].mxu1 }
 0x2b8   : > { %v2424_v17 = vpop.f32.mrb[42].mxu1 }
 0x2b9   : > { %2007 = vmatpush1.bf16.msra.mxu0 %v3665_v5  ;;  %v3293_v33 = vpack.c.bf16 %v2424_v17, %v2420_v15  ;;  %v2426_v18 = vpop.f32.mrb[43].mxu1  ;;  %v3207_v5 = vld [vmem:[%s4911_s2 + $0x160] sm:$0xff] }
 0x2ba   : > { %2008 = vmatprep.subr.bf16.mxu0 %v3673_v6  ;;  %v3291_v19 = vpack.c.bf16 %v2426_v18, %v2422_v16  ;;  %v3208_v6 = vld [vmem:[%s4911_s2 + $0x168] sm:$0xff] }
 0x2bc   : > { %3301 = vmatprep.subr.bf16.mxu1 %v3291_v19 }
 0x2bd   : > { %2009 = vmatpush1.bf16.msra.mxu0 %v3671_v31  ;;  %3303 = vmatpush1.bf16.msra.mxu1 %v3293_v33  ;;  %v3209_v31 = vld [vmem:[%s4911_s2 + $0x170] sm:$0xff] }
 0x2be   : > { %2010 = vmatprep.subr.bf16.mxu0 %v3679_v32  ;;  %v2430_v20 = vpop.f32.mrb[44].mxu1 }
 0x2bf   : > { %v2432_v21 = vpop.f32.mrb[45].mxu1 }
 0x2c0   : > { %v2434_v22 = vpop.f32.mrb[46].mxu1 }
 0x2c1   : > { %2011 = vmatpush1.bf16.msra.mxu0 %v3677_v7  ;;  %v3298_v23 = vpack.c.bf16 %v2434_v22, %v2430_v20  ;;  %v2436_v24 = vpop.f32.mrb[47].mxu1 }
 0x2c2   : > { %2012 = vmatprep.subr.bf16.mxu0 %v3685_v8  ;;  %v3295_v25 = vpack.c.bf16 %v2436_v24, %v2432_v21  ;;  %v2608_v8 = vlaneseq }
 0x2c4   : > { %3302 = vmatprep.subr.msk.bf16.mxu1 %vm4067_vm3, %v3295_v25 }
 0x2c5   : > { %2013 = vmatpush1.bf16.msra.mxu0 %v3683_v9  ;;  %3304 = vmatpush1.bf16.msk.msra.mxu1 %vm4067_vm3, %v3298_v23  ;;  %v2609_v9 = vshrl.u32 %v2608_v8, 7 }
 0x2c8   : > { %2017 = vmatmul.mubr.bf16.vlgmr.msra.gmra.mrb[24].mxu0 %v3708_v10  ;;  %3220 = vmatmul.mubr.msk.f32.vlgmr.msra.gmra.mrb[48].mxu1 %vm711_vm4, %v3210_v26  ;;  %v2610_v10 = vsub.s32 0, %v2609_v9 }
 0x2c9   : > { %3122 = vmatprep.mubr.msk.bf16.mxu0 %vm400_vm0, %v3709_v11  ;;  %v197_v11 = vld [vmem:[%s4912_s3] sm:$0x3] }
 0x2ca   : > { %v4760_v17 = vrot.slane %v197_v11, %v2610_v10 }
 0x2d0   : > { %2027 = vmatmul.mubr.bf16.gmra.mrb[28].mxu0 %v3710_v14  ;;  %v2614_v14 = vsub.s32 1, %v2609_v9 }
 0x2d1   : > { %2140 = vmatprep.mubr.f32.mxu0 %v3775_v41 }
 0x2d2   : > { %v4763_v18 = vrot.slane %v197_v11, %v2614_v14 }
 0x39b   : > { %v2018_v27 = vpop.f32.mrb[24].mxu0  ;;  %v2586_v32 = vpop.f32.mrb[48].mxu1 }
 0x39c   : > { %v2020_v28 = vpop.f32.mrb[25].mxu0  ;;  %v2588_v7 = vpop.f32.mrb[49].mxu1 }
 0x39d   : > { %v2022_v29 = vpop.f32.mrb[26].mxu0 }
 0x39e   : > { %v3283_v30 = vpack.c.bf16 %v2022_v29, %v2018_v27  ;;  %v2024_v34 = vpop.f32.mrb[27].mxu0 }
 0x39f   : > { %v3281_v35 = vpack.c.bf16 %v2024_v34, %v2020_v28 }
 0x3a1   : > { %3282 = vmatprep.subr.bf16.mxu0 %v3281_v35 }
 0x3a2   : > { %3284 = vmatpush1.bf16.msra.mxu0 %v3283_v30 }
 0x3a3   : > { %v2028_v36 = vpop.f32.mrb[28].mxu0 }
 0x3a4   : > { %v2030_v37 = vpop.f32.mrb[29].mxu0 }
 0x3a5   : > { %v2032_v38 = vpop.f32.mrb[30].mxu0 }
 0x3a6   : > { %v3288_v39 = vpack.c.bf16 %v2032_v38, %v2028_v36  ;;  %v2034_v13 = vpop.f32.mrb[31].mxu0 }
 0x3a7   : > { %v3285_v40 = vpack.c.bf16 %v2034_v13, %v2030_v37 }
 0x3a9   : > { %3287 = vmatprep.subr.msk.bf16.mxu0 %vm4067_vm3, %v3285_v40 }
 0x3aa   : > { %3290 = vmatpush1.bf16.msk.msra.mxu0 %vm4067_vm3, %v3288_v39 }
 0x3ab   : > { %3292 = vmatprep.subr.bf16.mxu0 %v3291_v19 }
 0x3ad   : > { %3133 = vmatmul.mubr.msk.f32.vlgmr.msra.gmra.mrb[8].mxu0 %vm711_vm4, %v3123_v42 }
 0x3ae   : > { %2146 = vmatprep.mubr.f32.mxu0 %v3775_v41  ;;  %3294 = vmatpush1.bf16.msra.mxu0 %v3293_v33 }
 0x3af   : > { %3297 = vmatprep.subr.msk.bf16.mxu0 %vm4067_vm3, %v3295_v25 }
 0x3b1   : > { %3134 = vmatmul.mubr.msk.f32.gmra.mrb[10].mxu0 %vm711_vm4, %v3124_v43 }
 0x3b2   : > { %2152 = vmatprep.mubr.f32.mxu0 %v3775_v41  ;;  %3300 = vmatpush1.bf16.msk.msra.mxu0 %vm4067_vm3, %v3298_v23 }
 0x3b5   : > { %3135 = vmatmul.mubr.msk.f32.gmra.mrb[12].mxu0 %vm711_vm4, %v3125_v44 }
 0x3b6   : > { %2158 = vmatprep.mubr.f32.mxu0 %v3775_v41 }
 0x3b9   : > { %3136 = vmatmul.mubr.msk.f32.gmra.mrb[14].mxu0 %vm711_vm4, %v3126_v45 }
 0x3ba   : > { %2164 = vmatprep.mubr.f32.mxu0 %v3775_v41 }
 0x3bd   : > { %3137 = vmatmul.mubr.msk.f32.gmra.mrb[16].mxu0 %vm711_vm4, %v3127_v46 }
 0x3be   : > { %2170 = vmatprep.mubr.f32.mxu0 %v3775_v41 }
 0x3c1   : > { %3138 = vmatmul.mubr.msk.f32.gmra.mrb[18].mxu0 %vm711_vm4, %v3128_v12 }
 0x3c2   : > { %2176 = vmatprep.mubr.f32.mxu0 %v3775_v41 }
 0x3c5   : > { %3139 = vmatmul.mubr.msk.f32.gmra.mrb[20].mxu0 %vm711_vm4, %v3129_v47 }
 0x3c6   : > { %2182 = vmatprep.mubr.f32.mxu0 %v3775_v41 }
 0x3c9   : > { %3140 = vmatmul.mubr.msk.f32.gmra.mrb[22].mxu0 %vm711_vm4, %v3130_v0 }
 0x3ca   : > { %2542 = vmatprep.mubr.f32.mxu0 %v3775_v41 }
 0x3cd   : > { %3213 = vmatmul.mubr.msk.f32.vlgmr.msra.gmra.mrb[8].mxu0 %vm711_vm4, %v3203_v1 }
 0x3ce   : > { %2548 = vmatprep.mubr.f32.mxu0 %v3775_v41 }
 0x3d1   : > { %3214 = vmatmul.mubr.msk.f32.gmra.mrb[10].mxu0 %vm711_vm4, %v3204_v2 }
 0x3d2   : > { %2554 = vmatprep.mubr.f32.mxu0 %v3775_v41 }
 0x3d5   : > { %3215 = vmatmul.mubr.msk.f32.gmra.mrb[12].mxu0 %vm711_vm4, %v3205_v3 }
 0x3d6   : > { %2560 = vmatprep.mubr.f32.mxu0 %v3775_v41 }
 0x3d9   : > { %3216 = vmatmul.mubr.msk.f32.gmra.mrb[14].mxu0 %vm711_vm4, %v3206_v4 }
 0x3da   : > { %2566 = vmatprep.mubr.f32.mxu0 %v3775_v41 }
 0x3dd   : > { %3217 = vmatmul.mubr.msk.f32.gmra.mrb[16].mxu0 %vm711_vm4, %v3207_v5 }
 0x3de   : > { %2572 = vmatprep.mubr.f32.mxu0 %v3775_v41 }
 0x3e1   : > { %3218 = vmatmul.mubr.msk.f32.gmra.mrb[18].mxu0 %vm711_vm4, %v3208_v6 }
 0x3e2   : > { %2578 = vmatprep.mubr.f32.mxu0 %v3775_v41 }
 0x3e5   : > { %3219 = vmatmul.mubr.msk.f32.gmra.mrb[20].mxu0 %vm711_vm4, %v3209_v31 }
 0x49c   : > { %v2184_v15 = vpop.f32.mrb[22].mxu0 }
 0x49d   : > { %v3319_v41 = vadd.f32 %v2184_v15, %v4380_v62  ;;  %v2186_v16 = vpop.f32.mrb[23].mxu0 }
 0x49e   : > { %v3321_v33 = vadd.f32 %v2186_v16, %v4382_v63 }
 0x49f   : > { %v3320_v19 = vadd.f32 %v3319_v41, %v2586_v32 }
 0x4a0   : > { %v3322_v20 = vadd.f32 %v3321_v33, %v2588_v7  ;;  %v2544_v21 = vpop.f32.mrb[8].mxu0 }
 0x4a1   : > { %v4766_v22 = vadd.f32 %v3320_v19, %v4760_v17  ;;  %v3305_v23 = vadd.f32 %v2544_v21, %v4352_v48  ;;  %v2546_v24 = vpop.f32.mrb[9].mxu0 }
 0x4a2   : > { %v2633_v25 = vadd.f32 %v3322_v20, %v4763_v18  ;;  %v3306_v62 = vadd.f32 %v2546_v24, %v4354_v49 }
 0x4a3   : > { %2642 = vst.msk [vmem:[%s4771_s14 + $0x38] sm:$0xff] %vm2634_vm5, %v4766_v22  ;;  %v2618_v63 = vadd.f32 %v3305_v23, %v4760_v17 }
 0x4a4   : > { %3236 = vst.msk [vmem:[%s4771_s14 + $0xb8] sm:$0xff] %vm2634_vm5, %v2633_v25  ;;  %v2619_v48 = vadd.f32 %v3306_v62, %v4763_v18  ;;  %v2550_v26 = vpop.f32.mrb[10].mxu0 }
 0x4a5   : > { %v3307_v49 = vadd.f32 %v2550_v26, %v4356_v50  ;;  %2651 = vrot.lane.b32.xlu0 %v2618_v63, %s3777_s20  ;;  %2635 = vst.msk [vmem:[%s4771_s14] sm:$0xff] %vm2634_vm5, %v2618_v63  ;;  %v2552_v27 = vpop.f32.mrb[11].mxu0 }
 0x4a6   : > { %3229 = vst.msk [vmem:[%s4771_s14 + $0x80] sm:$0xff] %vm2634_vm5, %v2619_v48  ;;  %v3308_v28 = vadd.f32 %v2552_v27, %v4358_v51 }
 0x4a7   : > { %v2620_v29 = vadd.f32 %v3307_v49, %v4760_v17 }
 0x4a8   : > { %v2621_v30 = vadd.f32 %v3308_v28, %v4763_v18  ;;  %v2556_v34 = vpop.f32.mrb[12].mxu0 }
 0x4a9   : > { %2636 = vst.msk [vmem:[%s4771_s14 + $0x8] sm:$0xff] %vm2634_vm5, %v2620_v29  ;;  %v3309_v50 = vadd.f32 %v2556_v34, %v4360_v52  ;;  %2653 = vrot.lane.b32.xlu0 %v2620_v29, %s3777_s20  ;;  %v2558_v35 = vpop.f32.mrb[13].mxu0 }
 0x4aa   : > { %3230 = vst.msk [vmem:[%s4771_s14 + $0x88] sm:$0xff] %vm2634_vm5, %v2621_v30  ;;  %v3310_v36 = vadd.f32 %v2558_v35, %v4362_v53 }
 0x4ab   : > { %v2622_v51 = vadd.f32 %v3309_v50, %v4760_v17 }
 0x4ac   : > { %v2623_v37 = vadd.f32 %v3310_v36, %v4763_v18  ;;  %v2562_v38 = vpop.f32.mrb[14].mxu0 }
 0x4ad   : > { %v3311_v39 = vadd.f32 %v2562_v38, %v4364_v54  ;;  %2655 = vrot.lane.b32.xlu1 %v2622_v51, %s3777_s20  ;;  %2637 = vst.msk [vmem:[%s4771_s14 + $0x10] sm:$0xff] %vm2634_vm5, %v2622_v51  ;;  %v2564_v52 = vpop.f32.mrb[15].mxu0 }
 0x4ae   : > { %3231 = vst.msk [vmem:[%s4771_s14 + $0x90] sm:$0xff] %vm2634_vm5, %v2623_v37  ;;  %v3312_v13 = vadd.f32 %v2564_v52, %v4366_v55 }
 0x4af   : > { %v2624_v53 = vadd.f32 %v3311_v39, %v4760_v17 }
 0x4b0   : > { %v2625_v40 = vadd.f32 %v3312_v13, %v4763_v18  ;;  %v2568_v42 = vpop.f32.mrb[16].mxu0 }
 0x4b1   : > { %2638 = vst.msk [vmem:[%s4771_s14 + $0x18] sm:$0xff] %vm2634_vm5, %v2624_v53  ;;  %v3313_v54 = vadd.f32 %v2568_v42, %v4368_v56  ;;  %2657 = vrot.lane.b32.xlu1 %v2624_v53, %s3777_s20  ;;  %v2570_v43 = vpop.f32.mrb[17].mxu0 }
 0x4b2   : > { %3232 = vst.msk [vmem:[%s4771_s14 + $0x98] sm:$0xff] %vm2634_vm5, %v2625_v40  ;;  %v3314_v44 = vadd.f32 %v2570_v43, %v4370_v57 }
 0x4b3   : > { %v2626_v55 = vadd.f32 %v3313_v54, %v4760_v17 }
 0x4b4   : > { %v2627_v45 = vadd.f32 %v3314_v44, %v4763_v18  ;;  %v2574_v46 = vpop.f32.mrb[18].mxu0 }
 0x4b5   : > { %2639 = vst.msk [vmem:[%s4771_s14 + $0x20] sm:$0xff] %vm2634_vm5, %v2626_v55  ;;  %v3315_v12 = vadd.f32 %v2574_v46, %v4372_v58  ;;  %2659 = vrot.lane.b32.xlu0 %v2626_v55, %s3777_s20  ;;  %v2576_v56 = vpop.f32.mrb[19].mxu0 }
 0x4b6   : > { %3233 = vst.msk [vmem:[%s4771_s14 + $0xa0] sm:$0xff] %vm2634_vm5, %v2627_v45  ;;  %v3316_v47 = vadd.f32 %v2576_v56, %v4374_v59 }
 0x4b7   : > { %v2628_v57 = vadd.f32 %v3315_v12, %v4760_v17 }
 0x4b8   : > { %v2629_v0 = vadd.f32 %v3316_v47, %v4763_v18  ;;  %v2580_v1 = vpop.f32.mrb[20].mxu0 }
 0x4b9   : > { %2640 = vst.msk [vmem:[%s4771_s14 + $0x28] sm:$0xff] %vm2634_vm5, %v2628_v57  ;;  %v3317_v58 = vadd.f32 %v2580_v1, %v4376_v60  ;;  %2661 = vrot.lane.b32.xlu1 %v2628_v57, %s3777_s20  ;;  %v2582_v2 = vpop.f32.mrb[21].mxu0 }
 0x4ba   : > { %3234 = vst.msk [vmem:[%s4771_s14 + $0xa8] sm:$0xff] %vm2634_vm5, %v2629_v0  ;;  %v3318_v59 = vadd.f32 %v2582_v2, %v4378_v61 }
 0x4bb   : > { %v2630_v3 = vadd.f32 %v3317_v58, %v4760_v17 }
 0x4bc   : > { %v2631_v4 = vadd.f32 %v3318_v59, %v4763_v18 }
 0x4bd   : > { %2641 = vst.msk [vmem:[%s4771_s14 + $0x30] sm:$0xff] %vm2634_vm5, %v2630_v3  ;;  %2665 = vrot.lane.b32.xlu1 %v4766_v22, %s3777_s20  ;;  %2663 = vrot.lane.b32.xlu0 %v2630_v3, %s3777_s20 }
 0x4be   : > { %3235 = vst.msk [vmem:[%s4771_s14 + $0xb0] sm:$0xff] %vm2634_vm5, %v2631_v4 }
 0x517   : > { %v2652_v60 = vpop.permute.xlu0 %2651 }
 0x518   : > { %3221 = vst.msk [vmem:[%s4771_s14 + $0x40] sm:$0xff] %vm2634_vm5, %v2652_v60 }
 0x51b   : > { %v2654_v61 = vpop.permute.xlu0 %2653 }
 0x51c   : > { %3222 = vst.msk [vmem:[%s4771_s14 + $0x48] sm:$0xff] %vm2634_vm5, %v2654_v61 }
 0x51f   : > { %v2656_v5 = vpop.permute.xlu1 %2655 }
 0x520   : > { %3223 = vst.msk [vmem:[%s4771_s14 + $0x50] sm:$0xff] %vm2634_vm5, %v2656_v5 }
 0x523   : > { %v2658_v6 = vpop.permute.xlu1 %2657 }
 0x524   : > { %3224 = vst.msk [vmem:[%s4771_s14 + $0x58] sm:$0xff] %vm2634_vm5, %v2658_v6 }
 0x527   : > { %v2660_v31 = vpop.permute.xlu0 %2659 }
 0x528   : > { %3225 = vst.msk [vmem:[%s4771_s14 + $0x60] sm:$0xff] %vm2634_vm5, %v2660_v31 }
 0x52b   : > { %v2662_v32 = vpop.permute.xlu1 %2661 }
 0x52c   : > { %3226 = vst.msk [vmem:[%s4771_s14 + $0x68] sm:$0xff] %vm2634_vm5, %v2662_v32 }
 0x52f   : > { %v2666_v7 = vpop.permute.xlu1 %2665  ;;  %v2664_v8 = vpop.permute.xlu0 %2663 }
 0x530   : > { %3228 = vst.msk [vmem:[%s4771_s14 + $0x78] sm:$0xff] %vm2634_vm5, %v2666_v7  ;;  %3227 = vst.msk [vmem:[%s4771_s14 + $0x70] sm:$0xff] %vm2634_vm5, %v2664_v8 }
 0x531   : > { %3724 = shalt.err (!%p3721_p3)
}
 0x532   : > { %s3725_s8 = scalar_lea.hbm %s4858_s29, 3072  ;;  %s3729_s12 = scalar_lea.hbm %s4913_s4, 6144 }
 0x533   : > { %p3726_p4 = scmp.ne.s32.totalorder %s4858_s29, %s3725_s8  ;;  %p3730_p9 = scmp.lt.u32.totalorder %s4858_s29, %s4913_s4 }
 0x534   : > { %p3731_p10 = scmp.lt.u32.totalorder %s3729_s12, %s3725_s8  ;;  %p3733_p12 = scmp.lt.u32.totalorder %s3725_s8, %s4858_s29 }
 0x535   : > { %p3727_p7 = pnand %p3726_p4, %p3844_p5 }
 0x536   : > { %p3732_p11 = por %p3731_p10, %p3730_p9 }
 0x537   : > { %p3728_p8 = pneg %p3727_p7 }
 0x538   : > { %p3734_p13 = por %p3733_p12, %p3732_p11 }
 0x53a   : > { %p3735_p0 = pnand %p3734_p13, %p3728_p8 }
 0x53c   : > { %3738 = shalt.err (!%p3735_p0)
}
 0x53d   : > { %s3779_s14 = smov 128   ;;  %s3780_s20 = smov 8  }
 0x53e   : > { %3387 = dma.vmem_to_hbm [thread:$0]  (%p3844_p5), %s4860_s23, 3072, %s4858_s29, %s4868_s19, %s3779_s14, %s3779_s14, %s3780_s20  }
 0x53f PF: > { %p3393_p1 = scmp.ge.s32.totalorder %s3773_s18, 2  ;;  %s2722_s22 = sand.u32 1, %s3761_s15  }
 0x540   : > { %s2723_s27 = scalar_lea.sflag [#allocation3], %s2722_s22 }
 0x541   : > { %p3390_p2 = pnand %p3393_p1, %p3848_p6 }
 0x543   : > { %3756 = dma.done.wait (!%p3390_p2), %s2723_s27, 3072  }
 0x544   : > { %3758 = vsyncadd (!%p3390_p2), %s2723_s27, 4294964224  ;;  %p14_p3 = scmp.ge.s32.totalorder %s3831_s21, 4   ;;  %s4918_s15 = smov %s3765_s16 }
 0x545   : > { %s4919_s16 = smov %s3769_s17  ;;  %s4920_s17 = smov %s3842_s24 }
 0x546   : > { %s4921_s18 = smov %s3831_s21  ;;  %16 = sbr.rel (!%p14_p3) target bundleno = 3 (0x3), region = 83 }
 0x54d   :  { %2728 = vsyncpa [#allocation3], 1 }
 0x54e   :  { %2730 = vsyncpa [#allocation3 + $0x1], 1 }

</bundles_post_ra>
